<compile_context>
chip_gen: v7x
topology: tpu7x:2x2x1
jax: 0.10.0
libtpu: 0.0.40
codegen_flags: <defaults>
</compile_context>

<pallas_src>
import jax
import jax.numpy as jnp
from jax import lax
from jax.experimental import pallas as pl
from jax.experimental.pallas import tpu as pltpu


def _round_up(n, m):
    return ((n + m - 1) // m) * m


def _pad_channels(n):
    # Lane-dense padding: >=256 real channels pad to a 256 multiple so both
    # matmul operands fill the 2x256x256 MXU on v6e/v7x; smaller widths pad
    # to one 128-lane tile.  No-op for production FPN widths 256/512/1024.
    return _round_up(n, 256) if n >= 256 else _round_up(n, 128)


def _lateral_block_kernel(c_ref, pw_ref, wl_ref, bl_ref, wt_ref, bt_ref, o_ref):
    # c_ref:  (1, H, W, Cc)    current-level feature (channels lane-padded)
    # pw_ref: (1, Hp, W, Cp)   top-down feature, already x2-upsampled along W
    # wl_ref: (Cc, Cp)         1x1 lateral conv weight
    # bl_ref: (1, Cp)          lateral bias (f32)
    # wt_ref: (9*Cp, Cout)     3x3 top conv weight, rows ordered (ky, kx, ci)
    # bt_ref: (1, Cout)        top bias (f32)
    # o_ref:  (1, H, W, Cout)
    _, H, W, Cc = c_ref.shape
    Cp = wl_ref.shape[1]
    Cout = wt_ref.shape[1]
    Hp = pw_ref.shape[1]                      # == H // 2

    # ---- 1x1 lateral conv: one (H*W, Cc) @ (Cc, Cp) MXU matmul (f32 acc) ----
    c = c_ref[0].reshape(H * W, Cc)           # layout no-op (W % 8 == 0)
    lat = jnp.dot(c, wl_ref[...], preferred_element_type=jnp.float32)
    lat = lat + bl_ref[...]                   # (H*W, Cp) f32

    # ---- top-down merge; nearest x2 H-upsample fused into the add ----
    # up(p)[2*hp + r, w] == p[hp, w]: broadcast over the size-2 axis, no
    # materialized (H, W, Cp) upsample intermediate.  Add kept in f32 (v5e).
    ph = pw_ref[0].astype(jnp.float32)        # (Hp, W, Cp)
    mid = (lat.reshape(Hp, 2, W, Cp) + ph[:, None, :, :]).reshape(H, W, Cp)

    # ---- 3x3 "top" conv: 9 accumulating MXU matmuls, no im2col buffer ----
    # W (sublane axis) shifts via XLU rolls + boundary mask; H shifts are free
    # leading-dim slices.  Peak live data ~3x mid instead of the 9x im2col.
    col = lax.broadcasted_iota(jnp.int32, (1, W, 1), 1)
    left = jnp.where(col == 0, 0.0, pltpu.roll(mid, shift=1, axis=1))        # x-1
    right = jnp.where(col == W - 1, 0.0, pltpu.roll(mid, shift=W - 1, axis=1))  # x+1
    taps = (left, mid, right)                 # kx = 0, 1, 2

    zero_row = jnp.zeros((1, W, Cp), jnp.float32)
    acc = jnp.zeros((H * W, Cout), jnp.float32)
    for ky in range(3):                       # dy = ky - 1
        for kx in range(3):
            src = taps[kx]
            if ky == 0:                       # window row y-1 (zero at y=0)
                win = jnp.concatenate([zero_row, src[:H - 1]], axis=0)
            elif ky == 1:
                win = src
            else:                             # window row y+1 (zero at y=H-1)
                win = jnp.concatenate([src[1:], zero_row], axis=0)
            k = ky * 3 + kx
            acc = acc + jnp.dot(
                win.reshape(H * W, Cp).astype(wt_ref.dtype),
                wt_ref[k * Cp:(k + 1) * Cp, :],
                preferred_element_type=jnp.float32)

    out = acc + bt_ref[...]
    o_ref[0] = out.reshape(H, W, Cout).astype(o_ref.dtype)   # lane-dense vst


def lateral_block_nhwc(c, p, wl, bl, wt, bt, *, compute_dtype=None,
                       out_dtype=None):
    """LateralBlock.forward on NHWC tensors (the layout-native entry point).

    c:  (N, H, W, Cc)         fine-level feature
    p:  (N, H//2, W//2, Cp)   coarser top-down feature
    wl: (Cc, Cp), bl: (Cp,)   1x1 lateral conv
    wt: (3, 3, Cp, Cout), bt: (Cout,)   3x3 top conv
    Returns (N, H, W, Cout).
    """
    N, H, W, Cc = c.shape
    Cp = wl.shape[1]
    Cout = wt.shape[3]
    Hp, Wp = p.shape[1], p.shape[2]

    if out_dtype is None:
        out_dtype = c.dtype
    if compute_dtype is None:
        compute_dtype = c.dtype

    assert H == 2 * Hp and W == 2 * Wp, "even spatial dims expected (see TODO)"
    assert W % 8 == 0, "W must be a multiple of the 8-sublane tile (see TODO)"

    Ccp, Cpp, Coutp = _pad_channels(Cc), _pad_channels(Cp), _pad_channels(Cout)

    # Nearest x2 upsample along W only (the H direction is fused in-kernel), so
    # HBM traffic for p is 2x its source size instead of 4x.
    # TODO(synk): fold the W-expand into the kernel too (half-width DMA +
    # strided sublane interleave) to recover the remaining 2x.
    p_w = jnp.repeat(p, 2, axis=2)                                 # (N, Hp, W, Cp)

    cp = jnp.pad(c, ((0, 0),) * 3 + ((0, Ccp - Cc),)).astype(compute_dtype)
    pp = jnp.pad(p_w, ((0, 0),) * 3 + ((0, Cpp - Cp),)).astype(compute_dtype)
    wlp = jnp.pad(wl, ((0, Ccp - Cc), (0, Cpp - Cp))).astype(compute_dtype)
    blp = jnp.pad(bl, (0, Cpp - Cp)).astype(jnp.float32).reshape(1, Cpp)
    wtp = jnp.pad(wt, ((0, 0), (0, 0), (0, Cpp - Cp), (0, Coutp - Cout)))
    wtp = wtp.reshape(9 * Cpp, Coutp).astype(compute_dtype)        # rows = (ky,kx,ci)
    btp = jnp.pad(bt, (0, Coutp - Cout)).astype(jnp.float32).reshape(1, Coutp)

    in_isz = jnp.dtype(compute_dtype).itemsize
    out_isz = jnp.dtype(out_dtype).itemsize
    flops = 2 * N * H * W * (Ccp * Cpp + 9 * Cpp * Coutp)
    bytes_accessed = ((cp.size + pp.size + wlp.size + wtp.size) * in_isz
                      + (blp.size + btp.size) * 4
                      + N * H * W * Coutp * out_isz)

    # Raise the scoped-VMEM limit past the conservative defaults (16 MiB v5e /
    # 32 MiB v6e-v7x) only when the per-step working set actually needs it.
    working_set = (2 * (H * W * Ccp + Hp * W * Cpp) * in_isz       # dbl-buffered in
                   + 2 * H * W * Coutp * out_isz                   # dbl-buffered out
                   + (Ccp * Cpp + 9 * Cpp * Coutp) * in_isz        # weights
                   + 6 * H * W * Cpp * 4)                          # f32 temporaries
    vmem_limit = None
    if working_set > 24 * (1 << 20):
        vmem_limit = int(min(working_set + 8 * (1 << 20), 96 * (1 << 20)))

    def build(single_buffer_consts):
        const_kw = ({"pipeline_mode": pl.Buffered(1)}
                    if single_buffer_consts else {})
        grid_spec = pltpu.PrefetchScalarGridSpec(
            num_scalar_prefetch=0,
            grid=(N,),
            in_specs=[
                pl.BlockSpec((1, H, W, Ccp), lambda b: (b, 0, 0, 0)),
                pl.BlockSpec((1, Hp, W, Cpp), lambda b: (b, 0, 0, 0)),
                # Constant-index weights/biases: one pipeline buffer suffices.
                pl.BlockSpec((Ccp, Cpp), lambda b: (0, 0), **const_kw),
                pl.BlockSpec((1, Cpp), lambda b: (0, 0), **const_kw),
                pl.BlockSpec((9 * Cpp, Coutp), lambda b: (0, 0), **const_kw),
                pl.BlockSpec((1, Coutp), lambda b: (0, 0), **const_kw),
            ],
            out_specs=pl.BlockSpec((1, H, W, Coutp), lambda b: (b, 0, 0, 0)),
        )
        return pl.pallas_call(
            _lateral_block_kernel,
            out_shape=jax.ShapeDtypeStruct((N, H, W, Coutp), out_dtype),
            grid_spec=grid_spec,
            compiler_params=pltpu.CompilerParams(
                dimension_semantics=("parallel",),   # batch iters independent
                vmem_limit_bytes=vmem_limit),
            cost_estimate=pl.CostEstimate(
                flops=flops, transcendentals=0, bytes_accessed=bytes_accessed),
        )

    args = (cp, pp, wlp, blp, wtp, btp)
    try:
        out = jax.block_until_ready(build(True)(*args))
    except Exception:
        # pl.Buffered(1) unsupported on this jax/libtpu combo: fall back to the
        # default double-buffered constant blocks (costs VMEM, nothing else).
        out = build(False)(*args)

    return out[..., :Cout]


def lateral_block(c_nchw, p_nchw, wl_oihw, bl, wt_oihw, bt, *,
                  compute_dtype=None):
    """PyTorch-parity entry point (NCHW in / NCHW out).

    The NCHW<->NHWC transposes exist only to match the PyTorch layout; in an
    NHWC-native model call lateral_block_nhwc directly and they disappear.
    """
    wl = jnp.transpose(wl_oihw[:, :, 0, 0], (1, 0))        # (Cc, Cp)
    wt = jnp.transpose(wt_oihw, (2, 3, 1, 0))              # (3, 3, Cp, Cout)
    c = jnp.transpose(c_nchw, (0, 2, 3, 1))
    p = jnp.transpose(p_nchw, (0, 2, 3, 1))
    out = lateral_block_nhwc(c, p, wl, bl, wt, bt, compute_dtype=compute_dtype)
    return jnp.transpose(out, (0, 3, 1, 2))


def lateral_block_ref(c, p, wl_oihw, bl, wt_oihw, bt):
    """Pure-JAX reference (mirrors the PyTorch forward exactly)."""
    H, W = c.shape[2], c.shape[3]
    lat = lax.conv_general_dilated(
        c, wl_oihw, (1, 1), 'VALID',
        dimension_numbers=('NCHW', 'OIHW', 'NCHW')) + bl.reshape(1, -1, 1, 1)
    p_up = jnp.repeat(jnp.repeat(p, 2, axis=2), 2, axis=3)[:, :, :H, :W]
    mid = p_up + lat
    out = lax.conv_general_dilated(
        mid, wt_oihw, (1, 1), ((1, 1), (1, 1)),
        dimension_numbers=('NCHW', 'OIHW', 'NCHW')) + bt.reshape(1, -1, 1, 1)
    return out


if __name__ == "__main__":
    # Small shapes consistent with the module: c is the fine-level feature,
    # p the coarser top-down feature at half the spatial resolution.
    N, Cc, Cp, Cout, H, W = 2, 4, 8, 8, 16, 16

    key = jax.random.PRNGKey(0)
    k_c, k_p, k_wl, k_bl, k_wt, k_bt = jax.random.split(key, 6)

    c = jax.random.normal(k_c, (N, Cc, H, W), jnp.float32)
    p = jax.random.normal(k_p, (N, Cp, H // 2, W // 2), jnp.float32)

    # Deterministic synthetic parameters (shapes match nn.Conv2d in __init__).
    wl_oihw = 0.1 * jax.random.normal(k_wl, (Cp, Cc, 1, 1), jnp.float32)
    bl = 0.1 * jax.random.normal(k_bl, (Cp,), jnp.float32)
    wt_oihw = 0.1 * jax.random.normal(k_wt, (Cout, Cp, 3, 3), jnp.float32)
    bt = 0.1 * jax.random.normal(k_bt, (Cout,), jnp.float32)

    ref = jax.block_until_ready(
        lateral_block_ref(c, p, wl_oihw, bl, wt_oihw, bt))

    # f32 path: exact (up to accumulation order).
    out = jax.block_until_ready(lateral_block(c, p, wl_oihw, bl, wt_oihw, bt))
    assert out.shape == (N, Cout, H, W), out.shape
    assert jnp.allclose(out, ref, rtol=1e-4, atol=1e-4), (
        float(jnp.max(jnp.abs(out - ref))))

    # bf16 storage path (f32 accumulation): loose tolerance.
    out_bf16 = jax.block_until_ready(
        lateral_block(c, p, wl_oihw, bl, wt_oihw, bt,
                      compute_dtype=jnp.bfloat16))
    assert out_bf16.shape == (N, Cout, H, W), out_bf16.shape
    assert jnp.allclose(out_bf16, ref, rtol=1e-1, atol=1e-1), (
        float(jnp.max(jnp.abs(out_bf16 - ref))))

    print("KERNEL_OK")
</pallas_src>

<mosaic_0001>
module attributes {stable_mosaic.version = 11 : i64} {
  func.func @_lateral_block_kernel(%arg0: i32, %arg1: memref<1x16x16x128xf32, #tpu.memory_space<vmem>>, %arg2: memref<1x8x16x128xf32, #tpu.memory_space<vmem>>, %arg3: memref<128x128xf32, #tpu.memory_space<vmem>>, %arg4: memref<1x128xf32, #tpu.memory_space<vmem>>, %arg5: memref<1152x128xf32, #tpu.memory_space<vmem>>, %arg6: memref<1x128xf32, #tpu.memory_space<vmem>>, %arg7: memref<1x16x16x128xf32, #tpu.memory_space<vmem>>) attributes {dimension_semantics = [#tpu.dimension_semantics<parallel>], iteration_bounds = array<i64: 2>, scalar_prefetch = 0 : i64, scratch_operands = 0 : i64, tpu.core_type = #tpu.core_type<tc>, window_params = [{transform_indices = @transform_0, window_bounds = array<i64: 1, 16, 16, 128>}, {transform_indices = @transform_1, window_bounds = array<i64: 1, 8, 16, 128>}, {pipeline_mode = #tpu.pipeline_mode<synchronous>, transform_indices = @transform_2, window_bounds = array<i64: 128, 128>}, {pipeline_mode = #tpu.pipeline_mode<synchronous>, transform_indices = @transform_3, window_bounds = array<i64: 1, 128>}, {pipeline_mode = #tpu.pipeline_mode<synchronous>, transform_indices = @transform_4, window_bounds = array<i64: 1152, 128>}, {pipeline_mode = #tpu.pipeline_mode<synchronous>, transform_indices = @transform_5, window_bounds = array<i64: 1, 128>}, {transform_indices = @transform_6, window_bounds = array<i64: 1, 16, 16, 128>}]} {
    %c0 = arith.constant 0 : index
    %c0_0 = arith.constant 0 : index
    %c0_1 = arith.constant 0 : index
    %c0_2 = arith.constant 0 : index
    %0 = vector.load %arg1[%c0, %c0_0, %c0_1, %c0_2] : memref<1x16x16x128xf32, #tpu.memory_space<vmem>>, vector<1x16x16x128xf32>
    %1 = vector.shape_cast %0 : vector<1x16x16x128xf32> to vector<16x16x128xf32>
    %2 = vector.shape_cast %1 : vector<16x16x128xf32> to vector<256x128xf32>
    %c0_3 = arith.constant 0 : index
    %c0_4 = arith.constant 0 : index
    %3 = vector.load %arg3[%c0_3, %c0_4] : memref<128x128xf32, #tpu.memory_space<vmem>>, vector<128x128xf32>
    %cst = arith.constant dense<0.000000e+00> : vector<256x128xf32>
    %4 = tpu.matmul %2, %3, %cst {dimension_numbers = #tpu.dot_dimension_numbers<[1], [0], [0], [1], [0, 0, 1, 1], [], []>} : vector<256x128xf32>, vector<128x128xf32>, vector<256x128xf32> -> vector<256x128xf32>
    %c0_5 = arith.constant 0 : index
    %c0_6 = arith.constant 0 : index
    %5 = vector.load %arg4[%c0_5, %c0_6] : memref<1x128xf32, #tpu.memory_space<vmem>>, vector<1x128xf32>
    %6 = vector.broadcast %5 : vector<1x128xf32> to vector<256x128xf32>
    %7 = arith.addf %4, %6 : vector<256x128xf32>
    %c0_7 = arith.constant 0 : index
    %c0_8 = arith.constant 0 : index
    %c0_9 = arith.constant 0 : index
    %c0_10 = arith.constant 0 : index
    %8 = vector.load %arg2[%c0_7, %c0_8, %c0_9, %c0_10] : memref<1x8x16x128xf32, #tpu.memory_space<vmem>>, vector<1x8x16x128xf32>
    %9 = vector.shape_cast %8 : vector<1x8x16x128xf32> to vector<8x16x128xf32>
    %10 = vector.shape_cast %7 : vector<256x128xf32> to vector<8x2x16x128xf32>
    %11 = vector.shape_cast %9 : vector<8x16x128xf32> to vector<8x1x16x128xf32>
    %12 = vector.broadcast %11 : vector<8x1x16x128xf32> to vector<8x2x16x128xf32>
    %13 = arith.addf %10, %12 : vector<8x2x16x128xf32>
    %14 = vector.shape_cast %13 : vector<8x2x16x128xf32> to vector<16x16x128xf32>
    %15 = tpu.iota {dimensions = array<i32: 1>} : vector<1x16x1xi32>
    %c0_i32 = arith.constant 0 : i32
    %16 = vector.broadcast %c0_i32 : i32 to vector<1x16x1xi32>
    %17 = arith.cmpi eq, %15, %16 : vector<1x16x1xi32>
    %c1_i32 = arith.constant 1 : i32
    %18 = tpu.dynamic_rotate %14 by %c1_i32 dim 1 : vector<16x16x128xf32>, i32 -> vector<16x16x128xf32>
    %cst_11 = arith.constant 0.000000e+00 : f32
    %19 = vector.shape_cast %17 : vector<1x16x1xi1> to vector<1x16x1xi1>
    %20 = vector.broadcast %19 : vector<1x16x1xi1> to vector<16x16x128xi1>
    %21 = vector.broadcast %cst_11 : f32 to vector<16x16x128xf32>
    %22 = arith.select %20, %21, %18 : vector<16x16x128xi1>, vector<16x16x128xf32>
    %c15_i32 = arith.constant 15 : i32
    %23 = vector.broadcast %c15_i32 : i32 to vector<1x16x1xi32>
    %24 = arith.cmpi eq, %15, %23 : vector<1x16x1xi32>
    %c15_i32_12 = arith.constant 15 : i32
    %25 = tpu.dynamic_rotate %14 by %c15_i32_12 dim 1 : vector<16x16x128xf32>, i32 -> vector<16x16x128xf32>
    %cst_13 = arith.constant 0.000000e+00 : f32
    %26 = vector.shape_cast %24 : vector<1x16x1xi1> to vector<1x16x1xi1>
    %27 = vector.broadcast %26 : vector<1x16x1xi1> to vector<16x16x128xi1>
    %28 = vector.broadcast %cst_13 : f32 to vector<16x16x128xf32>
    %29 = arith.select %27, %28, %25 : vector<16x16x128xi1>, vector<16x16x128xf32>
    %cst_14 = arith.constant 0.000000e+00 : f32
    %30 = vector.broadcast %cst_14 : f32 to vector<1x16x128xf32>
    %cst_15 = arith.constant 0.000000e+00 : f32
    %31 = vector.broadcast %cst_15 : f32 to vector<256x128xf32>
    %32 = vector.extract_strided_slice %22 {offsets = [0, 0, 0], sizes = [15, 16, 128], strides = [1, 1, 1]} : vector<16x16x128xf32> to vector<15x16x128xf32>
    %33 = tpu.concatenate %30, %32 in 0 : vector<1x16x128xf32>, vector<15x16x128xf32> -> vector<16x16x128xf32>
    %34 = vector.shape_cast %33 : vector<16x16x128xf32> to vector<256x128xf32>
    %c0_16 = arith.constant 0 : index
    %c0_17 = arith.constant 0 : index
    %35 = vector.load %arg5[%c0_16, %c0_17] : memref<1152x128xf32, #tpu.memory_space<vmem>>, vector<128x128xf32>
    %cst_18 = arith.constant dense<0.000000e+00> : vector<256x128xf32>
    %36 = tpu.matmul %34, %35, %cst_18 {dimension_numbers = #tpu.dot_dimension_numbers<[1], [0], [0], [1], [0, 0, 1, 1], [], []>} : vector<256x128xf32>, vector<128x128xf32>, vector<256x128xf32> -> vector<256x128xf32>
    %37 = arith.addf %31, %36 : vector<256x128xf32>
    %38 = vector.extract_strided_slice %14 {offsets = [0, 0, 0], sizes = [15, 16, 128], strides = [1, 1, 1]} : vector<16x16x128xf32> to vector<15x16x128xf32>
    %39 = tpu.concatenate %30, %38 in 0 : vector<1x16x128xf32>, vector<15x16x128xf32> -> vector<16x16x128xf32>
    %40 = vector.shape_cast %39 : vector<16x16x128xf32> to vector<256x128xf32>
    %c128 = arith.constant 128 : index
    %c0_19 = arith.constant 0 : index
    %41 = vector.load %arg5[%c128, %c0_19] : memref<1152x128xf32, #tpu.memory_space<vmem>>, vector<128x128xf32>
    %cst_20 = arith.constant dense<0.000000e+00> : vector<256x128xf32>
    %42 = tpu.matmul %40, %41, %cst_20 {dimension_numbers = #tpu.dot_dimension_numbers<[1], [0], [0], [1], [0, 0, 1, 1], [], []>} : vector<256x128xf32>, vector<128x128xf32>, vector<256x128xf32> -> vector<256x128xf32>
    %43 = arith.addf %37, %42 : vector<256x128xf32>
    %44 = vector.extract_strided_slice %29 {offsets = [0, 0, 0], sizes = [15, 16, 128], strides = [1, 1, 1]} : vector<16x16x128xf32> to vector<15x16x128xf32>
    %45 = tpu.concatenate %30, %44 in 0 : vector<1x16x128xf32>, vector<15x16x128xf32> -> vector<16x16x128xf32>
    %46 = vector.shape_cast %45 : vector<16x16x128xf32> to vector<256x128xf32>
    %c256 = arith.constant 256 : index
    %c0_21 = arith.constant 0 : index
    %47 = vector.load %arg5[%c256, %c0_21] : memref<1152x128xf32, #tpu.memory_space<vmem>>, vector<128x128xf32>
    %cst_22 = arith.constant dense<0.000000e+00> : vector<256x128xf32>
    %48 = tpu.matmul %46, %47, %cst_22 {dimension_numbers = #tpu.dot_dimension_numbers<[1], [0], [0], [1], [0, 0, 1, 1], [], []>} : vector<256x128xf32>, vector<128x128xf32>, vector<256x128xf32> -> vector<256x128xf32>
    %49 = arith.addf %43, %48 : vector<256x128xf32>
    %50 = vector.shape_cast %22 : vector<16x16x128xf32> to vector<256x128xf32>
    %c384 = arith.constant 384 : index
    %c0_23 = arith.constant 0 : index
    %51 = vector.load %arg5[%c384, %c0_23] : memref<1152x128xf32, #tpu.memory_space<vmem>>, vector<128x128xf32>
    %cst_24 = arith.constant dense<0.000000e+00> : vector<256x128xf32>
    %52 = tpu.matmul %50, %51, %cst_24 {dimension_numbers = #tpu.dot_dimension_numbers<[1], [0], [0], [1], [0, 0, 1, 1], [], []>} : vector<256x128xf32>, vector<128x128xf32>, vector<256x128xf32> -> vector<256x128xf32>
    %53 = arith.addf %49, %52 : vector<256x128xf32>
    %54 = vector.shape_cast %14 : vector<16x16x128xf32> to vector<256x128xf32>
    %c512 = arith.constant 512 : index
    %c0_25 = arith.constant 0 : index
    %55 = vector.load %arg5[%c512, %c0_25] : memref<1152x128xf32, #tpu.memory_space<vmem>>, vector<128x128xf32>
    %cst_26 = arith.constant dense<0.000000e+00> : vector<256x128xf32>
    %56 = tpu.matmul %54, %55, %cst_26 {dimension_numbers = #tpu.dot_dimension_numbers<[1], [0], [0], [1], [0, 0, 1, 1], [], []>} : vector<256x128xf32>, vector<128x128xf32>, vector<256x128xf32> -> vector<256x128xf32>
    %57 = arith.addf %53, %56 : vector<256x128xf32>
    %58 = vector.shape_cast %29 : vector<16x16x128xf32> to vector<256x128xf32>
    %c640 = arith.constant 640 : index
    %c0_27 = arith.constant 0 : index
    %59 = vector.load %arg5[%c640, %c0_27] : memref<1152x128xf32, #tpu.memory_space<vmem>>, vector<128x128xf32>
    %cst_28 = arith.constant dense<0.000000e+00> : vector<256x128xf32>
    %60 = tpu.matmul %58, %59, %cst_28 {dimension_numbers = #tpu.dot_dimension_numbers<[1], [0], [0], [1], [0, 0, 1, 1], [], []>} : vector<256x128xf32>, vector<128x128xf32>, vector<256x128xf32> -> vector<256x128xf32>
    %61 = arith.addf %57, %60 : vector<256x128xf32>
    %62 = vector.extract_strided_slice %22 {offsets = [1, 0, 0], sizes = [15, 16, 128], strides = [1, 1, 1]} : vector<16x16x128xf32> to vector<15x16x128xf32>
    %63 = tpu.concatenate %62, %30 in 0 : vector<15x16x128xf32>, vector<1x16x128xf32> -> vector<16x16x128xf32>
    %64 = vector.shape_cast %63 : vector<16x16x128xf32> to vector<256x128xf32>
    %c768 = arith.constant 768 : index
    %c0_29 = arith.constant 0 : index
    %65 = vector.load %arg5[%c768, %c0_29] : memref<1152x128xf32, #tpu.memory_space<vmem>>, vector<128x128xf32>
    %cst_30 = arith.constant dense<0.000000e+00> : vector<256x128xf32>
    %66 = tpu.matmul %64, %65, %cst_30 {dimension_numbers = #tpu.dot_dimension_numbers<[1], [0], [0], [1], [0, 0, 1, 1], [], []>} : vector<256x128xf32>, vector<128x128xf32>, vector<256x128xf32> -> vector<256x128xf32>
    %67 = arith.addf %61, %66 : vector<256x128xf32>
    %68 = vector.extract_strided_slice %14 {offsets = [1, 0, 0], sizes = [15, 16, 128], strides = [1, 1, 1]} : vector<16x16x128xf32> to vector<15x16x128xf32>
    %69 = tpu.concatenate %68, %30 in 0 : vector<15x16x128xf32>, vector<1x16x128xf32> -> vector<16x16x128xf32>
    %70 = vector.shape_cast %69 : vector<16x16x128xf32> to vector<256x128xf32>
    %c896 = arith.constant 896 : index
    %c0_31 = arith.constant 0 : index
    %71 = vector.load %arg5[%c896, %c0_31] : memref<1152x128xf32, #tpu.memory_space<vmem>>, vector<128x128xf32>
    %cst_32 = arith.constant dense<0.000000e+00> : vector<256x128xf32>
    %72 = tpu.matmul %70, %71, %cst_32 {dimension_numbers = #tpu.dot_dimension_numbers<[1], [0], [0], [1], [0, 0, 1, 1], [], []>} : vector<256x128xf32>, vector<128x128xf32>, vector<256x128xf32> -> vector<256x128xf32>
    %73 = arith.addf %67, %72 : vector<256x128xf32>
    %74 = vector.extract_strided_slice %29 {offsets = [1, 0, 0], sizes = [15, 16, 128], strides = [1, 1, 1]} : vector<16x16x128xf32> to vector<15x16x128xf32>
    %75 = tpu.concatenate %74, %30 in 0 : vector<15x16x128xf32>, vector<1x16x128xf32> -> vector<16x16x128xf32>
    %76 = vector.shape_cast %75 : vector<16x16x128xf32> to vector<256x128xf32>
    %c1024 = arith.constant 1024 : index
    %c0_33 = arith.constant 0 : index
    %77 = vector.load %arg5[%c1024, %c0_33] : memref<1152x128xf32, #tpu.memory_space<vmem>>, vector<128x128xf32>
    %cst_34 = arith.constant dense<0.000000e+00> : vector<256x128xf32>
    %78 = tpu.matmul %76, %77, %cst_34 {dimension_numbers = #tpu.dot_dimension_numbers<[1], [0], [0], [1], [0, 0, 1, 1], [], []>} : vector<256x128xf32>, vector<128x128xf32>, vector<256x128xf32> -> vector<256x128xf32>
    %79 = arith.addf %73, %78 : vector<256x128xf32>
    %c0_35 = arith.constant 0 : index
    %c0_36 = arith.constant 0 : index
    %80 = vector.load %arg6[%c0_35, %c0_36] : memref<1x128xf32, #tpu.memory_space<vmem>>, vector<1x128xf32>
    %81 = vector.broadcast %80 : vector<1x128xf32> to vector<256x128xf32>
    %82 = arith.addf %79, %81 : vector<256x128xf32>
    %83 = vector.shape_cast %82 : vector<256x128xf32> to vector<16x16x128xf32>
    %c0_37 = arith.constant 0 : index
    %c0_38 = arith.constant 0 : index
    %c0_39 = arith.constant 0 : index
    %c0_40 = arith.constant 0 : index
    %84 = vector.load %arg7[%c0_37, %c0_38, %c0_39, %c0_40] : memref<1x16x16x128xf32, #tpu.memory_space<vmem>>, vector<1x16x16x128xf32>
    %85 = vector.shape_cast %84 : vector<1x16x16x128xf32> to vector<16x16x128xf32>
    %86 = vector.shape_cast %83 : vector<16x16x128xf32> to vector<1x16x16x128xf32>
    tpu.vector_store %arg7[%c0_37, %c0_38, %c0_39, %c0_40], %86 {strides = array<i32>} : memref<1x16x16x128xf32, #tpu.memory_space<vmem>>, vector<1x16x16x128xf32>,
    return
  }
  func.func @transform_0(%arg0: i32) -> (i32, i32, i32, i32) {
    %c0_i32 = arith.constant 0 : i32
    %c0_i32_0 = arith.constant 0 : i32
    %c0_i32_1 = arith.constant 0 : i32
    %c0_i32_2 = arith.constant 0 : i32
    return %arg0, %c0_i32, %c0_i32_0, %c0_i32_1 : i32, i32, i32, i32
  }
  func.func @transform_1(%arg0: i32) -> (i32, i32, i32, i32) {
    %c0_i32 = arith.constant 0 : i32
    %c0_i32_0 = arith.constant 0 : i32
    %c0_i32_1 = arith.constant 0 : i32
    %c0_i32_2 = arith.constant 0 : i32
    return %arg0, %c0_i32, %c0_i32_0, %c0_i32_1 : i32, i32, i32, i32
  }
  func.func @transform_2(%arg0: i32) -> (i32, i32) {
    %c0_i32 = arith.constant 0 : i32
    %c0_i32_0 = arith.constant 0 : i32
    %c0_i32_1 = arith.constant 0 : i32
    return %c0_i32, %c0_i32_0 : i32, i32
  }
  func.func @transform_3(%arg0: i32) -> (i32, i32) {
    %c0_i32 = arith.constant 0 : i32
    %c0_i32_0 = arith.constant 0 : i32
    %c0_i32_1 = arith.constant 0 : i32
    return %c0_i32, %c0_i32_0 : i32, i32
  }
  func.func @transform_4(%arg0: i32) -> (i32, i32) {
    %c0_i32 = arith.constant 0 : i32
    %c0_i32_0 = arith.constant 0 : i32
    %c0_i32_1 = arith.constant 0 : i32
    return %c0_i32, %c0_i32_0 : i32, i32
  }
  func.func @transform_5(%arg0: i32) -> (i32, i32) {
    %c0_i32 = arith.constant 0 : i32
    %c0_i32_0 = arith.constant 0 : i32
    %c0_i32_1 = arith.constant 0 : i32
    return %c0_i32, %c0_i32_0 : i32, i32
  }
  func.func @transform_6(%arg0: i32) -> (i32, i32, i32, i32) {
    %c0_i32 = arith.constant 0 : i32
    %c0_i32_0 = arith.constant 0 : i32
    %c0_i32_1 = arith.constant 0 : i32
    %c0_i32_2 = arith.constant 0 : i32
    return %arg0, %c0_i32, %c0_i32_0, %c0_i32_1 : i32, i32, i32, i32
  }
}

module attributes {stable_mosaic.version = 11 : i64} {
  func.func @_lateral_block_kernel(%arg0: i32, %arg1: memref<1x16x16x128xf32, #tpu.memory_space<vmem>>, %arg2: memref<1x8x16x128xf32, #tpu.memory_space<vmem>>, %arg3: memref<128x128xf32, #tpu.memory_space<vmem>>, %arg4: memref<1x128xf32, #tpu.memory_space<vmem>>, %arg5: memref<1152x128xf32, #tpu.memory_space<vmem>>, %arg6: memref<1x128xf32, #tpu.memory_space<vmem>>, %arg7: memref<1x16x16x128xf32, #tpu.memory_space<vmem>>) attributes {dimension_semantics = [#tpu.dimension_semantics<parallel>], iteration_bounds = array<i64: 2>, scalar_prefetch = 0 : i64, scratch_operands = 0 : i64, tpu.core_type = #tpu.core_type<tc>, window_params = [{transform_indices = @transform_0, window_bounds = array<i64: 1, 16, 16, 128>}, {transform_indices = @transform_1, window_bounds = array<i64: 1, 8, 16, 128>}, {pipeline_mode = #tpu.pipeline_mode<synchronous>, transform_indices = @transform_2, window_bounds = array<i64: 128, 128>}, {pipeline_mode = #tpu.pipeline_mode<synchronous>, transform_indices = @transform_3, window_bounds = array<i64: 1, 128>}, {pipeline_mode = #tpu.pipeline_mode<synchronous>, transform_indices = @transform_4, window_bounds = array<i64: 1152, 128>}, {pipeline_mode = #tpu.pipeline_mode<synchronous>, transform_indices = @transform_5, window_bounds = array<i64: 1, 128>}, {transform_indices = @transform_6, window_bounds = array<i64: 1, 16, 16, 128>}]} {
    %c0 = arith.constant 0 : index
    %c0_0 = arith.constant 0 : index
    %c0_1 = arith.constant 0 : index
    %c0_2 = arith.constant 0 : index
    %0 = vector.load %arg1[%c0, %c0_0, %c0_1, %c0_2] : memref<1x16x16x128xf32, #tpu.memory_space<vmem>>, vector<1x16x16x128xf32>
    %1 = vector.shape_cast %0 : vector<1x16x16x128xf32> to vector<16x16x128xf32>
    %2 = vector.shape_cast %1 : vector<16x16x128xf32> to vector<256x128xf32>
    %c0_3 = arith.constant 0 : index
    %c0_4 = arith.constant 0 : index
    %3 = vector.load %arg3[%c0_3, %c0_4] : memref<128x128xf32, #tpu.memory_space<vmem>>, vector<128x128xf32>
    %cst = arith.constant dense<0.000000e+00> : vector<256x128xf32>
    %4 = tpu.matmul %2, %3, %cst {dimension_numbers = #tpu.dot_dimension_numbers<[1], [0], [0], [1], [0, 0, 1, 1], [], []>} : vector<256x128xf32>, vector<128x128xf32>, vector<256x128xf32> -> vector<256x128xf32>
    %c0_5 = arith.constant 0 : index
    %c0_6 = arith.constant 0 : index
    %5 = vector.load %arg4[%c0_5, %c0_6] : memref<1x128xf32, #tpu.memory_space<vmem>>, vector<1x128xf32>
    %6 = vector.broadcast %5 : vector<1x128xf32> to vector<256x128xf32>
    %7 = arith.addf %4, %6 : vector<256x128xf32>
    %c0_7 = arith.constant 0 : index
    %c0_8 = arith.constant 0 : index
    %c0_9 = arith.constant 0 : index
    %c0_10 = arith.constant 0 : index
    %8 = vector.load %arg2[%c0_7, %c0_8, %c0_9, %c0_10] : memref<1x8x16x128xf32, #tpu.memory_space<vmem>>, vector<1x8x16x128xf32>
    %9 = vector.shape_cast %8 : vector<1x8x16x128xf32> to vector<8x16x128xf32>
    %10 = vector.shape_cast %7 : vector<256x128xf32> to vector<8x2x16x128xf32>
    %11 = vector.shape_cast %9 : vector<8x16x128xf32> to vector<8x1x16x128xf32>
    %12 = vector.broadcast %11 : vector<8x1x16x128xf32> to vector<8x2x16x128xf32>
    %13 = arith.addf %10, %12 : vector<8x2x16x128xf32>
    %14 = vector.shape_cast %13 : vector<8x2x16x128xf32> to vector<16x16x128xf32>
    %15 = tpu.iota {dimensions = array<i32: 1>} : vector<1x16x1xi32>
    %c0_i32 = arith.constant 0 : i32
    %16 = vector.broadcast %c0_i32 : i32 to vector<1x16x1xi32>
    %17 = arith.cmpi eq, %15, %16 : vector<1x16x1xi32>
    %c1_i32 = arith.constant 1 : i32
    %18 = tpu.dynamic_rotate %14 by %c1_i32 dim 1 : vector<16x16x128xf32>, i32 -> vector<16x16x128xf32>
    %cst_11 = arith.constant 0.000000e+00 : f32
    %19 = vector.shape_cast %17 : vector<1x16x1xi1> to vector<1x16x1xi1>
    %20 = vector.broadcast %19 : vector<1x16x1xi1> to vector<16x16x128xi1>
    %21 = vector.broadcast %cst_11 : f32 to vector<16x16x128xf32>
    %22 = arith.select %20, %21, %18 : vector<16x16x128xi1>, vector<16x16x128xf32>
    %c15_i32 = arith.constant 15 : i32
    %23 = vector.broadcast %c15_i32 : i32 to vector<1x16x1xi32>
    %24 = arith.cmpi eq, %15, %23 : vector<1x16x1xi32>
    %c15_i32_12 = arith.constant 15 : i32
    %25 = tpu.dynamic_rotate %14 by %c15_i32_12 dim 1 : vector<16x16x128xf32>, i32 -> vector<16x16x128xf32>
    %cst_13 = arith.constant 0.000000e+00 : f32
    %26 = vector.shape_cast %24 : vector<1x16x1xi1> to vector<1x16x1xi1>
    %27 = vector.broadcast %26 : vector<1x16x1xi1> to vector<16x16x128xi1>
    %28 = vector.broadcast %cst_13 : f32 to vector<16x16x128xf32>
    %29 = arith.select %27, %28, %25 : vector<16x16x128xi1>, vector<16x16x128xf32>
    %cst_14 = arith.constant 0.000000e+00 : f32
    %30 = vector.broadcast %cst_14 : f32 to vector<1x16x128xf32>
    %cst_15 = arith.constant 0.000000e+00 : f32
    %31 = vector.broadcast %cst_15 : f32 to vector<256x128xf32>
    %32 = vector.extract_strided_slice %22 {offsets = [0, 0, 0], sizes = [15, 16, 128], strides = [1, 1, 1]} : vector<16x16x128xf32> to vector<15x16x128xf32>
    %33 = tpu.concatenate %30, %32 in 0 : vector<1x16x128xf32>, vector<15x16x128xf32> -> vector<16x16x128xf32>
    %34 = vector.shape_cast %33 : vector<16x16x128xf32> to vector<256x128xf32>
    %c0_16 = arith.constant 0 : index
    %c0_17 = arith.constant 0 : index
    %35 = vector.load %arg5[%c0_16, %c0_17] : memref<1152x128xf32, #tpu.memory_space<vmem>>, vector<128x128xf32>
    %cst_18 = arith.constant dense<0.000000e+00> : vector<256x128xf32>
    %36 = tpu.matmul %34, %35, %cst_18 {dimension_numbers = #tpu.dot_dimension_numbers<[1], [0], [0], [1], [0, 0, 1, 1], [], []>} : vector<256x128xf32>, vector<128x128xf32>, vector<256x128xf32> -> vector<256x128xf32>
    %37 = arith.addf %31, %36 : vector<256x128xf32>
    %38 = vector.extract_strided_slice %14 {offsets = [0, 0, 0], sizes = [15, 16, 128], strides = [1, 1, 1]} : vector<16x16x128xf32> to vector<15x16x128xf32>
    %39 = tpu.concatenate %30, %38 in 0 : vector<1x16x128xf32>, vector<15x16x128xf32> -> vector<16x16x128xf32>
    %40 = vector.shape_cast %39 : vector<16x16x128xf32> to vector<256x128xf32>
    %c128 = arith.constant 128 : index
    %c0_19 = arith.constant 0 : index
    %41 = vector.load %arg5[%c128, %c0_19] : memref<1152x128xf32, #tpu.memory_space<vmem>>, vector<128x128xf32>
    %cst_20 = arith.constant dense<0.000000e+00> : vector<256x128xf32>
    %42 = tpu.matmul %40, %41, %cst_20 {dimension_numbers = #tpu.dot_dimension_numbers<[1], [0], [0], [1], [0, 0, 1, 1], [], []>} : vector<256x128xf32>, vector<128x128xf32>, vector<256x128xf32> -> vector<256x128xf32>
    %43 = arith.addf %37, %42 : vector<256x128xf32>
    %44 = vector.extract_strided_slice %29 {offsets = [0, 0, 0], sizes = [15, 16, 128], strides = [1, 1, 1]} : vector<16x16x128xf32> to vector<15x16x128xf32>
    %45 = tpu.concatenate %30, %44 in 0 : vector<1x16x128xf32>, vector<15x16x128xf32> -> vector<16x16x128xf32>
    %46 = vector.shape_cast %45 : vector<16x16x128xf32> to vector<256x128xf32>
    %c256 = arith.constant 256 : index
    %c0_21 = arith.constant 0 : index
    %47 = vector.load %arg5[%c256, %c0_21] : memref<1152x128xf32, #tpu.memory_space<vmem>>, vector<128x128xf32>
    %cst_22 = arith.constant dense<0.000000e+00> : vector<256x128xf32>
    %48 = tpu.matmul %46, %47, %cst_22 {dimension_numbers = #tpu.dot_dimension_numbers<[1], [0], [0], [1], [0, 0, 1, 1], [], []>} : vector<256x128xf32>, vector<128x128xf32>, vector<256x128xf32> -> vector<256x128xf32>
    %49 = arith.addf %43, %48 : vector<256x128xf32>
    %50 = vector.shape_cast %22 : vector<16x16x128xf32> to vector<256x128xf32>
    %c384 = arith.constant 384 : index
    %c0_23 = arith.constant 0 : index
    %51 = vector.load %arg5[%c384, %c0_23] : memref<1152x128xf32, #tpu.memory_space<vmem>>, vector<128x128xf32>
    %cst_24 = arith.constant dense<0.000000e+00> : vector<256x128xf32>
    %52 = tpu.matmul %50, %51, %cst_24 {dimension_numbers = #tpu.dot_dimension_numbers<[1], [0], [0], [1], [0, 0, 1, 1], [], []>} : vector<256x128xf32>, vector<128x128xf32>, vector<256x128xf32> -> vector<256x128xf32>
    %53 = arith.addf %49, %52 : vector<256x128xf32>
    %54 = vector.shape_cast %14 : vector<16x16x128xf32> to vector<256x128xf32>
    %c512 = arith.constant 512 : index
    %c0_25 = arith.constant 0 : index
    %55 = vector.load %arg5[%c512, %c0_25] : memref<1152x128xf32, #tpu.memory_space<vmem>>, vector<128x128xf32>
    %cst_26 = arith.constant dense<0.000000e+00> : vector<256x128xf32>
    %56 = tpu.matmul %54, %55, %cst_26 {dimension_numbers = #tpu.dot_dimension_numbers<[1], [0], [0], [1], [0, 0, 1, 1], [], []>} : vector<256x128xf32>, vector<128x128xf32>, vector<256x128xf32> -> vector<256x128xf32>
    %57 = arith.addf %53, %56 : vector<256x128xf32>
    %58 = vector.shape_cast %29 : vector<16x16x128xf32> to vector<256x128xf32>
    %c640 = arith.constant 640 : index
    %c0_27 = arith.constant 0 : index
    %59 = vector.load %arg5[%c640, %c0_27] : memref<1152x128xf32, #tpu.memory_space<vmem>>, vector<128x128xf32>
    %cst_28 = arith.constant dense<0.000000e+00> : vector<256x128xf32>
    %60 = tpu.matmul %58, %59, %cst_28 {dimension_numbers = #tpu.dot_dimension_numbers<[1], [0], [0], [1], [0, 0, 1, 1], [], []>} : vector<256x128xf32>, vector<128x128xf32>, vector<256x128xf32> -> vector<256x128xf32>
    %61 = arith.addf %57, %60 : vector<256x128xf32>
    %62 = vector.extract_strided_slice %22 {offsets = [1, 0, 0], sizes = [15, 16, 128], strides = [1, 1, 1]} : vector<16x16x128xf32> to vector<15x16x128xf32>
    %63 = tpu.concatenate %62, %30 in 0 : vector<15x16x128xf32>, vector<1x16x128xf32> -> vector<16x16x128xf32>
    %64 = vector.shape_cast %63 : vector<16x16x128xf32> to vector<256x128xf32>
    %c768 = arith.constant 768 : index
    %c0_29 = arith.constant 0 : index
    %65 = vector.load %arg5[%c768, %c0_29] : memref<1152x128xf32, #tpu.memory_space<vmem>>, vector<128x128xf32>
    %cst_30 = arith.constant dense<0.000000e+00> : vector<256x128xf32>
    %66 = tpu.matmul %64, %65, %cst_30 {dimension_numbers = #tpu.dot_dimension_numbers<[1], [0], [0], [1], [0, 0, 1, 1], [], []>} : vector<256x128xf32>, vector<128x128xf32>, vector<256x128xf32> -> vector<256x128xf32>
    %67 = arith.addf %61, %66 : vector<256x128xf32>
    %68 = vector.extract_strided_slice %14 {offsets = [1, 0, 0], sizes = [15, 16, 128], strides = [1, 1, 1]} : vector<16x16x128xf32> to vector<15x16x128xf32>
    %69 = tpu.concatenate %68, %30 in 0 : vector<15x16x128xf32>, vector<1x16x128xf32> -> vector<16x16x128xf32>
    %70 = vector.shape_cast %69 : vector<16x16x128xf32> to vector<256x128xf32>
    %c896 = arith.constant 896 : index
    %c0_31 = arith.constant 0 : index
    %71 = vector.load %arg5[%c896, %c0_31] : memref<1152x128xf32, #tpu.memory_space<vmem>>, vector<128x128xf32>
    %cst_32 = arith.constant dense<0.000000e+00> : vector<256x128xf32>
    %72 = tpu.matmul %70, %71, %cst_32 {dimension_numbers = #tpu.dot_dimension_numbers<[1], [0], [0], [1], [0, 0, 1, 1], [], []>} : vector<256x128xf32>, vector<128x128xf32>, vector<256x128xf32> -> vector<256x128xf32>
    %73 = arith.addf %67, %72 : vector<256x128xf32>
    %74 = vector.extract_strided_slice %29 {offsets = [1, 0, 0], sizes = [15, 16, 128], strides = [1, 1, 1]} : vector<16x16x128xf32> to vector<15x16x128xf32>
    %75 = tpu.concatenate %74, %30 in 0 : vector<15x16x128xf32>, vector<1x16x128xf32> -> vector<16x16x128xf32>
    %76 = vector.shape_cast %75 : vector<16x16x128xf32> to vector<256x128xf32>
    %c1024 = arith.constant 1024 : index
    %c0_33 = arith.constant 0 : index
    %77 = vector.load %arg5[%c1024, %c0_33] : memref<1152x128xf32, #tpu.memory_space<vmem>>, vector<128x128xf32>
    %cst_34 = arith.constant dense<0.000000e+00> : vector<256x128xf32>
    %78 = tpu.matmul %76, %77, %cst_34 {dimension_numbers = #tpu.dot_dimension_numbers<[1], [0], [0], [1], [0, 0, 1, 1], [], []>} : vector<256x128xf32>, vector<128x128xf32>, vector<256x128xf32> -> vector<256x128xf32>
    %79 = arith.addf %73, %78 : vector<256x128xf32>
    %c0_35 = arith.constant 0 : index
    %c0_36 = arith.constant 0 : index
    %80 = vector.load %arg6[%c0_35, %c0_36] : memref<1x128xf32, #tpu.memory_space<vmem>>, vector<1x128xf32>
    %81 = vector.broadcast %80 : vector<1x128xf32> to vector<256x128xf32>
    %82 = arith.addf %79, %81 : vector<256x128xf32>
    %83 = vector.shape_cast %82 : vector<256x128xf32> to vector<16x16x128xf32>
    %c0_37 = arith.constant 0 : index
    %c0_38 = arith.constant 0 : index
    %c0_39 = arith.constant 0 : index
    %c0_40 = arith.constant 0 : index
    %84 = vector.load %arg7[%c0_37, %c0_38, %c0_39, %c0_40] : memref<1x16x16x128xf32, #tpu.memory_space<vmem>>, vector<1x16x16x128xf32>
    %85 = vector.shape_cast %84 : vector<1x16x16x128xf32> to vector<16x16x128xf32>
    %86 = vector.shape_cast %83 : vector<16x16x128xf32> to vector<1x16x16x128xf32>
    tpu.vector_store %arg7[%c0_37, %c0_38, %c0_39, %c0_40], %86 {strides = array<i32>} : memref<1x16x16x128xf32, #tpu.memory_space<vmem>>, vector<1x16x16x128xf32>,
    return
  }
  func.func @transform_0(%arg0: i32) -> (i32, i32, i32, i32) {
    %c0_i32 = arith.constant 0 : i32
    %c0_i32_0 = arith.constant 0 : i32
    %c0_i32_1 = arith.constant 0 : i32
    %c0_i32_2 = arith.constant 0 : i32
    return %arg0, %c0_i32, %c0_i32_0, %c0_i32_1 : i32, i32, i32, i32
  }
  func.func @transform_1(%arg0: i32) -> (i32, i32, i32, i32) {
    %c0_i32 = arith.constant 0 : i32
    %c0_i32_0 = arith.constant 0 : i32
    %c0_i32_1 = arith.constant 0 : i32
    %c0_i32_2 = arith.constant 0 : i32
    return %arg0, %c0_i32, %c0_i32_0, %c0_i32_1 : i32, i32, i32, i32
  }
  func.func @transform_2(%arg0: i32) -> (i32, i32) {
    %c0_i32 = arith.constant 0 : i32
    %c0_i32_0 = arith.constant 0 : i32
    %c0_i32_1 = arith.constant 0 : i32
    return %c0_i32, %c0_i32_0 : i32, i32
  }
  func.func @transform_3(%arg0: i32) -> (i32, i32) {
    %c0_i32 = arith.constant 0 : i32
    %c0_i32_0 = arith.constant 0 : i32
    %c0_i32_1 = arith.constant 0 : i32
    return %c0_i32, %c0_i32_0 : i32, i32
  }
  func.func @transform_4(%arg0: i32) -> (i32, i32) {
    %c0_i32 = arith.constant 0 : i32
    %c0_i32_0 = arith.constant 0 : i32
    %c0_i32_1 = arith.constant 0 : i32
    return %c0_i32, %c0_i32_0 : i32, i32
  }
  func.func @transform_5(%arg0: i32) -> (i32, i32) {
    %c0_i32 = arith.constant 0 : i32
    %c0_i32_0 = arith.constant 0 : i32
    %c0_i32_1 = arith.constant 0 : i32
    return %c0_i32, %c0_i32_0 : i32, i32
  }
  func.func @transform_6(%arg0: i32) -> (i32, i32, i32, i32) {
    %c0_i32 = arith.constant 0 : i32
    %c0_i32_0 = arith.constant 0 : i32
    %c0_i32_1 = arith.constant 0 : i32
    %c0_i32_2 = arith.constant 0 : i32
    return %arg0, %c0_i32, %c0_i32_0, %c0_i32_1 : i32, i32, i32, i32
  }
}

</mosaic_0001>

<bundles_post_ra>
// kernel: tpu_custom_call.1
= control target key start
LH: loop header
LB: loop body
LE: loop exit
PB: predicated region body
PF: predicated region fallthrough
CT: control target
= control target key end

     0   :  { %s7259_s0 = inlined_call_operand.hbm [shape: f32[2,16,16,128], index: 0, kind: input, shape index: {}]   ;;  %s7260_s1 = inlined_call_operand.hbm [shape: f32[2,8,16,128], index: 1, kind: input, shape index: {}]   ;;  %s7261_s2 = inlined_call_operand.hbm [shape: f32[128,128], index: 2, kind: input, shape index: {}]   ;;  %s7262_s3 = inlined_call_operand.vmem [shape: f32[1,128], index: 3, kind: input, shape index: {}]   ;;  %s7263_s4 = inlined_call_operand.hbm [shape: f32[1152,128], index: 4, kind: input, shape index: {}]   ;;  %s7264_s5 = inlined_call_operand.vmem [shape: f32[1,128], index: 5, kind: input, shape index: {}]   ;;  %s7265_s6 = inlined_call_operand.hbm [shape: f32[2,16,16,128], index: 6, kind: output, shape index: {}]  }
   0x1   :  { %7332 = sst [smem:[#allocation64_spill]] %s7259_s0 }
   0x2   :  { %7333 = sst [smem:[#allocation65_spill]] %s7261_s2 }
   0x3   :  { %7334 = sst [smem:[#allocation66_spill]] %s7263_s4 }
   0x4   :  { %11 = vsyncpa [#allocation3], 0 }
   0x5   :  { %13 = vsyncpa [#allocation3 + $0x1], 0 }
   0x6   :  { %14 = vsyncpa [#allocation6], 0 }
   0x7   :  { %16 = vsyncpa [#allocation6 + $0x1], 0 }
   0x8   :  { %17 = vsyncpa [#allocation9], 0 }
   0x9   :  { %18 = vsyncpa [#allocation4], 0 }
   0xa   :  { %20 = vsyncpa [#allocation4 + $0x1], 0  ;;  %s5856_s21 = smov 0   ;;  %s5858_s22 = smov 0  }
   0xb   :  { %s5860_s23 = smov 0   ;;  %s5862_s24 = smov 0  }
   0xc LB: > { %s5877_s25 = sadd.s32 4294967295, %s5809_s24   ;;  %s3469_s26 = sadd.s32 4294967294, %s5809_s24   ;;  %s5809_s24 = sphi %s5862_s24, %s7460_s24   ;;  %s5805_s23 = sphi %s5860_s23, %s7459_s23   ;;  %s5801_s22 = sphi %s5858_s22, %s7458_s22   ;;  %s5797_s21 = sphi %s5856_s21, %s7457_s21  }
   0xd   : > { %p46_p0 = scmp.ne.s32.totalorder %s5801_s22, %s5797_s21  ;;  %p7266_p1 = scmp.eq.s32.totalorder %s5877_s25, 0 }
   0xe   : > { %p186_p3 = scmp.eq.s32.totalorder %s3469_s26, 1  ;;  %p3470_p5 = scmp.ge.s32.totalorder %s5809_s24, 1 }
   0xf   : > { %p5886_p4 = por %p7266_p1, %p46_p0  ;;  %p193_p7 = scmp.lt.s32.totalorder %s5809_s24, 3 }
  0x10   : > { %p5891_p6 = por %p186_p3, %p46_p0  ;;  %s5811_s30 = smov [#allocation7]  }
  0x11   : > { %s7335_s27 = scalar_select %p5886_p4, 1, 0 }
  0x12   : > { %s7336_s28 = scalar_select %p5891_p6, 1, 0 }
  0x13   : > { %p5896_p8 = pnand %p3470_p5, %p193_p7  ;;  %s205_s7 = sshll.u32 %s5811_s30, 4  ;;  %s5900_s7 = int_to_ptr.vmem [resolvable:$true] %s205_s7 }
  0x14   : > { %s5812_s9 = smov [#allocation8]   ;;  %s7339_s2 = sld [smem:[#allocation65_spill]] }
  0x15   : > { %p5552_p9 = pneg %p5896_p8  ;;  %s221_s10 = sshll.u32 %s5812_s9, 4  ;;  %s5911_s10 = int_to_ptr.vmem [resolvable:$true] %s221_s10 }
  0x17   : > { %p5907_p11 = pnand %p5552_p9, %p7266_p1 }
  0x19   : > { %p5617_p13 = pneg %p5907_p11 }
  0x1a   : > { %s5615_s13 = scalar_lea.hbm %s7339_s2, 2048 }
  0x1b   : > { %p5616_p12 = scmp.ne.s32.totalorder %s7339_s2, %s5615_s13  ;;  %p5622_p5 = scmp.lt.u32.totalorder %s5615_s13, %s7339_s2 }
  0x1d   : > { %p5618_p0 = pnand %p5617_p13, %p5616_p12 }
  0x1f   : > { %p5619_p3 = pneg %p5618_p0 }
  0x21   : > { %p5624_p7 = pnand %p5622_p5, %p5619_p3 }
  0x23   : > { %5627 = shalt.err (!%p5624_p7)
}
  0x24   : > { %s5628_s18 = scalar_lea.vmem %s5900_s7, 2048  ;;  %p5636_p2 = scmp.lt.s32.totalorder %s5900_s7, %s5900_s7 }
  0x25   : > { %p5629_p9 = scmp.ne.s32.totalorder %s5900_s7, %s5628_s18  ;;  %p5637_p12 = scmp.lt.s32.totalorder %s5628_s18, %s5628_s18 }
  0x27   : > { %p5631_p10 = pnand %p5629_p9, %p5617_p13  ;;  %p5638_p0 = por %p5637_p12, %p5636_p2 }
  0x29   : > { %p5632_p1 = pneg %p5631_p10 }
  0x2b   : > { %p5639_p6 = pnand %p5638_p0, %p5632_p1 }
  0x2d   : > { %5642 = shalt.err (!%p5639_p6)
}
  0x2e   : > { %s7267_s19 = smov 128   ;;  %s7269_s20 = smov 8  }
  0x2f   : > { %5555 = dma.hbm_to_vmem [thread:$0]  (!%p5907_p11), %s7339_s2, 2048, %s5900_s7, [#allocation6], %s7267_s19, %s7267_s19, %s7269_s20  }
  0x30   : > { %s7340_s4 = sld [smem:[#allocation66_spill]] }
  0x36   : > { %s5643_s12 = scalar_lea.hbm %s7340_s4, 18432 }
  0x37   : > { %p5644_p1 = scmp.ne.s32.totalorder %s7340_s4, %s5643_s12  ;;  %p5650_p10 = scmp.lt.u32.totalorder %s5643_s12, %s7340_s4 }
  0x39   : > { %p5646_p2 = pnand %p5644_p1, %p5617_p13 }
  0x3b   : > { %p5647_p6 = pneg %p5646_p2 }
  0x3d   : > { %p5652_p3 = pnand %p5650_p10, %p5647_p6 }
  0x3f   : > { %5655 = shalt.err (!%p5652_p3)
}
  0x40   : > { %s5656_s7 = scalar_lea.vmem %s5911_s10, 18432  ;;  %p5664_p12 = scmp.lt.s32.totalorder %s5911_s10, %s5911_s10 }
  0x41   : > { %p5657_p5 = scmp.ne.s32.totalorder %s5911_s10, %s5656_s7  ;;  %p5665_p0 = scmp.lt.s32.totalorder %s5656_s7, %s5656_s7 }
  0x43   : > { %p5659_p7 = pnand %p5657_p5, %p5617_p13  ;;  %p5666_p1 = por %p5665_p0, %p5664_p12 }
  0x45   : > { %p5660_p9 = pneg %p5659_p7 }
  0x47   : > { %p5667_p2 = pnand %p5666_p1, %p5660_p9 }
  0x49   : > { %5670 = shalt.err (!%p5667_p2)
}
  0x4a   : > { %5558 = dma.hbm_to_vmem [thread:$0]  (!%p5907_p11), %s7340_s4, 18432, %s5911_s10, [#allocation9], %s7267_s19, %s7267_s19, %s7269_s20  }
  0x4b   : > { %s5972_s8 = sadd.s32 1, %s5809_s24   ;;  %s33_s26 = sadd.s32 1, %s5805_s23 }
  0x4c   : > { %s30_s30 = ssub.s32 %s5809_s24, %s5972_s8  ;;  %p40_p13 = scmp.ne.s32.totalorder %s5805_s23, %s5801_s22 }
  0x4d   : > { %p31_p6 = scmp.eq.s32.totalorder %s30_s30, 0  ;;  %p41_p10 = scmp.eq.s32.totalorder %s5809_s24, 0 }
  0x4e   : > { %p7341_p3 = scmp.eq.s32.totalorder %s5877_s25, 1  ;;  %p5572_p7 = scmp.lt.s32.totalorder %s5809_s24, 2 }
  0x4f   : > { %s5988_s11 = scalar_select %p31_p6, %s5805_s23, %s33_s26  }
  0x50   : > { %p5982_p5 = por %p7341_p3, %p40_p13  ;;  %p42_p9 = por %p41_p10, %p40_p13 }
  0x51   : > { %7343 = sst [smem:[#allocation16_spill]] %s5988_s11  ;;  %s5991_s12 = sand.u32 1, %s5805_s23  }
  0x52   : > { %s7342_s9 = scalar_select %p5982_p5, 1, 0 }
  0x53   : > { %s3474_s10 = sshll.u32 %s5991_s12, 8  ;;  %s3677_s13 = sshll.u32 %s5809_s24, 12 }
  0x54   : > { %s7344_s0 = sld [smem:[#allocation64_spill]]  ;;  %s242_s7 = scalar_lea.vmem [#allocation2], %s3474_s10 }
  0x55   : > { %s249_s17 = sshll.u32 %s242_s7, 4  ;;  %p6002_p11 = pnand %p5572_p7, %p42_p9  ;;  %s6000_s17 = int_to_ptr.vmem [resolvable:$true] %s249_s17 }
  0x56   : > { %s3477_s30 = sshll.u32 %s5991_s12, 7  ;;  %s239_s19 = scalar_lea.sflag [#allocation3], %s5991_s12 }
  0x57   : > { %p5673_p0 = pneg %p6002_p11 }
  0x5a   : > { %s5998_s16 = scalar_lea.hbm %s7344_s0, %s3677_s13  ;;  %s5676_s15 = scalar_lea.hbm %s7344_s0, 8192 }
  0x5b   : > { %s5671_s14 = scalar_lea.hbm %s5998_s16, 4096  ;;  %p5677_p13 = scmp.lt.u32.totalorder %s5998_s16, %s7344_s0 }
  0x5c   : > { %p5672_p12 = scmp.ne.s32.totalorder %s5998_s16, %s5671_s14  ;;  %p5678_p6 = scmp.lt.u32.totalorder %s5676_s15, %s5671_s14 }
  0x5d   : > { %p5680_p3 = scmp.lt.u32.totalorder %s5671_s14, %s5998_s16 }
  0x5e   : > { %p5674_p1 = pnand %p5673_p0, %p5672_p12  ;;  %p5679_p10 = por %p5678_p6, %p5677_p13 }
  0x60   : > { %p5675_p2 = pneg %p5674_p1  ;;  %p5681_p7 = por %p5680_p3, %p5679_p10 }
  0x62   : > { %p5682_p9 = pnand %p5681_p7, %p5675_p2 }
  0x64   : > { %5685 = shalt.err (!%p5682_p9)
}
  0x65   : > { %s5686_s26 = scalar_lea.vmem %s6000_s17, 4096  ;;  %s5815_s10 = smov [#allocation2]  }
  0x66   : > { %p5687_p12 = scmp.ne.s32.totalorder %s6000_s17, %s5686_s26  ;;  %s5691_s13 = sshll.u32 %s5815_s10, 4  ;;  %s5692_s13 = int_to_ptr.vmem [resolvable:$false] %s5691_s13 }
  0x67   : > { %s5693_s20 = scalar_lea.vmem %s5692_s13, 8192  ;;  %p5694_p4 = scmp.lt.s32.totalorder %s6000_s17, %s5692_s13 }
  0x68   : > { %p5689_p1 = pnand %p5687_p12, %p5673_p0  ;;  %p5695_p13 = scmp.lt.s32.totalorder %s5693_s20, %s5686_s26 }
  0x6a   : > { %p5690_p5 = pneg %p5689_p1  ;;  %p5696_p6 = por %p5695_p13, %p5694_p4 }
  0x6c   : > { %p5697_p10 = pnand %p5696_p6, %p5690_p5 }
  0x6e   : > { %5700 = shalt.err (!%p5697_p10)
}
  0x6f   : > { %s7346_s14 = smov 8   ;;  %s7347_s15 = smov 128  }
  0x70   : > { %5562 = dma.hbm_to_vmem [thread:$0]  (!%p6002_p11), %s5998_s16, 4096, %s6000_s17, %s239_s19, %s7347_s15, %s7347_s15, %s7346_s14  }
  0x71   : > { %s3678_s7 = sshll.u32 %s5809_s24, 11  ;;  %s263_s20 = scalar_lea.vmem [#allocation5], %s3477_s30 }
  0x72   : > { %s6043_s13 = scalar_lea.hbm %s7260_s1, %s3678_s7  ;;  %s270_s0 = sshll.u32 %s263_s20, 4  ;;  %s6047_s0 = int_to_ptr.vmem [resolvable:$true] %s270_s0 }
  0x73   : > { %s7348_s2 = sand.u32 1, %s5809_s24   ;;  %s5701_s11 = scalar_lea.hbm %s6043_s13, 2048 }
  0x74   : > { %s6051_s4 = scalar_lea.sflag [#allocation6], %s7348_s2  ;;  %p5702_p4 = scmp.ne.s32.totalorder %s6043_s13, %s5701_s11 }
  0x75   : > { %s5706_s12 = scalar_lea.hbm %s7260_s1, 4096  ;;  %p5707_p3 = scmp.lt.u32.totalorder %s6043_s13, %s7260_s1 }
  0x76   : > { %p5704_p5 = pnand %p5702_p4, %p5673_p0  ;;  %p5708_p7 = scmp.lt.u32.totalorder %s5706_s12, %s5701_s11 }
  0x77   : > { %p5710_p12 = scmp.lt.u32.totalorder %s5701_s11, %s6043_s13 }
  0x78   : > { %p5705_p2 = pneg %p5704_p5  ;;  %p5709_p9 = por %p5708_p7, %p5707_p3 }
  0x7a   : > { %p5711_p1 = por %p5710_p12, %p5709_p9 }
  0x7c   : > { %p5712_p13 = pnand %p5711_p1, %p5705_p2 }
  0x7e   : > { %5715 = shalt.err (!%p5712_p13)
}
  0x7f   : > { %s5716_s2 = scalar_lea.vmem %s6047_s0, 2048  ;;  %s5816_s30 = smov [#allocation5]  }
  0x80   : > { %p5717_p6 = scmp.ne.s32.totalorder %s6047_s0, %s5716_s2  ;;  %s5721_s10 = sshll.u32 %s5816_s30, 4  ;;  %s5722_s10 = int_to_ptr.vmem [resolvable:$false] %s5721_s10 }
  0x81   : > { %s5723_s26 = scalar_lea.vmem %s5722_s10, 4096  ;;  %p5724_p5 = scmp.lt.s32.totalorder %s6047_s0, %s5722_s10 }
  0x82   : > { %p5719_p10 = pnand %p5717_p6, %p5673_p0  ;;  %p5725_p3 = scmp.lt.s32.totalorder %s5723_s26, %s5716_s2 }
  0x84   : > { %p5720_p4 = pneg %p5719_p10  ;;  %p5726_p7 = por %p5725_p3, %p5724_p5 }
  0x86   : > { %p5727_p9 = pnand %p5726_p7, %p5720_p4 }
  0x88   : > { %5730 = shalt.err (!%p5727_p9)
}
  0x89   : > { %5565 = dma.hbm_to_vmem [thread:$0]  (!%p6002_p11), %s6043_s13, 2048, %s6047_s0, %s6051_s4, %s7347_s15, %s7347_s15, %s7346_s14  }
  0x8a   : > { %282 = sbr.rel (%p5896_p8) target bundleno = 959 (0x3bf), region = 44 }
  0x91   : > { %s6083_s11 = sand.u32 1, %s5801_s22   ;;  %p7349_p0 = scmp.ne.s32.totalorder %s7335_s27, 0 }
  0x92   : > { %s3481_s20 = sshll.u32 %s6083_s11, 8  ;;  %s285_s19 = scalar_lea.sflag [#allocation3], %s6083_s11 }
  0x93   : > { %s6089_s18 = scalar_lea.vmem [#allocation2], %s3481_s20 }
  0x94   : > { %5776 = dma.done.wait (%p7349_p0), %s285_s19, 4096  }
  0x95   : > { %5778 = vsyncadd (%p7349_p0), %s285_s19, 4294963200  ;;  %s293_s0 = sand.u32 1, %s5877_s25   ;;  %s3482_s4 = sshll.u32 %s6083_s11, 7 }
  0x96   : > { %s294_s29 = scalar_lea.sflag [#allocation6], %s293_s0  ;;  %s6097_s14 = scalar_lea.vmem [#allocation5], %s3482_s4 }
  0x97   : > { %5780 = dma.done.wait (%p7349_p0), %s294_s29, 2048  }
  0x98   : > { %5782 = vsyncadd (%p7349_p0), %s294_s29, 4294965248  ;;  %p7350_p8 = scmp.eq.s32.totalorder %s5877_s25, 0 }
  0x9a   : > { %5784 = dma.done.wait (%p7350_p8), [#allocation6], 2048   ;;  %p7351_p11 = pmov %p7350_p8 }
  0x9b   : > { %p7352_p2 = pmov %p7350_p8 }
  0x9c   : > { %5786 = vsyncadd (%p7351_p11), [#allocation6], 4294965248 }
  0x9d   : > { %5788 = dma.done.wait (%p7352_p2), [#allocation9], 18432   ;;  %p7353_p12 = pmov %p7352_p2 }
  0x9e   : > { %v371_v0 = vld [vmem:[#allocation7] sm:$0xff]  ;;  %v372_v1 = vld [vmem:[#allocation7 + $0x8] sm:$0xff]  ;;  %v373_v2 = vld [vmem:[#allocation7 + $0x10] sm:$0xff]  ;;  %s7122_s12 = scalar_lea.vmem [#allocation10], %s3481_s20  ;;  %s3679_s17 = sshll.u32 %s5877_s25, 12 }
  0x9f   : > { %5790 = vsyncadd (%p7353_p12), [#allocation9], 4294948864  ;;  %v4962_v3 = vpack.c.bf16 %v372_v1, %v371_v0  ;;  %v374_v4 = vld [vmem:[#allocation7 + $0x18] sm:$0xff]  ;;  %v375_v6 = vld [vmem:[#allocation7 + $0x20] sm:$0xff]  ;;  %s3354_s7 = sshll.u32 %s7122_s12, 4  ;;  %s7210_s10 = scalar_lea.hbm %s7265_s6, %s3679_s17  ;;  %s7212_s7 = int_to_ptr.vmem [resolvable:$true] %s3354_s7 }
  0xa0   : > { %v4966_v5 = vpack.c.bf16 %v374_v4, %v373_v2  ;;  %v376_v7 = vld [vmem:[#allocation7 + $0x28] sm:$0xff]  ;;  %v339_v9 = vld [vmem:[%s6089_s18] sm:$0xff]  ;;  %v377_v10 = vld [vmem:[#allocation7 + $0x30] sm:$0xff]  ;;  %s3341_s25 = scalar_lea.sflag [#allocation4], %s6083_s11  ;;  %s5731_s26 = scalar_lea.vmem %s7212_s7, 4096 }
  0xa1   : > { %4963 = vmatprep.subr.bf16.mxu0 %v4962_v3  ;;  %v4970_v8 = vpack.c.bf16 %v376_v7, %v375_v6  ;;  %v378_v11 = vld [vmem:[#allocation7 + $0x38] sm:$0xff]  ;;  %4194 = vmatprep.mubr.f32.mxu0 %v339_v9  ;;  %v379_v13 = vld [vmem:[#allocation7 + $0x40] sm:$0xff]  ;;  %v380_v14 = vld [vmem:[#allocation7 + $0x48] sm:$0xff]  ;;  %p5732_p1 = scmp.ne.s32.totalorder %s7212_s7, %s5731_s26  ;;  %p7453_p13 = scmp.ne.s32.totalorder %s7342_s9, 0 }
  0xa2   : > { %4965 = vmatpush3.bf16.msra.mxu0 %v4962_v3  ;;  %v4974_v12 = vpack.c.bf16 %v378_v11, %v377_v10  ;;  %v4978_v15 = vpack.c.bf16 %v380_v14, %v379_v13  ;;  %v381_v16 = vld [vmem:[#allocation7 + $0x50] sm:$0xff]  ;;  %v382_v17 = vld [vmem:[#allocation7 + $0x58] sm:$0xff]  ;;  %v1904_v18 = vld [vmem:[#allocation8 + $0x200] sm:$0xff]  ;;  %s5818_s20 = smov [#allocation10]  }
  0xa3   : > { %4967 = vmatprep.subr.bf16.mxu0 %v4966_v5  ;;  %v4982_v19 = vpack.c.bf16 %v382_v17, %v381_v16  ;;  %v383_v20 = vld [vmem:[#allocation7 + $0x60] sm:$0xff]  ;;  %v1905_v21 = vld [vmem:[#allocation8 + $0x208] sm:$0xff]  ;;  %v1906_v24 = vld [vmem:[#allocation8 + $0x210] sm:$0xff]  ;;  %p5733_p6 = pnand %p5732_p1, %p7453_p13  ;;  %s5735_s19 = sshll.u32 %s5818_s20, 4  ;;  %s5736_s19 = int_to_ptr.vmem [resolvable:$false] %s5735_s19 }
  0xa4   : > { %v384_v22 = vld [vmem:[#allocation7 + $0x68] sm:$0xff]  ;;  %v5122_v23 = vpack.c.bf16 %v1905_v21, %v1904_v18  ;;  %v1907_v25 = vld [vmem:[#allocation8 + $0x218] sm:$0xff]  ;;  %v1908_v27 = vld [vmem:[#allocation8 + $0x220] sm:$0xff]  ;;  %p5738_p4 = scmp.lt.s32.totalorder %s7212_s7, %s5736_s19 }
  0xa5   : > { %v5126_v26 = vpack.c.bf16 %v1907_v25, %v1906_v24  ;;  %v1909_v28 = vld [vmem:[#allocation8 + $0x228] sm:$0xff]  ;;  %v4986_v29 = vpack.c.bf16 %v384_v22, %v383_v20  ;;  %v385_v30 = vld [vmem:[#allocation7 + $0x70] sm:$0xff]  ;;  %v386_v31 = vld [vmem:[#allocation7 + $0x78] sm:$0xff]  ;;  %p5734_p10 = pneg %p5733_p6 }
  0xa6   : > { %4969 = vmatpush3.bf16.msra.mxu0 %v4966_v5  ;;  %5123 = vmatprep.subr.bf16.mxu1 %v5122_v23  ;;  %v5130_v32 = vpack.c.bf16 %v1909_v28, %v1908_v27  ;;  %v1910_v33 = vld [vmem:[#allocation8 + $0x230] sm:$0xff]  ;;  %v1911_v34 = vld [vmem:[#allocation8 + $0x238] sm:$0xff]  ;;  %v4990_v35 = vpack.c.bf16 %v386_v31, %v385_v30  ;;  %v892_v36 = vld [vmem:[#allocation8 + $0x80] sm:$0xff] }
  0xa7   : > { %4971 = vmatprep.subr.bf16.mxu0 %v4970_v8  ;;  %5125 = vmatpush3.bf16.msra.mxu1 %v5122_v23  ;;  %v893_v37 = vld [vmem:[#allocation8 + $0x88] sm:$0xff]  ;;  %v5134_v38 = vpack.c.bf16 %v1911_v34, %v1910_v33  ;;  %v1912_v39 = vld [vmem:[#allocation8 + $0x240] sm:$0xff]  ;;  %v894_v42 = vld [vmem:[#allocation8 + $0x90] sm:$0xff] }
  0xa8   : > { %5127 = vmatprep.subr.bf16.mxu1 %v5126_v26  ;;  %v1913_v40 = vld [vmem:[#allocation8 + $0x248] sm:$0xff]  ;;  %v4994_v41 = vpack.c.bf16 %v893_v37, %v892_v36  ;;  %v895_v43 = vld [vmem:[#allocation8 + $0x98] sm:$0xff]  ;;  %v1914_v45 = vld [vmem:[#allocation8 + $0x250] sm:$0xff] }
  0xa9   : > { %v5138_v44 = vpack.c.bf16 %v1913_v40, %v1912_v39  ;;  %v1915_v46 = vld [vmem:[#allocation8 + $0x258] sm:$0xff]  ;;  %v340_v47 = vld [vmem:[%s6089_s18 + $0x8] sm:$0xff]  ;;  %v341_v48 = vld [vmem:[%s6089_s18 + $0x10] sm:$0xff]  ;;  %v4998_v49 = vpack.c.bf16 %v895_v43, %v894_v42  ;;  %v7273_v40 = vmov 0.0  }
  0xaa   : > { %4973 = vmatpush3.bf16.msra.mxu0 %v4970_v8  ;;  %v896_v50 = vld [vmem:[#allocation8 + $0xa0] sm:$0xff]  ;;  %v897_v51 = vld [vmem:[#allocation8 + $0xa8] sm:$0xff]  ;;  %v5142_v52 = vpack.c.bf16 %v1915_v46, %v1914_v45  ;;  %v342_v55 = vld [vmem:[%s6089_s18 + $0x18] sm:$0xff] }
  0xab   : > { %4975 = vmatprep.subr.bf16.mxu0 %v4974_v12  ;;  %5129 = vmatpush3.bf16.msra.mxu1 %v5126_v26  ;;  %v1916_v53 = vld [vmem:[#allocation8 + $0x260] sm:$0xff]  ;;  %v1917_v54 = vld [vmem:[#allocation8 + $0x268] sm:$0xff]  ;;  %v5002_v57 = vpack.c.bf16 %v897_v51, %v896_v50  ;;  %v898_v58 = vld [vmem:[#allocation8 + $0xb0] sm:$0xff] }
  0xac   : > { %5131 = vmatprep.subr.bf16.mxu1 %v5130_v32  ;;  %v343_v56 = vld [vmem:[%s6089_s18 + $0x20] sm:$0xff]  ;;  %v899_v59 = vld [vmem:[#allocation8 + $0xb8] sm:$0xff]  ;;  %v5146_v60 = vpack.c.bf16 %v1917_v54, %v1916_v53  ;;  %v344_v61 = vld [vmem:[%s6089_s18 + $0x28] sm:$0xff] }
  0xad   : > { %v345_v62 = vld [vmem:[%s6089_s18 + $0x30] sm:$0xff]  ;;  %v5006_v63 = vpack.c.bf16 %v899_v59, %v898_v58  ;;  %v900_v0 = vld [vmem:[#allocation8 + $0xc0] sm:$0xff]  ;;  %v901_v1 = vld [vmem:[#allocation8 + $0xc8] sm:$0xff] }
  0xae   : > { %4977 = vmatpush3.bf16.msra.mxu0 %v4974_v12  ;;  %v346_v2 = vld [vmem:[%s6089_s18 + $0x38] sm:$0xff]  ;;  %v347_v3 = vld [vmem:[%s6089_s18 + $0x40] sm:$0xff]  ;;  %v5010_v4 = vpack.c.bf16 %v901_v1, %v900_v0  ;;  %v902_v5 = vld [vmem:[#allocation8 + $0xd0] sm:$0xff] }
  0xaf   : > { %4979 = vmatprep.subr.bf16.mxu0 %v4978_v15  ;;  %5133 = vmatpush3.bf16.msra.mxu1 %v5130_v32  ;;  %v903_v6 = vld [vmem:[#allocation8 + $0xd8] sm:$0xff]  ;;  %v348_v7 = vld [vmem:[%s6089_s18 + $0x48] sm:$0xff]  ;;  %v349_v8 = vld [vmem:[%s6089_s18 + $0x50] sm:$0xff] }
  0xb0   : > { %5135 = vmatprep.subr.bf16.mxu1 %v5134_v38  ;;  %v5014_v9 = vpack.c.bf16 %v903_v6, %v902_v5  ;;  %v904_v10 = vld [vmem:[#allocation8 + $0xe0] sm:$0xff]  ;;  %v905_v11 = vld [vmem:[#allocation8 + $0xe8] sm:$0xff]  ;;  %v350_v12 = vld [vmem:[%s6089_s18 + $0x58] sm:$0xff] }
  0xb1   : > { %v351_v13 = vld [vmem:[%s6089_s18 + $0x60] sm:$0xff]  ;;  %v5018_v14 = vpack.c.bf16 %v905_v11, %v904_v10  ;;  %v907_v16 = vld [vmem:[#allocation8 + $0xf8] sm:$0xff]  ;;  %v352_v17 = vld [vmem:[%s6089_s18 + $0x68] sm:$0xff] }
  0xb2   : > { %4981 = vmatpush3.bf16.msra.mxu0 %v4978_v15  ;;  %v906_v15 = vld [vmem:[#allocation8 + $0xf0] sm:$0xff]  ;;  %v354_v20 = vld [vmem:[%s6089_s18 + $0x78] sm:$0xff]  ;;  %v355_v21 = vld [vmem:[%s6089_s18 + $0x80] sm:$0xff] }
  0xb3   : > { %4983 = vmatprep.subr.bf16.mxu0 %v4982_v19  ;;  %5137 = vmatpush3.bf16.msra.mxu1 %v5134_v38  ;;  %v353_v18 = vld [vmem:[%s6089_s18 + $0x70] sm:$0xff]  ;;  %v356_v22 = vld [vmem:[%s6089_s18 + $0x88] sm:$0xff]  ;;  %v358_v24 = vld [vmem:[%s6089_s18 + $0x98] sm:$0xff] }
  0xb4   : > { %5139 = vmatprep.subr.bf16.mxu1 %v5138_v44  ;;  %v357_v23 = vld [vmem:[%s6089_s18 + $0x90] sm:$0xff]  ;;  %v359_v25 = vld [vmem:[%s6089_s18 + $0xa0] sm:$0xff]  ;;  %v360_v26 = vld [vmem:[%s6089_s18 + $0xa8] sm:$0xff] }
  0xb5   : > { %v361_v27 = vld [vmem:[%s6089_s18 + $0xb0] sm:$0xff]  ;;  %v362_v28 = vld [vmem:[%s6089_s18 + $0xb8] sm:$0xff]  ;;  %v364_v30 = vld [vmem:[%s6089_s18 + $0xc8] sm:$0xff] }
  0xb6   : > { %4985 = vmatpush3.bf16.msra.mxu0 %v4982_v19  ;;  %v5022_v19 = vpack.c.bf16 %v907_v16, %v906_v15  ;;  %v365_v31 = vld [vmem:[%s6089_s18 + $0xd0] sm:$0xff]  ;;  %v366_v32 = vld [vmem:[%s6089_s18 + $0xd8] sm:$0xff]  ;;  %v367_v33 = vld [vmem:[%s6089_s18 + $0xe0] sm:$0xff] }
  0xb7   : > { %4987 = vmatprep.subr.bf16.mxu0 %v4986_v29  ;;  %5141 = vmatpush3.bf16.msra.mxu1 %v5138_v44  ;;  %v368_v34 = vld [vmem:[%s6089_s18 + $0xe8] sm:$0xff]  ;;  %v370_v36 = vld [vmem:[%s6089_s18 + $0xf8] sm:$0xff]  ;;  %v1918_v37 = vld [vmem:[#allocation8 + $0x270] sm:$0xff] }
  0xb8   : > { %5143 = vmatprep.subr.bf16.mxu1 %v5142_v52  ;;  %v1919_v38 = vld [vmem:[#allocation8 + $0x278] sm:$0xff]  ;;  %v2178_v42 = vld [vmem:[#allocation8 + $0x288] sm:$0xff]  ;;  %v876_v44 = vld [vmem:[#allocation8] sm:$0xff] }
  0xb9   : > { %v5150_v39 = vpack.c.bf16 %v1919_v38, %v1918_v37  ;;  %v877_v45 = vld [vmem:[#allocation8 + $0x8] sm:$0xff]  ;;  %v880_v50 = vld [vmem:[#allocation8 + $0x20] sm:$0xff]  ;;  %v882_v53 = vld [vmem:[#allocation8 + $0x30] sm:$0xff] }
  0xba   : > { %4989 = vmatpush3.bf16.msra.mxu0 %v4986_v29  ;;  %v363_v29 = vld [vmem:[%s6089_s18 + $0xc0] sm:$0xff]  ;;  %v5026_v46 = vpack.c.bf16 %v877_v45, %v876_v44  ;;  %v881_v51 = vld [vmem:[#allocation8 + $0x28] sm:$0xff]  ;;  %v883_v54 = vld [vmem:[#allocation8 + $0x38] sm:$0xff] }
  0xbb   : > { %4991 = vmatprep.subr.bf16.mxu0 %v4990_v35  ;;  %5145 = vmatpush3.bf16.msra.mxu1 %v5142_v52  ;;  %v5034_v52 = vpack.c.bf16 %v881_v51, %v880_v50  ;;  %v886_v59 = vld [vmem:[#allocation8 + $0x50] sm:$0xff]  ;;  %v1359_v5 = vld [vmem:[#allocation8 + $0x108] sm:$0xff] }
  0xbc   : > { %5147 = vmatprep.subr.bf16.mxu1 %v5146_v60  ;;  %v890_v1 = vld [vmem:[#allocation8 + $0x70] sm:$0xff]  ;;  %v620_v10 = vld [vmem:[%s6097_s14 + $0x8] sm:$0xff] }
  0xbd   : > { %v2179_v16 = vld [vmem:[#allocation8 + $0x290] sm:$0xff] }
  0xbe   : > { %4993 = vmatpush3.bf16.msra.mxu0 %v4990_v35  ;;  %v369_v35 = vld [vmem:[%s6089_s18 + $0xf0] sm:$0xff]  ;;  %s5737_s18 = scalar_lea.vmem %s5736_s19, 8192 }
  0xbf   : > { %4995 = vmatprep.subr.bf16.mxu0 %v4994_v41  ;;  %5149 = vmatpush3.bf16.msra.mxu1 %v5146_v60  ;;  %v887_v60 = vld [vmem:[#allocation8 + $0x58] sm:$0xff]  ;;  %v2183_v45 = vld [vmem:[#allocation8 + $0x2b0] sm:$0xff]  ;;  %p5739_p5 = scmp.lt.s32.totalorder %s5737_s18, %s5731_s26 }
  0xc0   : > { %5151 = vmatprep.subr.bf16.mxu1 %v5150_v39 }
  0xc1   : > { %4195 = vmatmul.mubr.f32.vlgmr.msra.gmra.mrb[0].mxu0 %v340_v47  ;;  %v878_v47 = vld [vmem:[#allocation8 + $0x10] sm:$0xff]  ;;  %p5740_p3 = por %p5739_p5, %p5738_p4 }
  0xc2   : > { %4197 = vmatprep.mubr.f32.mxu0 %v341_v48  ;;  %4997 = vmatpush3.bf16.msra.mxu0 %v4994_v41  ;;  %v2177_v41 = vld [vmem:[#allocation8 + $0x280] sm:$0xff]  ;;  %v879_v48 = vld [vmem:[#allocation8 + $0x18] sm:$0xff] }
  0xc3   : > { %4999 = vmatprep.subr.bf16.mxu0 %v4998_v49  ;;  %5153 = vmatpush3.bf16.msra.mxu1 %v5150_v39  ;;  %v6145_v43 = vpack.c.bf16 %v2178_v42, %v2177_v41  ;;  %v621_v39 = vld [vmem:[%s6097_s14 + $0x10] sm:$0xff]  ;;  %p5741_p7 = pnand %p5740_p3, %p5734_p10 }
  0xc5   : > { %4198 = vmatmul.mubr.f32.gmra.mrb[2].mxu0 %v342_v55  ;;  %5155 = vmatprep.subr.bf16.mxu1 %v6145_v43  ;;  %v5038_v55 = vpack.c.bf16 %v883_v54, %v882_v53  ;;  %v2185_v54 = vld [vmem:[#allocation8 + $0x2c0] sm:$0xff] }
  0xc6   : > { %4200 = vmatprep.mubr.f32.mxu0 %v343_v56  ;;  %5001 = vmatpush3.bf16.msra.mxu0 %v4998_v49  ;;  %v5030_v49 = vpack.c.bf16 %v879_v48, %v878_v47  ;;  %v884_v56 = vld [vmem:[#allocation8 + $0x40] sm:$0xff] }
  0xc7   : > { %5003 = vmatprep.subr.bf16.mxu0 %v5002_v57 }
  0xc9   : > { %4201 = vmatmul.mubr.f32.gmra.mrb[4].mxu0 %v344_v61  ;;  %v5046_v61 = vpack.c.bf16 %v887_v60, %v886_v59 }
  0xca   : > { %4203 = vmatprep.mubr.f32.mxu0 %v345_v62  ;;  %5005 = vmatpush3.bf16.msra.mxu0 %v5002_v57  ;;  %v885_v57 = vld [vmem:[#allocation8 + $0x48] sm:$0xff]  ;;  %v888_v62 = vld [vmem:[#allocation8 + $0x60] sm:$0xff] }
  0xcb   : > { %5007 = vmatprep.subr.bf16.mxu0 %v5006_v63  ;;  %v5042_v58 = vpack.c.bf16 %v885_v57, %v884_v56 }
  0xcd   : > { %4204 = vmatmul.mubr.f32.gmra.mrb[6].mxu0 %v346_v2  ;;  %v891_v2 = vld [vmem:[#allocation8 + $0x78] sm:$0xff] }
  0xce   : > { %4206 = vmatprep.mubr.f32.mxu0 %v347_v3  ;;  %5009 = vmatpush3.bf16.msra.mxu0 %v5006_v63  ;;  %v889_v63 = vld [vmem:[#allocation8 + $0x68] sm:$0xff]  ;;  %v5054_v3 = vpack.c.bf16 %v891_v2, %v890_v1  ;;  %v2187_v1 = vld [vmem:[#allocation8 + $0x2d0] sm:$0xff]  ;;  %v2188_v2 = vld [vmem:[#allocation8 + $0x2d8] sm:$0xff] }
  0xcf   : > { %5011 = vmatprep.subr.bf16.mxu0 %v5010_v4  ;;  %v5050_v0 = vpack.c.bf16 %v889_v63, %v888_v62  ;;  %v624_v63 = vld [vmem:[%s6097_s14 + $0x28] sm:$0xff] }
  0xd1   : > { %4207 = vmatmul.mubr.f32.gmra.mrb[8].mxu0 %v348_v7  ;;  %v667_v7 = vlaneseq }
  0xd2   : > { %4209 = vmatprep.mubr.f32.mxu0 %v349_v8  ;;  %5013 = vmatpush3.bf16.msra.mxu0 %v5010_v4  ;;  %v1358_v4 = vld [vmem:[#allocation8 + $0x100] sm:$0xff] }
  0xd3   : > { %5015 = vmatprep.subr.bf16.mxu0 %v5014_v9  ;;  %v6148_v6 = vpack.c.bf16 %v1359_v5, %v1358_v4  ;;  %v6154_v8 = vld [vmem:[%s7262_s3] ss:$0 sm:$0xff]  ;;  %v6157_v11 = vshrl.u32 %v667_v7, 7 }
  0xd5   : > { %4210 = vmatmul.mubr.f32.gmra.mrb[10].mxu0 %v350_v12  ;;  %vm704_vm0 = vcmp.lt.s32.totalorder %v6157_v11, 1  ;;  %vm807_vm1 = vcmp.lt.s32.totalorder %v6157_v11, 7  ;;  %vm3680_vm2 = vcmp.ne.s32.totalorder %v6157_v11, 0 }
  0xd6   : > { %4212 = vmatprep.mubr.f32.mxu0 %v351_v13  ;;  %5017 = vmatpush3.bf16.msra.mxu0 %v5014_v9 }
  0xd7   : > { %5019 = vmatprep.subr.bf16.mxu0 %v5018_v14 }
  0xd9   : > { %4213 = vmatmul.mubr.f32.gmra.mrb[12].mxu0 %v352_v17  ;;  %v2180_v17 = vld [vmem:[#allocation8 + $0x298] sm:$0xff] }
  0xda   : > { %4215 = vmatprep.mubr.f32.mxu0 %v353_v18  ;;  %5021 = vmatpush3.bf16.msra.mxu0 %v5018_v14  ;;  %v619_v14 = vld [vmem:[%s6097_s14] sm:$0xff] }
  0xdb   : > { %5023 = vmatprep.subr.bf16.mxu0 %v5022_v19 }
  0xdd   : > { %4216 = vmatmul.mubr.f32.gmra.mrb[14].mxu0 %v354_v20 }
  0xde   : > { %4218 = vmatprep.mubr.f32.mxu0 %v355_v21  ;;  %5025 = vmatpush3.bf16.msra.mxu0 %v5022_v19 }
  0xdf   : > { %5027 = vmatprep.subr.bf16.mxu0 %v5026_v46 }
  0xe1   : > { %4219 = vmatmul.mubr.f32.gmra.mrb[16].mxu0 %v356_v22 }
  0xe2   : > { %4221 = vmatprep.mubr.f32.mxu0 %v357_v23  ;;  %v5158_v23 = vpack.c.bf16 %v2180_v17, %v2179_v16 }
  0xe5   : > { %4222 = vmatmul.mubr.f32.gmra.mrb[18].mxu0 %v358_v24 }
  0xe6   : > { %4224 = vmatprep.mubr.f32.mxu0 %v359_v25 }
  0xe9   : > { %4225 = vmatmul.mubr.f32.gmra.mrb[20].mxu0 %v360_v26 }
  0xea   : > { %4227 = vmatprep.mubr.f32.mxu0 %v361_v27  ;;  %v2181_v27 = vld [vmem:[#allocation8 + $0x2a0] sm:$0xff] }
  0xed   : > { %4228 = vmatmul.mubr.f32.gmra.mrb[22].mxu0 %v362_v28  ;;  %v2182_v28 = vld [vmem:[#allocation8 + $0x2a8] sm:$0xff] }
  0xee   : > { %4230 = vmatprep.mubr.f32.mxu0 %v363_v29  ;;  %v5162_v41 = vpack.c.bf16 %v2182_v28, %v2181_v27 }
  0xf1   : > { %4231 = vmatmul.mubr.f32.gmra.mrb[24].mxu0 %v364_v30 }
  0xf2   : > { %4233 = vmatprep.mubr.f32.mxu0 %v365_v31 }
  0xf5   : > { %4234 = vmatmul.mubr.f32.gmra.mrb[26].mxu0 %v366_v32 }
  0xf6   : > { %4236 = vmatprep.mubr.f32.mxu0 %v367_v33 }
  0xf9   : > { %4237 = vmatmul.mubr.f32.gmra.mrb[28].mxu0 %v368_v34 }
  0xfa   : > { %4239 = vmatprep.mubr.f32.mxu0 %v369_v35 }
  0xfd   : > { %4240 = vmatmul.mubr.f32.gmra.mrb[30].mxu0 %v370_v36 }
  0xfe   : > { %4274 = vmatprep.mubr.f32.mxu0 %v7273_v40 }
 0x101   : > { %4275 = vmatmul.mubr.f32.vlgmr.msra.gmra.mrb[32].mxu0 %v7273_v40 }
 0x102   : > { %5029 = vmatpush3.bf16.msra.mxu0 %v5026_v46  ;;  %v2184_v46 = vld [vmem:[#allocation8 + $0x2b8] sm:$0xff] }
 0x103   : > { %5031 = vmatprep.subr.bf16.mxu0 %v5030_v49 }
 0x106   : > { %5033 = vmatpush3.bf16.msra.mxu0 %v5030_v49 }
 0x107   : > { %5035 = vmatprep.subr.bf16.mxu0 %v5034_v52 }
 0x10a   : > { %5037 = vmatpush3.bf16.msra.mxu0 %v5034_v52  ;;  %v5166_v52 = vpack.c.bf16 %v2184_v46, %v2183_v45 }
 0x10b   : > { %5039 = vmatprep.subr.bf16.mxu0 %v5038_v55 }
 0x10e   : > { %5041 = vmatpush3.bf16.msra.mxu0 %v5038_v55  ;;  %v2186_v55 = vld [vmem:[#allocation8 + $0x2c8] sm:$0xff] }
 0x10f   : > { %5043 = vmatprep.subr.bf16.mxu0 %v5042_v58  ;;  %v5170_v62 = vpack.c.bf16 %v2186_v55, %v2185_v54 }
 0x112   : > { %5045 = vmatpush3.bf16.msra.mxu0 %v5042_v58 }
 0x113   : > { %5047 = vmatprep.subr.bf16.mxu0 %v5046_v61 }
 0x116   : > { %5049 = vmatpush3.bf16.msra.mxu0 %v5046_v61  ;;  %v623_v61 = vld [vmem:[%s6097_s14 + $0x20] sm:$0xff] }
 0x117   : > { %5051 = vmatprep.subr.bf16.mxu0 %v5050_v0 }
 0x11a   : > { %5053 = vmatpush3.bf16.msra.mxu0 %v5050_v0 }
 0x11b   : > { %5055 = vmatprep.subr.bf16.mxu0 %v5054_v3 }
 0x11e   : > { %5057 = vmatpush3.bf16.msra.mxu0 %v5054_v3 }
 0x11f   : > { %5059 = vmatprep.subr.bf16.mxu0 %v6148_v6 }
 0x194   : > { %v4196_v9 = vpop.f32.mrb[0].mxu0 }
 0x195   : > { %v466_v12 = vadd.f32 %v4196_v9, %v6154_v8  ;;  %v460_v13 = vpop.f32.mrb[1].mxu0 }
 0x196   : > { %v461_v15 = vadd.f32 %v6154_v8, %v460_v13  ;;  %v2189_v13 = vld [vmem:[#allocation8 + $0x2e0] sm:$0xff] }
 0x197   : > { %v636_v18 = vadd.f32 %v620_v10, %v466_v12 }
 0x198   : > { %v635_v19 = vadd.f32 %v619_v14, %v461_v15  ;;  %v4199_v20 = vpop.f32.mrb[2].mxu0 }
 0x199   : > { %v476_v21 = vadd.f32 %v4199_v20, %v6154_v8  ;;  %v470_v22 = vpop.f32.mrb[3].mxu0  ;;  %v688_v24 = vrot.slane %v636_v18, 7  ;;  %v791_v25 = vrot.slane %v636_v18, 1  ;;  %v625_v20 = vld [vmem:[%s6097_s14 + $0x30] sm:$0xff] }
 0x19a   : > { %v471_v26 = vadd.f32 %v6154_v8, %v470_v22  ;;  %4277 = vmatprep.mubr.f32.mxu0 %v635_v19  ;;  %4594 = vmatprep.mubr.f32.mxu1 %v635_v19  ;;  %v672_v29 = vrot.slane %v635_v19, 7  ;;  %v775_v30 = vrot.slane %v635_v19, 1  ;;  %v626_v22 = vld [vmem:[%s6097_s14 + $0x38] sm:$0xff] }
 0x19b   : > { %4278 = vmatmul.mubr.f32.gmra.mrb[34].mxu0 %v636_v18  ;;  %4595 = vmatmul.mubr.f32.vlgmr.msra.gmra.mrb[0].mxu1 %v636_v18  ;;  %v6181_v36 = vadd.f32 %v620_v10, %v476_v21  ;;  %v5174_v10 = vpack.c.bf16 %v2188_v2, %v2187_v1  ;;  %v629_v2 = vld [vmem:[%s6097_s14 + $0x50] sm:$0xff] }
 0x19c   : > { %v6166_v31 = vadd.f32 %v619_v14, %v471_v26  ;;  %5157 = vmatpush3.bf16.msra.mxu1 %v6145_v43  ;;  %v4202_v32 = vpop.f32.mrb[4].mxu0  ;;  %v6171_v33 = vsel %vm704_vm0, %v688_v24, %v672_v29  ;;  %v6175_v34 = vsel %vm807_vm1, %v775_v30, %v791_v25  ;;  %v6179_v35 = vsel %vm704_vm0, %v672_v29, %v688_v24  ;;  %v622_v43 = vld [vmem:[%s6097_s14 + $0x18] sm:$0xff]  ;;  %v2190_v14 = vld [vmem:[#allocation8 + $0x2e8] sm:$0xff]  ;;  %v2191_v24 = vld [vmem:[#allocation8 + $0x2f0] sm:$0xff] }
 0x19d   : > { %7355 = vst [vmem:[#allocation18_spill] sm:$0xff] %v6171_v33  ;;  %7356 = vst [vmem:[#allocation19_spill] sm:$0xff] %v6179_v35  ;;  %v486_v37 = vadd.f32 %v4202_v32, %v6154_v8  ;;  %v480_v38 = vpop.f32.mrb[5].mxu0  ;;  %5159 = vmatprep.subr.bf16.mxu1 %v5158_v23  ;;  %v6187_v42 = vsel %vm807_vm1, %v791_v25, %v775_v30  ;;  %v5178_v21 = vpack.c.bf16 %v2190_v14, %v2189_v13  ;;  %v2192_v25 = vld [vmem:[#allocation8 + $0x2f8] sm:$0xff] }
 0x19e   : > { %7354 = vst [vmem:[#allocation17_spill] sm:$0xff] %v6166_v31  ;;  %7357 = vst [vmem:[#allocation20_spill] sm:$0xff] %v6181_v36  ;;  %v481_v44 = vadd.f32 %v6154_v8, %v480_v38  ;;  %4280 = vmatprep.mubr.f32.mxu0 %v6166_v31  ;;  %4597 = vmatprep.mubr.f32.mxu1 %v6166_v31  ;;  %v5182_v32 = vpack.c.bf16 %v2192_v25, %v2191_v24  ;;  %v2450_v38 = vld [vmem:[#allocation8 + $0x300] sm:$0xff]  ;;  %v632_v24 = vld [vmem:[%s6097_s14 + $0x68] sm:$0xff] }
 0x19f   : > { %4281 = vmatmul.mubr.f32.gmra.mrb[36].mxu0 %v6181_v36  ;;  %4598 = vmatmul.mubr.f32.gmra.mrb[2].mxu1 %v6181_v36  ;;  %v6197_v49 = vadd.f32 %v622_v43, %v486_v37 }
 0x1a0   : > { %v6195_v47 = vadd.f32 %v621_v39, %v481_v44  ;;  %v4205_v48 = vpop.f32.mrb[6].mxu0  ;;  %5161 = vmatpush3.bf16.msra.mxu1 %v5158_v23 }
 0x1a1   : > { %7359 = vst [vmem:[#allocation22_spill] sm:$0xff] %v6197_v49  ;;  %v496_v50 = vadd.f32 %v4205_v48, %v6154_v8  ;;  %v490_v51 = vpop.f32.mrb[7].mxu0  ;;  %5163 = vmatprep.subr.bf16.mxu1 %v5162_v41  ;;  %v627_v48 = vld [vmem:[%s6097_s14 + $0x40] sm:$0xff] }
 0x1a2   : > { %7358 = vst [vmem:[#allocation21_spill] sm:$0xff] %v6195_v47  ;;  %v491_v53 = vadd.f32 %v6154_v8, %v490_v51  ;;  %4283 = vmatprep.mubr.f32.mxu0 %v6195_v47  ;;  %4600 = vmatprep.mubr.f32.mxu1 %v6195_v47  ;;  %v628_v51 = vld [vmem:[%s6097_s14 + $0x48] sm:$0xff] }
 0x1a3   : > { %4284 = vmatmul.mubr.f32.gmra.mrb[38].mxu0 %v6197_v49  ;;  %4601 = vmatmul.mubr.f32.gmra.mrb[4].mxu1 %v6197_v49  ;;  %v6207_v58 = vadd.f32 %v622_v43, %v496_v50 }
 0x1a4   : > { %v6205_v56 = vadd.f32 %v621_v39, %v491_v53  ;;  %v4208_v57 = vpop.f32.mrb[8].mxu0  ;;  %5165 = vmatpush3.bf16.msra.mxu1 %v5162_v41  ;;  %v2451_v39 = vld [vmem:[#allocation8 + $0x308] sm:$0xff] }
 0x1a5   : > { %7361 = vst [vmem:[#allocation24_spill] sm:$0xff] %v6207_v58  ;;  %v506_v59 = vadd.f32 %v4208_v57, %v6154_v8  ;;  %v500_v60 = vpop.f32.mrb[9].mxu0  ;;  %5167 = vmatprep.subr.bf16.mxu1 %v5166_v52  ;;  %v6255_v50 = vpack.c.bf16 %v2451_v39, %v2450_v38 }
 0x1a6   : > { %7360 = vst [vmem:[#allocation23_spill] sm:$0xff] %v6205_v56  ;;  %v501_v0 = vadd.f32 %v6154_v8, %v500_v60  ;;  %4286 = vmatprep.mubr.f32.mxu0 %v6205_v56  ;;  %4603 = vmatprep.mubr.f32.mxu1 %v6205_v56 }
 0x1a7   : > { %4287 = vmatmul.mubr.f32.gmra.mrb[40].mxu0 %v6207_v58  ;;  %4604 = vmatmul.mubr.f32.gmra.mrb[6].mxu1 %v6207_v58  ;;  %v6219_v5 = vadd.f32 %v624_v63, %v506_v59 }
 0x1a8   : > { %v6217_v3 = vadd.f32 %v623_v61, %v501_v0  ;;  %v4211_v4 = vpop.f32.mrb[10].mxu0  ;;  %5169 = vmatpush3.bf16.msra.mxu1 %v5166_v52 }
 0x1a9   : > { %7363 = vst [vmem:[#allocation26_spill] sm:$0xff] %v6219_v5  ;;  %v516_v7 = vadd.f32 %v4211_v4, %v6154_v8  ;;  %v510_v9 = vpop.f32.mrb[11].mxu0  ;;  %5171 = vmatprep.subr.bf16.mxu1 %v5170_v62  ;;  %v630_v4 = vld [vmem:[%s6097_s14 + $0x58] sm:$0xff] }
 0x1aa   : > { %7362 = vst [vmem:[#allocation25_spill] sm:$0xff] %v6217_v3  ;;  %v511_v12 = vadd.f32 %v6154_v8, %v510_v9  ;;  %4289 = vmatprep.mubr.f32.mxu0 %v6217_v3  ;;  %4606 = vmatprep.mubr.f32.mxu1 %v6217_v3 }
 0x1ab   : > { %4290 = vmatmul.mubr.f32.gmra.mrb[42].mxu0 %v6219_v5  ;;  %4607 = vmatmul.mubr.f32.gmra.mrb[8].mxu1 %v6219_v5  ;;  %v6229_v17 = vadd.f32 %v624_v63, %v516_v7 }
 0x1ac   : > { %v6227_v15 = vadd.f32 %v623_v61, %v511_v12  ;;  %v4214_v16 = vpop.f32.mrb[12].mxu0  ;;  %5173 = vmatpush3.bf16.msra.mxu1 %v5170_v62 }
 0x1ad   : > { %7365 = vst [vmem:[#allocation28_spill] sm:$0xff] %v6229_v17  ;;  %v526_v18 = vadd.f32 %v4214_v16, %v6154_v8  ;;  %v520_v19 = vpop.f32.mrb[13].mxu0  ;;  %5175 = vmatprep.subr.bf16.mxu1 %v5174_v10 }
 0x1ae   : > { %7364 = vst [vmem:[#allocation27_spill] sm:$0xff] %v6227_v15  ;;  %v521_v23 = vadd.f32 %v6154_v8, %v520_v19  ;;  %4292 = vmatprep.mubr.f32.mxu0 %v6227_v15  ;;  %4609 = vmatprep.mubr.f32.mxu1 %v6227_v15 }
 0x1af   : > { %4293 = vmatmul.mubr.f32.gmra.mrb[44].mxu0 %v6229_v17  ;;  %4610 = vmatmul.mubr.f32.gmra.mrb[10].mxu1 %v6229_v17  ;;  %v6241_v28 = vadd.f32 %v626_v22, %v526_v18 }
 0x1b0   : > { %v6239_v26 = vadd.f32 %v625_v20, %v521_v23  ;;  %v4217_v27 = vpop.f32.mrb[14].mxu0  ;;  %5177 = vmatpush3.bf16.msra.mxu1 %v5174_v10  ;;  %v631_v23 = vld [vmem:[%s6097_s14 + $0x60] sm:$0xff] }
 0x1b1   : > { %7367 = vst [vmem:[#allocation30_spill] sm:$0xff] %v6241_v28  ;;  %v536_v29 = vadd.f32 %v4217_v27, %v6154_v8  ;;  %v530_v30 = vpop.f32.mrb[15].mxu0  ;;  %5179 = vmatprep.subr.bf16.mxu1 %v5178_v21 }
 0x1b2   : > { %7366 = vst [vmem:[#allocation29_spill] sm:$0xff] %v6239_v26  ;;  %v531_v37 = vadd.f32 %v6154_v8, %v530_v30  ;;  %4295 = vmatprep.mubr.f32.mxu0 %v6239_v26  ;;  %4612 = vmatprep.mubr.f32.mxu1 %v6239_v26 }
 0x1b3   : > { %4296 = vmatmul.mubr.f32.gmra.mrb[46].mxu0 %v6241_v28  ;;  %4613 = vmatmul.mubr.f32.gmra.mrb[12].mxu1 %v6241_v28  ;;  %v6251_v44 = vadd.f32 %v626_v22, %v536_v29 }
 0x1b4   : > { %v6249_v41 = vadd.f32 %v625_v20, %v531_v37  ;;  %v4220_v43 = vpop.f32.mrb[16].mxu0  ;;  %5181 = vmatpush3.bf16.msra.mxu1 %v5178_v21 }
 0x1b5   : > { %7369 = vst [vmem:[#allocation32_spill] sm:$0xff] %v6251_v44  ;;  %v546_v45 = vadd.f32 %v4220_v43, %v6154_v8  ;;  %v540_v46 = vpop.f32.mrb[17].mxu0  ;;  %5183 = vmatprep.subr.bf16.mxu1 %v5182_v32 }
 0x1b6   : > { %7368 = vst [vmem:[#allocation31_spill] sm:$0xff] %v6249_v41  ;;  %v541_v52 = vadd.f32 %v6154_v8, %v540_v46  ;;  %4298 = vmatprep.mubr.f32.mxu0 %v6249_v41  ;;  %4615 = vmatprep.mubr.f32.mxu1 %v6249_v41 }
 0x1b7   : > { %4299 = vmatmul.mubr.f32.gmra.mrb[48].mxu0 %v6251_v44  ;;  %4616 = vmatmul.mubr.f32.gmra.mrb[14].mxu1 %v6251_v44  ;;  %v6265_v55 = vadd.f32 %v628_v51, %v546_v45 }
 0x1b8   : > { %v6263_v53 = vadd.f32 %v627_v48, %v541_v52  ;;  %v4223_v54 = vpop.f32.mrb[18].mxu0  ;;  %5185 = vmatpush3.bf16.msra.mxu1 %v5182_v32  ;;  %v634_v52 = vld [vmem:[%s6097_s14 + $0x78] sm:$0xff] }
 0x1b9   : > { %7371 = vst [vmem:[#allocation34_spill] sm:$0xff] %v6265_v55  ;;  %v556_v57 = vadd.f32 %v4223_v54, %v6154_v8  ;;  %v550_v59 = vpop.f32.mrb[19].mxu0  ;;  %5187 = vmatprep.subr.bf16.mxu1 %v6255_v50 }
 0x1ba   : > { %7370 = vst [vmem:[#allocation33_spill] sm:$0xff] %v6263_v53  ;;  %v551_v60 = vadd.f32 %v6154_v8, %v550_v59  ;;  %4301 = vmatprep.mubr.f32.mxu0 %v6263_v53  ;;  %4618 = vmatprep.mubr.f32.mxu1 %v6263_v53 }
 0x1bb   : > { %4302 = vmatmul.mubr.f32.gmra.mrb[50].mxu0 %v6265_v55  ;;  %4619 = vmatmul.mubr.f32.gmra.mrb[16].mxu1 %v6265_v55  ;;  %v6276_v63 = vadd.f32 %v628_v51, %v556_v57  ;;  %v633_v51 = vld [vmem:[%s6097_s14 + $0x70] sm:$0xff] }
 0x1bc   : > { %v6274_v61 = vadd.f32 %v627_v48, %v551_v60  ;;  %v4226_v62 = vpop.f32.mrb[20].mxu0 }
 0x1bd   : > { %7373 = vst [vmem:[#allocation36_spill] sm:$0xff] %v6276_v63  ;;  %v566_v0 = vadd.f32 %v4226_v62, %v6154_v8  ;;  %v560_v1 = vpop.f32.mrb[21].mxu0 }
 0x1be   : > { %7372 = vst [vmem:[#allocation35_spill] sm:$0xff] %v6274_v61  ;;  %v561_v7 = vadd.f32 %v6154_v8, %v560_v1  ;;  %4304 = vmatprep.mubr.f32.mxu0 %v6274_v61  ;;  %4621 = vmatprep.mubr.f32.mxu1 %v6274_v61 }
 0x1bf   : > { %4305 = vmatmul.mubr.f32.gmra.mrb[52].mxu0 %v6276_v63  ;;  %4622 = vmatmul.mubr.f32.gmra.mrb[18].mxu1 %v6276_v63  ;;  %v6288_v12 = vadd.f32 %v630_v4, %v566_v0 }
 0x1c0   : > { %v6286_v9 = vadd.f32 %v629_v2, %v561_v7  ;;  %v4229_v10 = vpop.f32.mrb[22].mxu0 }
 0x1c1   : > { %7375 = vst [vmem:[#allocation38_spill] sm:$0xff] %v6288_v12  ;;  %v576_v13 = vadd.f32 %v4229_v10, %v6154_v8  ;;  %v570_v14 = vpop.f32.mrb[23].mxu0  ;;  %v6344_v10 = vadd.s32 8, %v6157_v11 }
 0x1c2   : > { %7374 = vst [vmem:[#allocation37_spill] sm:$0xff] %v6286_v9  ;;  %v571_v16 = vadd.f32 %v6154_v8, %v570_v14  ;;  %4307 = vmatprep.mubr.f32.mxu0 %v6286_v9  ;;  %4624 = vmatprep.mubr.f32.mxu1 %v6286_v9  ;;  %v689_v14 = vrot.slane %v6181_v36, 7 }
 0x1c3   : > { %4308 = vmatmul.mubr.f32.gmra.mrb[54].mxu0 %v6288_v12  ;;  %4625 = vmatmul.mubr.f32.gmra.mrb[20].mxu1 %v6288_v12  ;;  %v6298_v20 = vadd.f32 %v630_v4, %v576_v13  ;;  %v1361_v4 = vld [vmem:[#allocation8 + $0x118] sm:$0xff]  ;;  %vm3681_vm3 = vcmp.ne.s32.totalorder %v6344_v10, 15 }
 0x1c4   : > { %v6296_v18 = vadd.f32 %v629_v2, %v571_v16  ;;  %v4232_v19 = vpop.f32.mrb[24].mxu0  ;;  %v1360_v2 = vld [vmem:[#allocation8 + $0x110] sm:$0xff] }
 0x1c5   : > { %7377 = vst [vmem:[#allocation40_spill] sm:$0xff] %v6298_v20  ;;  %v586_v21 = vadd.f32 %v4232_v19, %v6154_v8  ;;  %v580_v22 = vpop.f32.mrb[25].mxu0  ;;  %v2452_v16 = vld [vmem:[#allocation8 + $0x310] sm:$0xff]  ;;  %v2453_v19 = vld [vmem:[#allocation8 + $0x318] sm:$0xff] }
 0x1c6   : > { %7376 = vst [vmem:[#allocation39_spill] sm:$0xff] %v6296_v18  ;;  %v581_v25 = vadd.f32 %v6154_v8, %v580_v22  ;;  %4310 = vmatprep.mubr.f32.mxu0 %v6296_v18  ;;  %4627 = vmatprep.mubr.f32.mxu1 %v6296_v18  ;;  %v776_v22 = vrot.slane %v6166_v31, 1 }
 0x1c7   : > { %4311 = vmatmul.mubr.f32.gmra.mrb[56].mxu0 %v6298_v20  ;;  %4628 = vmatmul.mubr.f32.gmra.mrb[22].mxu1 %v6298_v20  ;;  %v6310_v30 = vadd.f32 %v632_v24, %v586_v21  ;;  %v5062_v21 = vpack.c.bf16 %v1361_v4, %v1360_v2  ;;  %v691_v2 = vrot.slane %v6207_v58, 7  ;;  %v778_v4 = vrot.slane %v6205_v56, 1 }
 0x1c8   : > { %v6308_v27 = vadd.f32 %v631_v23, %v581_v25  ;;  %v4235_v29 = vpop.f32.mrb[26].mxu0  ;;  %v2454_v25 = vld [vmem:[#allocation8 + $0x320] sm:$0xff] }
 0x1c9   : > { %7379 = vst [vmem:[#allocation42_spill] sm:$0xff] %v6310_v30  ;;  %v596_v32 = vadd.f32 %v4235_v29, %v6154_v8  ;;  %v590_v37 = vpop.f32.mrb[27].mxu0  ;;  %v2455_v29 = vld [vmem:[#allocation8 + $0x328] sm:$0xff] }
 0x1ca   : > { %7378 = vst [vmem:[#allocation41_spill] sm:$0xff] %v6308_v27  ;;  %v591_v38 = vadd.f32 %v6154_v8, %v590_v37  ;;  %4313 = vmatprep.mubr.f32.mxu0 %v6308_v27  ;;  %4630 = vmatprep.mubr.f32.mxu1 %v6308_v27  ;;  %v1362_v37 = vld [vmem:[#allocation8 + $0x120] sm:$0xff] }
 0x1cb   : > { %4314 = vmatmul.mubr.f32.gmra.mrb[58].mxu0 %v6310_v30  ;;  %4631 = vmatmul.mubr.f32.gmra.mrb[24].mxu1 %v6310_v30  ;;  %v6320_v45 = vadd.f32 %v632_v24, %v596_v32  ;;  %v5190_v24 = vpack.c.bf16 %v2453_v19, %v2452_v16  ;;  %v794_v16 = vrot.slane %v6207_v58, 1  ;;  %v1364_v19 = vld [vmem:[#allocation8 + $0x130] sm:$0xff] }
 0x1cc   : > { %v6318_v39 = vadd.f32 %v631_v23, %v591_v38  ;;  %v4238_v43 = vpop.f32.mrb[28].mxu0  ;;  %v792_v23 = vrot.slane %v6181_v36, 1  ;;  %v1363_v38 = vld [vmem:[#allocation8 + $0x128] sm:$0xff] }
 0x1cd   : > { %7381 = vst [vmem:[#allocation44_spill] sm:$0xff] %v6320_v45  ;;  %v606_v46 = vadd.f32 %v4238_v43, %v6154_v8  ;;  %v600_v48 = vpop.f32.mrb[29].mxu0  ;;  %v674_v43 = vrot.slane %v6195_v47, 7  ;;  %v6425_v58 = vsel %vm807_vm1, %v778_v4, %v794_v16 }
 0x1ce   : > { %7380 = vst [vmem:[#allocation43_spill] sm:$0xff] %v6318_v39  ;;  %v601_v54 = vadd.f32 %v6154_v8, %v600_v48  ;;  %4316 = vmatprep.mubr.f32.mxu0 %v6318_v39  ;;  %4633 = vmatprep.mubr.f32.mxu1 %v6318_v39  ;;  %v777_v48 = vrot.slane %v6195_v47, 1  ;;  %v780_v47 = vrot.slane %v6227_v15, 1 }
 0x1cf   : > { %4317 = vmatmul.mubr.f32.gmra.mrb[60].mxu0 %v6320_v45  ;;  %4634 = vmatmul.mubr.f32.gmra.mrb[26].mxu1 %v6320_v45  ;;  %v6332_v60 = vadd.f32 %v634_v52, %v606_v46  ;;  %v690_v46 = vrot.slane %v6197_v49, 7 }
 0x1d0   : > { %v6330_v57 = vadd.f32 %v633_v51, %v601_v54  ;;  %v4241_v59 = vpop.f32.mrb[30].mxu0 }
 0x1d1   : > { %7383 = vst [vmem:[#allocation46_spill] sm:$0xff] %v6332_v60  ;;  %v616_v62 = vadd.f32 %v4241_v59, %v6154_v8  ;;  %v610_v0 = vpop.f32.mrb[31].mxu0  ;;  %v6389_v59 = vsel %vm807_vm1, %v792_v23, %v776_v22 }
 0x1d2   : > { %7382 = vst [vmem:[#allocation45_spill] sm:$0xff] %v6330_v57  ;;  %v611_v1 = vadd.f32 %v6154_v8, %v610_v0  ;;  %4319 = vmatprep.mubr.f32.mxu0 %v6330_v57  ;;  %4636 = vmatprep.mubr.f32.mxu1 %v6330_v57  ;;  %v673_v8 = vrot.slane %v6166_v31, 7  ;;  %v5066_v0 = vpack.c.bf16 %v1363_v38, %v1362_v37  ;;  %v679_v31 = vrot.slane %v6249_v41, 7 }
 0x1d3   : > { %4320 = vmatmul.mubr.f32.gmra.mrb[62].mxu0 %v6332_v60  ;;  %4637 = vmatmul.mubr.f32.gmra.mrb[28].mxu1 %v6332_v60  ;;  %v6346_v13 = vadd.f32 %v634_v52, %v616_v62  ;;  %v5194_v52 = vpack.c.bf16 %v2455_v29, %v2454_v25  ;;  %v2457_v62 = vld [vmem:[#allocation8 + $0x338] sm:$0xff]  ;;  %v2458_v25 = vld [vmem:[#allocation8 + $0x340] sm:$0xff]  ;;  %v2459_v29 = vld [vmem:[#allocation8 + $0x348] sm:$0xff] }
 0x1d4   : > { %v6340_v7 = vadd.f32 %v633_v51, %v611_v1  ;;  %4354 = vmatprep.mubr.f32.mxu0 %v7273_v40  ;;  %v6364_v32 = vsel %vm704_vm0, %v689_v14, %v673_v8  ;;  %v6380_v51 = vsel %vm807_vm1, %v776_v22, %v792_v23  ;;  %v6385_v54 = vsel %vm704_vm0, %v673_v8, %v689_v14  ;;  %v1365_v8 = vld [vmem:[#allocation8 + $0x138] sm:$0xff] }
 0x1d5   : > { %v675_v1 = vrot.slane %v6205_v56, 7  ;;  %v6401_v14 = vsel %vm704_vm0, %v690_v46, %v674_v43  ;;  %v5070_v37 = vpack.c.bf16 %v1365_v8, %v1364_v19  ;;  %v6445_v19 = vsel %vm807_vm1, %v794_v16, %v778_v4  ;;  %v2460_v8 = vld [vmem:[#allocation8 + $0x350] sm:$0xff] }
 0x1d6   : > { %4639 = vmatprep.mubr.f32.mxu1 %v6340_v7  ;;  %v677_v56 = vrot.slane %v6227_v15, 7 }
 0x1d7   : > { %4355 = vmatmul.mubr.f32.vlgmr.msra.gmra.mrb[32].mxu0 %v7273_v40  ;;  %4640 = vmatmul.mubr.f32.gmra.mrb[30].mxu1 %v6346_v13  ;;  %v6421_v40 = vsel %vm704_vm0, %v691_v2, %v675_v1 }
 0x1d8   : > { %4357 = vmatprep.mubr.msk.f32.mxu0 %vm3680_vm2, %v6171_v33  ;;  %4674 = vmatprep.mubr.f32.mxu1 %v6175_v34  ;;  %v782_v33 = vrot.slane %v6249_v41, 1 }
 0x1d9   : > { %5061 = vmatpush3.bf16.msra.mxu0 %v6148_v6  ;;  %v793_v6 = vrot.slane %v6197_v49, 1  ;;  %v693_v49 = vrot.slane %v6229_v17, 7 }
 0x1da   : > { %5063 = vmatprep.subr.bf16.mxu0 %v5062_v21 }
 0x1db   : > { %4358 = vmatmul.mubr.f32.gmra.mrb[34].mxu0 %v6179_v35  ;;  %4675 = vmatmul.mubr.msk.f32.vlgmr.msra.gmra.mrb[0].mxu1 %vm3681_vm3, %v6187_v42  ;;  %v6405_v22 = vsel %vm807_vm1, %v777_v48, %v793_v6  ;;  %v6417_v38 = vsel %vm807_vm1, %v793_v6, %v777_v48  ;;  %v692_v48 = vrot.slane %v6219_v5, 7  ;;  %v779_v6 = vrot.slane %v6217_v3, 1 }
 0x1dc   : > { %5189 = vmatpush3.bf16.msra.mxu1 %v6255_v50  ;;  %4360 = vmatprep.mubr.msk.f32.mxu0 %vm3680_vm2, %v6364_v32  ;;  %v2456_v50 = vld [vmem:[#allocation8 + $0x330] sm:$0xff]  ;;  %v6477_v15 = vsel %vm704_vm0, %v693_v49, %v677_v56  ;;  %v695_v35 = vrot.slane %v6251_v44, 7 }
 0x1dd   : > { %4677 = vmatprep.mubr.f32.mxu1 %v6380_v51  ;;  %5191 = vmatprep.subr.bf16.mxu1 %v5190_v24  ;;  %v5198_v23 = vpack.c.bf16 %v2457_v62, %v2456_v50  ;;  %v795_v50 = vrot.slane %v6219_v5, 1  ;;  %v5202_v62 = vpack.c.bf16 %v2459_v29, %v2458_v25  ;;  %v796_v25 = vrot.slane %v6229_v17, 1 }
 0x1de   : > { %5065 = vmatpush3.bf16.msra.mxu0 %v5062_v21  ;;  %v6413_v21 = vsel %vm704_vm0, %v674_v43, %v690_v46  ;;  %v1367_v43 = vld [vmem:[#allocation8 + $0x148] sm:$0xff]  ;;  %v676_v46 = vrot.slane %v6217_v3, 7  ;;  %v2461_v3 = vld [vmem:[#allocation8 + $0x358] sm:$0xff]  ;;  %v6533_v41 = vsel %vm704_vm0, %v695_v35, %v679_v31 }
 0x1df   : > { %4361 = vmatmul.mubr.f32.gmra.mrb[36].mxu0 %v6385_v54  ;;  %4678 = vmatmul.mubr.msk.f32.gmra.mrb[2].mxu1 %vm3681_vm3, %v6389_v59  ;;  %v6461_v4 = vsel %vm807_vm1, %v779_v6, %v795_v50  ;;  %v5206_v29 = vpack.c.bf16 %v2461_v3, %v2460_v8  ;;  %v6473_v17 = vsel %vm807_vm1, %v795_v50, %v779_v6  ;;  %v1371_v3 = vld [vmem:[#allocation8 + $0x168] sm:$0xff]  ;;  %v781_v6 = vrot.slane %v6239_v26, 1 }
 0x1e0   : > { %4363 = vmatprep.mubr.msk.f32.mxu0 %vm3680_vm2, %v6401_v14  ;;  %4680 = vmatprep.mubr.f32.mxu1 %v6405_v22  ;;  %v6469_v16 = vsel %vm704_vm0, %v676_v46, %v692_v48  ;;  %v6481_v36 = vsel %vm807_vm1, %v780_v47, %v796_v25  ;;  %v797_v50 = vrot.slane %v6241_v28, 1  ;;  %v6497_v8 = vsel %vm704_vm0, %v677_v56, %v693_v49  ;;  %v1372_v49 = vld [vmem:[#allocation8 + $0x170] sm:$0xff]  ;;  %v1373_v56 = vld [vmem:[#allocation8 + $0x178] sm:$0xff] }
 0x1e1   : > { %5193 = vmatpush3.bf16.msra.mxu1 %v5190_v24  ;;  %5067 = vmatprep.subr.bf16.mxu0 %v5066_v0  ;;  %v1366_v24 = vld [vmem:[#allocation8 + $0x140] sm:$0xff]  ;;  %7384 = vst [vmem:[#allocation47_spill] sm:$0xff] %v6481_v36 }
 0x1e2   : > { %5195 = vmatprep.subr.bf16.mxu1 %v5194_v52  ;;  %5069 = vmatpush3.bf16.msra.mxu0 %v5066_v0  ;;  %v6441_v0 = vsel %vm704_vm0, %v675_v1, %v691_v2  ;;  %v5074_v5 = vpack.c.bf16 %v1367_v43, %v1366_v24  ;;  %v1368_v1 = vld [vmem:[#allocation8 + $0x150] sm:$0xff]  ;;  %v1369_v2 = vld [vmem:[#allocation8 + $0x158] sm:$0xff]  ;;  %v2463_v24 = vld [vmem:[#allocation8 + $0x368] sm:$0xff] }
 0x1e3   : > { %4364 = vmatmul.mubr.f32.gmra.mrb[38].mxu0 %v6413_v21  ;;  %4681 = vmatmul.mubr.msk.f32.gmra.mrb[4].mxu1 %vm3681_vm3, %v6417_v38  ;;  %v5078_v43 = vpack.c.bf16 %v1369_v2, %v1368_v1  ;;  %v6501_v1 = vsel %vm807_vm1, %v796_v25, %v780_v47 }
 0x1e4   : > { %4366 = vmatprep.mubr.msk.f32.mxu0 %vm3680_vm2, %v6421_v40  ;;  %4683 = vmatprep.mubr.f32.mxu1 %v6425_v58 }
 0x1e5   : > { %5197 = vmatpush3.bf16.msra.mxu1 %v5194_v52  ;;  %5071 = vmatprep.subr.bf16.mxu0 %v5070_v37  ;;  %v6457_v52 = vsel %vm704_vm0, %v692_v48, %v676_v46  ;;  %v678_v46 = vrot.slane %v6239_v26, 7  ;;  %v694_v48 = vrot.slane %v6241_v28, 7  ;;  %v2464_v26 = vld [vmem:[#allocation8 + $0x370] sm:$0xff]  ;;  %v2465_v28 = vld [vmem:[#allocation8 + $0x378] sm:$0xff] }
 0x1e6   : > { %5199 = vmatprep.subr.bf16.mxu1 %v5198_v23  ;;  %5073 = vmatpush3.bf16.msra.mxu0 %v5070_v37  ;;  %v2462_v37 = vld [vmem:[#allocation8 + $0x360] sm:$0xff] }
 0x1e7   : > { %4367 = vmatmul.mubr.f32.gmra.mrb[40].mxu0 %v6441_v0  ;;  %4684 = vmatmul.mubr.msk.f32.gmra.mrb[6].mxu1 %vm3681_vm3, %v6445_v19  ;;  %v6513_v47 = vsel %vm704_vm0, %v694_v48, %v678_v46  ;;  %v6525_v25 = vsel %vm704_vm0, %v678_v46, %v694_v48  ;;  %v1632_v46 = vld [vmem:[#allocation8 + $0x188] sm:$0xff]  ;;  %v783_v48 = vrot.slane %v6263_v53, 1 }
 0x1e8   : > { %4369 = vmatprep.mubr.msk.f32.mxu0 %vm3680_vm2, %v6457_v52  ;;  %4686 = vmatprep.mubr.f32.mxu1 %v6461_v4  ;;  %v7442_v11 = vld [vmem:[#allocation47_spill] sm:$0xff] }
 0x1e9   : > { %5201 = vmatpush3.bf16.msra.mxu1 %v5198_v23  ;;  %5075 = vmatprep.subr.bf16.mxu0 %v5074_v5  ;;  %v1370_v23 = vld [vmem:[#allocation8 + $0x160] sm:$0xff] }
 0x1ea   : > { %5203 = vmatprep.subr.bf16.mxu1 %v5202_v62  ;;  %5077 = vmatpush3.bf16.msra.mxu0 %v5074_v5  ;;  %v5210_v5 = vpack.c.bf16 %v2463_v24, %v2462_v37  ;;  %v5082_v2 = vpack.c.bf16 %v1371_v3, %v1370_v23  ;;  %v798_v37 = vrot.slane %v6251_v44, 1  ;;  %v5214_v24 = vpack.c.bf16 %v2465_v28, %v2464_v26  ;;  %v2723_v23 = vld [vmem:[#allocation8 + $0x380] sm:$0xff]  ;;  %v2724_v3 = vld [vmem:[#allocation8 + $0x388] sm:$0xff] }
 0x1eb   : > { %4370 = vmatmul.mubr.f32.gmra.mrb[42].mxu0 %v6469_v16  ;;  %4687 = vmatmul.mubr.msk.f32.gmra.mrb[8].mxu1 %vm3681_vm3, %v6473_v17  ;;  %v6529_v44 = vsel %vm807_vm1, %v797_v50, %v781_v6  ;;  %v680_v26 = vrot.slane %v6263_v53, 7  ;;  %v696_v28 = vrot.slane %v6265_v55, 7  ;;  %v697_v53 = vrot.slane %v6276_v63, 7 }
 0x1ec   : > { %4372 = vmatprep.mubr.msk.f32.mxu0 %vm3680_vm2, %v6477_v15  ;;  %4689 = vmatprep.mubr.f32.mxu1 %v6481_v36 }
 0x1ed   : > { %5205 = vmatpush3.bf16.msra.mxu1 %v5202_v62  ;;  %5079 = vmatprep.subr.bf16.mxu0 %v5078_v43  ;;  %v6517_v62 = vsel %vm807_vm1, %v781_v6, %v797_v50  ;;  %v799_v6 = vrot.slane %v6265_v55, 1  ;;  %v6551_v50 = vpack.c.bf16 %v2724_v3, %v2723_v23  ;;  %v681_v55 = vrot.slane %v6274_v61, 7 }
 0x1ee   : > { %5207 = vmatprep.subr.bf16.mxu1 %v5206_v29  ;;  %5081 = vmatpush3.bf16.msra.mxu0 %v5078_v43  ;;  %7385 = vst [vmem:[#allocation48_spill] sm:$0xff] %v6517_v62  ;;  %v5086_v43 = vpack.c.bf16 %v1373_v56, %v1372_v49  ;;  %v6559_v49 = vsel %vm807_vm1, %v798_v37, %v782_v33  ;;  %v800_v23 = vrot.slane %v6276_v63, 1  ;;  %v698_v3 = vrot.slane %v6288_v12, 7 }
 0x1ef   : > { %4373 = vmatmul.mubr.f32.gmra.mrb[44].mxu0 %v6497_v8  ;;  %4690 = vmatmul.mubr.msk.f32.gmra.mrb[10].mxu1 %vm3681_vm3, %v6501_v1 }
 0x1f0   : > { %4375 = vmatprep.mubr.msk.f32.mxu0 %vm3680_vm2, %v6513_v47  ;;  %4692 = vmatprep.mubr.f32.mxu1 %v6517_v62  ;;  %v6537_v62 = vsel %vm807_vm1, %v782_v33, %v798_v37  ;;  %v6577_v33 = vsel %vm807_vm1, %v783_v48, %v799_v6  ;;  %v6594_v37 = vsel %vm704_vm0, %v697_v53, %v681_v55 }
 0x1f1   : > { %5209 = vmatpush3.bf16.msra.mxu1 %v5206_v29  ;;  %5083 = vmatprep.subr.bf16.mxu0 %v5082_v2  ;;  %7386 = vst [vmem:[#allocation49_spill] sm:$0xff] %v6537_v62  ;;  %v1631_v29 = vld [vmem:[#allocation8 + $0x180] sm:$0xff] }
 0x1f2   : > { %5211 = vmatprep.subr.bf16.mxu1 %v5210_v5  ;;  %5085 = vmatpush3.bf16.msra.mxu0 %v5082_v2  ;;  %v6555_v2 = vsel %vm704_vm0, %v679_v31, %v695_v35  ;;  %v6561_v56 = vpack.c.bf16 %v1632_v46, %v1631_v29  ;;  %v6573_v31 = vsel %vm704_vm0, %v696_v28, %v680_v26  ;;  %v785_v29 = vrot.slane %v6286_v9, 1 }
 0x1f3   : > { %4376 = vmatmul.mubr.f32.gmra.mrb[46].mxu0 %v6525_v25  ;;  %4693 = vmatmul.mubr.msk.f32.gmra.mrb[12].mxu1 %vm3681_vm3, %v6529_v44  ;;  %v6586_v35 = vsel %vm704_vm0, %v680_v26, %v696_v28  ;;  %v801_v46 = vrot.slane %v6288_v12, 1  ;;  %v6615_v26 = vsel %vm704_vm0, %v681_v55, %v697_v53  ;;  %v786_v12 = vrot.slane %v6296_v18, 1 }
 0x1f4   : > { %4378 = vmatprep.mubr.msk.f32.mxu0 %vm3680_vm2, %v6533_v41  ;;  %4695 = vmatprep.mubr.f32.mxu1 %v6537_v62  ;;  %v784_v62 = vrot.slane %v6274_v61, 1 }
 0x1f5   : > { %5213 = vmatpush3.bf16.msra.mxu1 %v5210_v5  ;;  %5087 = vmatprep.subr.bf16.mxu0 %v5086_v43  ;;  %v6590_v5 = vsel %vm807_vm1, %v799_v6, %v783_v48  ;;  %v683_v48 = vrot.slane %v6296_v18, 7  ;;  %v699_v6 = vrot.slane %v6298_v20, 7  ;;  %v6635_v55 = vsel %vm807_vm1, %v785_v29, %v801_v46 }
 0x1f6   : > { %5215 = vmatprep.subr.bf16.mxu1 %v5214_v24  ;;  %5089 = vmatpush3.bf16.msra.mxu0 %v5086_v43  ;;  %v6598_v43 = vsel %vm807_vm1, %v784_v62, %v800_v23  ;;  %v6619_v28 = vsel %vm807_vm1, %v800_v23, %v784_v62  ;;  %7387 = vst [vmem:[#allocation50_spill] sm:$0xff] %v6635_v55 }
 0x1f7   : > { %4379 = vmatmul.mubr.f32.gmra.mrb[48].mxu0 %v6555_v2  ;;  %4696 = vmatmul.mubr.msk.f32.gmra.mrb[14].mxu1 %vm3681_vm3, %v6559_v49  ;;  %v6647_v23 = vsel %vm807_vm1, %v801_v46, %v785_v29  ;;  %v787_v29 = vrot.slane %v6308_v27, 1  ;;  %v803_v46 = vrot.slane %v6310_v30, 1  ;;  %v6671_v63 = vsel %vm704_vm0, %v683_v48, %v699_v6 }
 0x1f8   : > { %4381 = vmatprep.mubr.msk.f32.mxu0 %vm3680_vm2, %v6573_v31  ;;  %4698 = vmatprep.mubr.f32.mxu1 %v6577_v33  ;;  %7388 = vst [vmem:[#allocation51_spill] sm:$0xff] %v6647_v23 }
 0x1f9   : > { %5217 = vmatpush3.bf16.msra.mxu1 %v5214_v24  ;;  %5091 = vmatprep.subr.bf16.mxu0 %v6561_v56  ;;  %v682_v24 = vrot.slane %v6286_v9, 7  ;;  %v802_v9 = vrot.slane %v6298_v20, 1  ;;  %v6651_v20 = vsel %vm704_vm0, %v699_v6, %v683_v48  ;;  %v6703_v6 = vsel %vm807_vm1, %v803_v46, %v787_v29 }
 0x1fa   : > { %5219 = vmatprep.subr.bf16.mxu1 %v6551_v50  ;;  %7392 = vst [vmem:[#allocation55_spill] sm:$0xff] %v6703_v6 }
 0x1fb   : > { %4382 = vmatmul.mubr.f32.gmra.mrb[50].mxu0 %v6586_v35  ;;  %4699 = vmatmul.mubr.msk.f32.gmra.mrb[16].mxu1 %vm3681_vm3, %v6590_v5  ;;  %v6631_v53 = vsel %vm704_vm0, %v698_v3, %v682_v24  ;;  %v6643_v62 = vsel %vm704_vm0, %v682_v24, %v698_v3  ;;  %v6655_v18 = vsel %vm807_vm1, %v786_v12, %v802_v9  ;;  %v684_v24 = vrot.slane %v6308_v27, 7 }
 0x1fc   : > { %4384 = vmatprep.mubr.msk.f32.mxu0 %vm3680_vm2, %v6594_v37  ;;  %4701 = vmatprep.mubr.f32.mxu1 %v6598_v43  ;;  %7389 = vst [vmem:[#allocation52_spill] sm:$0xff] %v6655_v18  ;;  %v700_v3 = vrot.slane %v6310_v30, 7  ;;  %v6675_v61 = vsel %vm807_vm1, %v802_v9, %v786_v12  ;;  %v701_v27 = vrot.slane %v6320_v45, 7  ;;  %v788_v30 = vrot.slane %v6318_v39, 1 }
 0x1fd   : > { %7390 = vst [vmem:[#allocation53_spill] sm:$0xff] %v6675_v61  ;;  %v6691_v9 = vsel %vm807_vm1, %v787_v29, %v803_v46  ;;  %v789_v29 = vrot.slane %v6330_v57, 1  ;;  %v805_v46 = vrot.slane %v6332_v60, 1 }
 0x1fe   : > { %v6687_v48 = vsel %vm704_vm0, %v700_v3, %v684_v24  ;;  %7391 = vst [vmem:[#allocation54_spill] sm:$0xff] %v6691_v9  ;;  %v6699_v12 = vsel %vm704_vm0, %v684_v24, %v700_v3  ;;  %v686_v24 = vrot.slane %v6330_v57, 7  ;;  %v702_v3 = vrot.slane %v6332_v60, 7 }
 0x1ff   : > { %4385 = vmatmul.mubr.f32.gmra.mrb[52].mxu0 %v6615_v26  ;;  %4702 = vmatmul.mubr.msk.f32.gmra.mrb[18].mxu1 %vm3681_vm3, %v6619_v28  ;;  %v6743_v57 = vsel %vm807_vm1, %v789_v29, %v805_v46 }
 0x200   : > { %4387 = vmatprep.mubr.msk.f32.mxu0 %vm3680_vm2, %v6631_v53  ;;  %4704 = vmatprep.mubr.f32.mxu1 %v6635_v55  ;;  %v804_v55 = vrot.slane %v6320_v45, 1  ;;  %v6739_v60 = vsel %vm704_vm0, %v702_v3, %v686_v24  ;;  %7396 = vst [vmem:[#allocation59_spill] sm:$0xff] %v6743_v57 }
 0x201   : > { %7395 = vst [vmem:[#allocation58_spill] sm:$0xff] %v6739_v60 }
 0x203   : > { %4388 = vmatmul.mubr.f32.gmra.mrb[54].mxu0 %v6643_v62  ;;  %4705 = vmatmul.mubr.msk.f32.gmra.mrb[20].mxu1 %vm3681_vm3, %v6647_v23  ;;  %v685_v23 = vrot.slane %v6318_v39, 7  ;;  %v6711_v39 = vsel %vm807_vm1, %v788_v30, %v804_v55 }
 0x204   : > { %4390 = vmatprep.mubr.msk.f32.mxu0 %vm3680_vm2, %v6651_v20  ;;  %4707 = vmatprep.mubr.f32.mxu1 %v6655_v18  ;;  %7393 = vst [vmem:[#allocation56_spill] sm:$0xff] %v6711_v39 }
 0x205   : > { %v6707_v45 = vsel %vm704_vm0, %v701_v27, %v685_v23 }
 0x207   : > { %4391 = vmatmul.mubr.f32.gmra.mrb[56].mxu0 %v6671_v63  ;;  %4708 = vmatmul.mubr.msk.f32.gmra.mrb[22].mxu1 %vm3681_vm3, %v6675_v61 }
 0x208   : > { %4393 = vmatprep.mubr.msk.f32.mxu0 %vm3680_vm2, %v6687_v48  ;;  %4710 = vmatprep.mubr.f32.mxu1 %v6691_v9  ;;  %v6727_v9 = vsel %vm704_vm0, %v685_v23, %v701_v27  ;;  %v790_v27 = vrot.slane %v6340_v7, 1  ;;  %v806_v23 = vrot.slane %v6346_v13, 1 }
 0x20b   : > { %4394 = vmatmul.mubr.f32.gmra.mrb[58].mxu0 %v6699_v12  ;;  %4711 = vmatmul.mubr.msk.f32.gmra.mrb[24].mxu1 %vm3681_vm3, %v6703_v6  ;;  %v6731_v6 = vsel %vm807_vm1, %v804_v55, %v788_v30  ;;  %v6753_v30 = vsel %vm704_vm0, %v686_v24, %v702_v3  ;;  %v6757_v55 = vsel %vm807_vm1, %v805_v46, %v789_v29  ;;  %v7400_v24 = vmov 0.0   ;;  %v2725_v29 = vld [vmem:[#allocation8 + $0x390] sm:$0xff]  ;;  %v2726_v46 = vld [vmem:[#allocation8 + $0x398] sm:$0xff] }
 0x20c   : > { %4396 = vmatprep.mubr.msk.f32.mxu0 %vm3680_vm2, %v6707_v45  ;;  %4713 = vmatprep.mubr.f32.mxu1 %v6711_v39  ;;  %7394 = vst [vmem:[#allocation57_spill] sm:$0xff] %v6731_v6  ;;  %7397 = vst [vmem:[#allocation60_spill] sm:$0xff] %v6753_v30  ;;  %v6771_v3 = vsel %vm807_vm1, %v806_v23, %v790_v27 }
 0x20d   : > { %7398 = vst [vmem:[#allocation61_spill] sm:$0xff] %v6757_v55  ;;  %7401 = vst [vmem:[#allocation63_spill] sm:$0xff] %v6771_v3 }
 0x20f   : > { %4397 = vmatmul.mubr.f32.gmra.mrb[60].mxu0 %v6727_v9  ;;  %4714 = vmatmul.mubr.msk.f32.gmra.mrb[26].mxu1 %vm3681_vm3, %v6731_v6  ;;  %v6765_v6 = vsel %vm807_vm1, %v790_v27, %v806_v23  ;;  %v1635_v27 = vld [vmem:[#allocation8 + $0x1a0] sm:$0xff]  ;;  %v1636_v23 = vld [vmem:[#allocation8 + $0x1a8] sm:$0xff] }
 0x210   : > { %4399 = vmatprep.mubr.msk.f32.mxu0 %vm3680_vm2, %v6739_v60  ;;  %4716 = vmatprep.mubr.f32.mxu1 %v6743_v57  ;;  %7399 = vst [vmem:[#allocation62_spill] sm:$0xff] %v6765_v6  ;;  %v1633_v60 = vld [vmem:[#allocation8 + $0x190] sm:$0xff]  ;;  %v1634_v57 = vld [vmem:[#allocation8 + $0x198] sm:$0xff] }
 0x213   : > { %4400 = vmatmul.mubr.f32.gmra.mrb[62].mxu0 %v6753_v30  ;;  %4717 = vmatmul.mubr.msk.f32.gmra.mrb[28].mxu1 %vm3681_vm3, %v6757_v55  ;;  %v5094_v30 = vpack.c.bf16 %v1634_v57, %v1633_v60  ;;  %v2727_v57 = vld [vmem:[#allocation8 + $0x3a0] sm:$0xff]  ;;  %v2728_v60 = vld [vmem:[#allocation8 + $0x3a8] sm:$0xff] }
 0x214   : > { %4719 = vmatprep.mubr.f32.mxu1 %v6765_v6  ;;  %4434 = vmatprep.mubr.f32.mxu0 %v7400_v24  ;;  %v5222_v6 = vpack.c.bf16 %v2726_v46, %v2725_v29  ;;  %v1637_v29 = vld [vmem:[#allocation8 + $0x1b0] sm:$0xff]  ;;  %v1638_v46 = vld [vmem:[#allocation8 + $0x1b8] sm:$0xff] }
 0x217   : > { %4435 = vmatmul.mubr.f32.vlgmr.msra.gmra.mrb[32].mxu0 %v7400_v24  ;;  %4720 = vmatmul.mubr.msk.f32.gmra.mrb[30].mxu1 %vm3681_vm3, %v6771_v3  ;;  %v2732_v3 = vld [vmem:[#allocation8 + $0x3c8] sm:$0xff] }
 0x218   : > { %4437 = vmatprep.mubr.f32.mxu0 %v6175_v34  ;;  %4754 = vmatprep.mubr.msk.f32.mxu1 %vm3680_vm2, %v6364_v32  ;;  %v5098_v34 = vpack.c.bf16 %v1636_v23, %v1635_v27  ;;  %v5102_v27 = vpack.c.bf16 %v1638_v46, %v1637_v29  ;;  %v1639_v23 = vld [vmem:[#allocation8 + $0x1c0] sm:$0xff]  ;;  %v1641_v29 = vld [vmem:[#allocation8 + $0x1d0] sm:$0xff]  ;;  %v1642_v46 = vld [vmem:[#allocation8 + $0x1d8] sm:$0xff] }
 0x219   : > { %5093 = vmatpush3.bf16.msra.mxu0 %v6561_v56  ;;  %v5226_v56 = vpack.c.bf16 %v2728_v60, %v2727_v57  ;;  %v1640_v57 = vld [vmem:[#allocation8 + $0x1c8] sm:$0xff]  ;;  %v2731_v60 = vld [vmem:[#allocation8 + $0x3c0] sm:$0xff] }
 0x21a   : > { %5095 = vmatprep.subr.bf16.mxu0 %v5094_v30 }
 0x21b   : > { %4438 = vmatmul.mubr.msk.f32.gmra.mrb[34].mxu0 %vm3681_vm3, %v6187_v42  ;;  %4755 = vmatmul.mubr.f32.vlgmr.msra.gmra.mrb[0].mxu1 %v6385_v54  ;;  %v2729_v42 = vld [vmem:[#allocation8 + $0x3b0] sm:$0xff] }
 0x21c   : > { %5221 = vmatpush3.bf16.msra.mxu1 %v6551_v50  ;;  %4440 = vmatprep.mubr.f32.mxu0 %v6380_v51  ;;  %v2730_v50 = vld [vmem:[#allocation8 + $0x3b8] sm:$0xff] }
 0x21d   : > { %4757 = vmatprep.mubr.msk.f32.mxu1 %vm3680_vm2, %v6401_v14  ;;  %5223 = vmatprep.subr.bf16.mxu1 %v5222_v6 }
 0x21e   : > { %5097 = vmatpush3.bf16.msra.mxu0 %v5094_v30  ;;  %v5230_v30 = vpack.c.bf16 %v2730_v50, %v2729_v42  ;;  %v2733_v42 = vld [vmem:[#allocation8 + $0x3d0] sm:$0xff]  ;;  %v2734_v50 = vld [vmem:[#allocation8 + $0x3d8] sm:$0xff] }
 0x21f   : > { %4441 = vmatmul.mubr.msk.f32.gmra.mrb[36].mxu0 %vm3681_vm3, %v6389_v59  ;;  %4758 = vmatmul.mubr.f32.gmra.mrb[2].mxu1 %v6413_v21 }
 0x220   : > { %4443 = vmatprep.mubr.f32.mxu0 %v6405_v22  ;;  %4760 = vmatprep.mubr.msk.f32.mxu1 %vm3680_vm2, %v6421_v40 }
 0x221   : > { %5225 = vmatpush3.bf16.msra.mxu1 %v5222_v6  ;;  %5099 = vmatprep.subr.bf16.mxu0 %v5098_v34  ;;  %v5106_v6 = vpack.c.bf16 %v1640_v57, %v1639_v23  ;;  %v1644_v23 = vld [vmem:[#allocation8 + $0x1e8] sm:$0xff]  ;;  %v2735_v57 = vld [vmem:[#allocation8 + $0x3e0] sm:$0xff] }
 0x222   : > { %5227 = vmatprep.subr.bf16.mxu1 %v5226_v56  ;;  %5101 = vmatpush3.bf16.msra.mxu0 %v5098_v34  ;;  %v5234_v34 = vpack.c.bf16 %v2732_v3, %v2731_v60  ;;  %v5110_v3 = vpack.c.bf16 %v1642_v46, %v1641_v29  ;;  %v2736_v60 = vld [vmem:[#allocation8 + $0x3e8] sm:$0xff]  ;;  %v1645_v29 = vld [vmem:[#allocation8 + $0x1f0] sm:$0xff]  ;;  %v1646_v46 = vld [vmem:[#allocation8 + $0x1f8] sm:$0xff] }
 0x223   : > { %4444 = vmatmul.mubr.msk.f32.gmra.mrb[38].mxu0 %vm3681_vm3, %v6417_v38  ;;  %4761 = vmatmul.mubr.f32.gmra.mrb[4].mxu1 %v6441_v0 }
 0x224   : > { %4446 = vmatprep.mubr.f32.mxu0 %v6425_v58  ;;  %4763 = vmatprep.mubr.msk.f32.mxu1 %vm3680_vm2, %v6457_v52 }
 0x225   : > { %5229 = vmatpush3.bf16.msra.mxu1 %v5226_v56  ;;  %5103 = vmatprep.subr.bf16.mxu0 %v5102_v27  ;;  %v5238_v56 = vpack.c.bf16 %v2734_v50, %v2733_v42  ;;  %v2737_v42 = vld [vmem:[#allocation8 + $0x3f0] sm:$0xff]  ;;  %v2738_v50 = vld [vmem:[#allocation8 + $0x3f8] sm:$0xff] }
 0x226   : > { %5231 = vmatprep.subr.bf16.mxu1 %v5230_v30  ;;  %5105 = vmatpush3.bf16.msra.mxu0 %v5102_v27  ;;  %v1643_v27 = vld [vmem:[#allocation8 + $0x1e0] sm:$0xff] }
 0x227   : > { %4447 = vmatmul.mubr.msk.f32.gmra.mrb[40].mxu0 %vm3681_vm3, %v6445_v19  ;;  %4764 = vmatmul.mubr.f32.gmra.mrb[6].mxu1 %v6469_v16 }
 0x228   : > { %4449 = vmatprep.mubr.f32.mxu0 %v6461_v4  ;;  %4766 = vmatprep.mubr.msk.f32.mxu1 %vm3680_vm2, %v6477_v15 }
 0x229   : > { %5233 = vmatpush3.bf16.msra.mxu1 %v5230_v30  ;;  %5107 = vmatprep.subr.bf16.mxu0 %v5106_v6  ;;  %v5114_v30 = vpack.c.bf16 %v1644_v23, %v1643_v27  ;;  %v2996_v27 = vld [vmem:[#allocation8 + $0x400] sm:$0xff]  ;;  %v2997_v23 = vld [vmem:[#allocation8 + $0x408] sm:$0xff] }
 0x22a   : > { %5235 = vmatprep.subr.bf16.mxu1 %v5234_v34  ;;  %5109 = vmatpush3.bf16.msra.mxu0 %v5106_v6  ;;  %v5242_v6 = vpack.c.bf16 %v2736_v60, %v2735_v57  ;;  %v7403_v57 = vld [vmem:[#allocation49_spill] sm:$0xff]  ;;  %v7404_v60 = vld [vmem:[#allocation50_spill] sm:$0xff] }
 0x22b   : > { %4450 = vmatmul.mubr.msk.f32.gmra.mrb[42].mxu0 %vm3681_vm3, %v6473_v17  ;;  %4767 = vmatmul.mubr.f32.gmra.mrb[8].mxu1 %v6497_v8 }
 0x22c   : > { %4452 = vmatprep.mubr.f32.mxu0 %v6481_v36  ;;  %4769 = vmatprep.mubr.msk.f32.mxu1 %vm3680_vm2, %v6513_v47  ;;  %v7402_v36 = vld [vmem:[#allocation48_spill] sm:$0xff] }
 0x22d   : > { %5237 = vmatpush3.bf16.msra.mxu1 %v5234_v34  ;;  %5111 = vmatprep.subr.bf16.mxu0 %v5110_v3  ;;  %v5118_v34 = vpack.c.bf16 %v1646_v46, %v1645_v29  ;;  %v7407_v29 = vld [vmem:[#allocation55_spill] sm:$0xff]  ;;  %v687_v46 = vrot.slane %v6340_v7, 7 }
 0x22e   : > { %5239 = vmatprep.subr.bf16.mxu1 %v5238_v56  ;;  %5113 = vmatpush3.bf16.msra.mxu0 %v5110_v3  ;;  %v5246_v3 = vpack.c.bf16 %v2738_v50, %v2737_v42  ;;  %v703_v42 = vrot.slane %v6346_v13, 7  ;;  %v7408_v50 = vld [vmem:[#allocation58_spill] sm:$0xff] }
 0x22f   : > { %4453 = vmatmul.mubr.msk.f32.gmra.mrb[44].mxu0 %vm3681_vm3, %v6501_v1  ;;  %4770 = vmatmul.mubr.f32.gmra.mrb[10].mxu1 %v6525_v25 }
 0x230   : > { %4455 = vmatprep.mubr.f32.mxu0 %v7402_v36  ;;  %4772 = vmatprep.mubr.msk.f32.mxu1 %vm3680_vm2, %v6533_v41 }
 0x231   : > { %5241 = vmatpush3.bf16.msra.mxu1 %v5238_v56  ;;  %5115 = vmatprep.subr.bf16.mxu0 %v5114_v30  ;;  %v5250_v56 = vpack.c.bf16 %v2997_v23, %v2996_v27  ;;  %v6895_v27 = vsel %vm704_vm0, %v703_v42, %v687_v46  ;;  %v7411_v23 = vld [vmem:[#allocation59_spill] sm:$0xff] }
 0x232   : > { %5243 = vmatprep.subr.bf16.mxu1 %v5242_v6  ;;  %5117 = vmatpush3.bf16.msra.mxu0 %v5114_v30  ;;  %v7405_v30 = vld [vmem:[#allocation51_spill] sm:$0xff] }
 0x233   : > { %4456 = vmatmul.mubr.msk.f32.gmra.mrb[46].mxu0 %vm3681_vm3, %v6529_v44  ;;  %4773 = vmatmul.mubr.f32.gmra.mrb[12].mxu1 %v6555_v2 }
 0x234   : > { %4458 = vmatprep.mubr.f32.mxu0 %v7403_v57  ;;  %4775 = vmatprep.mubr.msk.f32.mxu1 %vm3680_vm2, %v6573_v31 }
 0x235   : > { %5245 = vmatpush3.bf16.msra.mxu1 %v5242_v6  ;;  %5119 = vmatprep.subr.bf16.mxu0 %v5118_v34  ;;  %v7406_v6 = vld [vmem:[#allocation54_spill] sm:$0xff] }
 0x236   : > { %5247 = vmatprep.subr.bf16.mxu1 %v5246_v3  ;;  %5121 = vmatpush3.bf16.msra.mxu0 %v5118_v34  ;;  %v7409_v34 = vld [vmem:[#allocation57_spill] sm:$0xff] }
 0x237   : > { %4459 = vmatmul.mubr.msk.f32.gmra.mrb[48].mxu0 %vm3681_vm3, %v6559_v49  ;;  %4776 = vmatmul.mubr.f32.gmra.mrb[14].mxu1 %v6586_v35 }
 0x238   : > { %4461 = vmatprep.mubr.f32.mxu0 %v6577_v33  ;;  %4778 = vmatprep.mubr.msk.f32.mxu1 %vm3680_vm2, %v6594_v37 }
 0x239   : > { %5249 = vmatpush3.bf16.msra.mxu1 %v5246_v3  ;;  %v7410_v3 = vld [vmem:[#allocation60_spill] sm:$0xff] }
 0x23a   : > { %5251 = vmatprep.subr.bf16.mxu1 %v5250_v56 }
 0x23b   : > { %4462 = vmatmul.mubr.msk.f32.gmra.mrb[50].mxu0 %vm3681_vm3, %v6590_v5  ;;  %4779 = vmatmul.mubr.f32.gmra.mrb[16].mxu1 %v6615_v26 }
 0x23c   : > { %4464 = vmatprep.mubr.f32.mxu0 %v6598_v43  ;;  %4781 = vmatprep.mubr.msk.f32.mxu1 %vm3680_vm2, %v6631_v53 }
 0x23f   : > { %4465 = vmatmul.mubr.msk.f32.gmra.mrb[52].mxu0 %vm3681_vm3, %v6619_v28  ;;  %4782 = vmatmul.mubr.f32.gmra.mrb[18].mxu1 %v6643_v62 }
 0x240   : > { %4467 = vmatprep.mubr.f32.mxu0 %v7404_v60  ;;  %4784 = vmatprep.mubr.msk.f32.mxu1 %vm3680_vm2, %v6651_v20 }
 0x243   : > { %4468 = vmatmul.mubr.msk.f32.gmra.mrb[54].mxu0 %vm3681_vm3, %v7405_v30  ;;  %4785 = vmatmul.mubr.f32.gmra.mrb[20].mxu1 %v6671_v63 }
 0x244   : > { %4470 = vmatprep.mubr.f32.mxu0 %v6655_v18  ;;  %4787 = vmatprep.mubr.msk.f32.mxu1 %vm3680_vm2, %v6687_v48 }
 0x247   : > { %4471 = vmatmul.mubr.msk.f32.gmra.mrb[56].mxu0 %vm3681_vm3, %v6675_v61  ;;  %4788 = vmatmul.mubr.f32.gmra.mrb[22].mxu1 %v6699_v12  ;;  %v3001_v61 = vld [vmem:[#allocation8 + $0x428] sm:$0xff] }
 0x248   : > { %4473 = vmatprep.mubr.f32.mxu0 %v7406_v6  ;;  %4790 = vmatprep.mubr.msk.f32.mxu1 %vm3680_vm2, %v6707_v45  ;;  %v7413_v6 = vld [vmem:[#allocation19_spill] sm:$0xff] }
 0x24b   : > { %4474 = vmatmul.mubr.msk.f32.gmra.mrb[58].mxu0 %vm3681_vm3, %v7407_v29  ;;  %4791 = vmatmul.mubr.f32.gmra.mrb[24].mxu1 %v6727_v9  ;;  %v2999_v29 = vld [vmem:[#allocation8 + $0x418] sm:$0xff] }
 0x24c   : > { %4476 = vmatprep.mubr.f32.mxu0 %v6711_v39  ;;  %4793 = vmatprep.mubr.msk.f32.mxu1 %vm3680_vm2, %v7408_v50  ;;  %v6903_v39 = vsel %vm704_vm0, %v687_v46, %v703_v42  ;;  %v7414_v46 = vld [vmem:[#allocation17_spill] sm:$0xff] }
 0x24f   : > { %4477 = vmatmul.mubr.msk.f32.gmra.mrb[60].mxu0 %vm3681_vm3, %v7409_v34  ;;  %4794 = vmatmul.mubr.f32.gmra.mrb[26].mxu1 %v7410_v3  ;;  %v7412_v34 = vld [vmem:[#allocation18_spill] sm:$0xff] }
 0x250   : > { %4479 = vmatprep.mubr.f32.mxu0 %v7411_v23  ;;  %4796 = vmatprep.mubr.msk.f32.mxu1 %vm3680_vm2, %v6895_v27  ;;  %v2998_v23 = vld [vmem:[#allocation8 + $0x410] sm:$0xff] }
 0x251   : > { %v5254_v42 = vpack.c.bf16 %v2999_v29, %v2998_v23  ;;  %v3002_v29 = vld [vmem:[#allocation8 + $0x430] sm:$0xff]  ;;  %v3003_v23 = vld [vmem:[#allocation8 + $0x438] sm:$0xff] }
 0x253   : > { %4480 = vmatmul.mubr.msk.f32.gmra.mrb[62].mxu0 %vm3681_vm3, %v6757_v55  ;;  %4797 = vmatmul.mubr.f32.gmra.mrb[28].mxu1 %v6903_v39  ;;  %v7415_v55 = vld [vmem:[#allocation20_spill] sm:$0xff] }
 0x254   : > { %4514 = vmatprep.mubr.msk.f32.mxu0 %vm3680_vm2, %v7412_v34  ;;  %4799 = vmatprep.mubr.f32.mxu1 %v7400_v24  ;;  %v3000_v34 = vld [vmem:[#allocation8 + $0x420] sm:$0xff] }
 0x255   : > { %v5258_v18 = vpack.c.bf16 %v3001_v61, %v3000_v34  ;;  %v3004_v61 = vld [vmem:[#allocation8 + $0x440] sm:$0xff]  ;;  %v3007_v34 = vld [vmem:[#allocation8 + $0x458] sm:$0xff] }
 0x257   : > { %4515 = vmatmul.mubr.f32.vlgmr.msra.gmra.mrb[32].mxu0 %v7413_v6  ;;  %4800 = vmatmul.mubr.f32.gmra.mrb[30].mxu1 %v7400_v24  ;;  %v7416_v6 = vld [vmem:[#allocation21_spill] sm:$0xff] }
 0x258   : > { %4517 = vmatprep.mubr.msk.f32.mxu0 %vm3680_vm2, %v6364_v32  ;;  %4834 = vmatprep.mubr.f32.mxu1 %v7414_v46  ;;  %v7417_v32 = vld [vmem:[#allocation22_spill] sm:$0xff] }
 0x259   : > { %v7421_v46 = vld [vmem:[#allocation26_spill] sm:$0xff] }
 0x25b   : > { %4518 = vmatmul.mubr.f32.gmra.mrb[34].mxu0 %v6385_v54  ;;  %4835 = vmatmul.mubr.f32.vlgmr.msra.gmra.mrb[0].mxu1 %v7415_v55  ;;  %v7418_v54 = vld [vmem:[#allocation23_spill] sm:$0xff]  ;;  %v5262_v55 = vpack.c.bf16 %v3003_v23, %v3002_v29  ;;  %v7425_v29 = vld [vmem:[#allocation30_spill] sm:$0xff] }
 0x25c   : > { %5253 = vmatpush3.bf16.msra.mxu1 %v5250_v56  ;;  %4520 = vmatprep.mubr.msk.f32.mxu0 %vm3680_vm2, %v6401_v14  ;;  %v7419_v14 = vld [vmem:[#allocation24_spill] sm:$0xff]  ;;  %v3005_v56 = vld [vmem:[#allocation8 + $0x448] sm:$0xff]  ;;  %v3010_v23 = vld [vmem:[#allocation8 + $0x470] sm:$0xff] }
 0x25d   : > { %4837 = vmatprep.mubr.f32.mxu1 %v7416_v6  ;;  %5255 = vmatprep.subr.bf16.mxu1 %v5254_v42  ;;  %v3008_v6 = vld [vmem:[#allocation8 + $0x460] sm:$0xff] }
 0x25f   : > { %4521 = vmatmul.mubr.f32.gmra.mrb[36].mxu0 %v6413_v21  ;;  %4838 = vmatmul.mubr.f32.gmra.mrb[2].mxu1 %v7417_v32  ;;  %v7420_v21 = vld [vmem:[#allocation25_spill] sm:$0xff]  ;;  %v3009_v32 = vld [vmem:[#allocation8 + $0x468] sm:$0xff] }
 0x260   : > { %4523 = vmatprep.mubr.msk.f32.mxu0 %vm3680_vm2, %v6421_v40  ;;  %4840 = vmatprep.mubr.f32.mxu1 %v7418_v54  ;;  %v5266_v40 = vpack.c.bf16 %v3005_v56, %v3004_v61  ;;  %v3011_v54 = vld [vmem:[#allocation8 + $0x478] sm:$0xff] }
 0x261   : > { %5257 = vmatpush3.bf16.msra.mxu1 %v5254_v42  ;;  %v3006_v42 = vld [vmem:[#allocation8 + $0x450] sm:$0xff] }
 0x262   : > { %5259 = vmatprep.subr.bf16.mxu1 %v5258_v18 }
 0x263   : > { %4524 = vmatmul.mubr.f32.gmra.mrb[38].mxu0 %v6441_v0  ;;  %4841 = vmatmul.mubr.f32.gmra.mrb[4].mxu1 %v7419_v14  ;;  %v7422_v0 = vld [vmem:[#allocation27_spill] sm:$0xff] }
 0x264   : > { %4526 = vmatprep.mubr.msk.f32.mxu0 %vm3680_vm2, %v6457_v52  ;;  %4843 = vmatprep.mubr.f32.mxu1 %v7420_v21  ;;  %v5270_v52 = vpack.c.bf16 %v3007_v34, %v3006_v42  ;;  %v7430_v14 = vld [vmem:[#allocation35_spill] sm:$0xff] }
 0x265   : > { %5261 = vmatpush3.bf16.msra.mxu1 %v5258_v18  ;;  %v7423_v18 = vld [vmem:[#allocation28_spill] sm:$0xff] }
 0x266   : > { %5263 = vmatprep.subr.bf16.mxu1 %v5262_v55 }
 0x267   : > { %4527 = vmatmul.mubr.f32.gmra.mrb[40].mxu0 %v6469_v16  ;;  %4844 = vmatmul.mubr.f32.gmra.mrb[6].mxu1 %v7421_v46  ;;  %v7424_v16 = vld [vmem:[#allocation29_spill] sm:$0xff] }
 0x268   : > { %4529 = vmatprep.mubr.msk.f32.mxu0 %vm3680_vm2, %v6477_v15  ;;  %4846 = vmatprep.mubr.f32.mxu1 %v7422_v0  ;;  %v5274_v15 = vpack.c.bf16 %v3009_v32, %v3008_v6 }
 0x269   : > { %5265 = vmatpush3.bf16.msra.mxu1 %v5262_v55  ;;  %v7427_v55 = vld [vmem:[#allocation32_spill] sm:$0xff] }
 0x26a   : > { %5267 = vmatprep.subr.bf16.mxu1 %v5266_v40 }
 0x26b   : > { %4530 = vmatmul.mubr.f32.gmra.mrb[42].mxu0 %v6497_v8  ;;  %4847 = vmatmul.mubr.f32.gmra.mrb[8].mxu1 %v7423_v18  ;;  %v7426_v8 = vld [vmem:[#allocation31_spill] sm:$0xff] }
 0x26c   : > { %4532 = vmatprep.mubr.msk.f32.mxu0 %vm3680_vm2, %v6513_v47  ;;  %4849 = vmatprep.mubr.f32.mxu1 %v7424_v16  ;;  %v5278_v47 = vpack.c.bf16 %v3011_v54, %v3010_v23 }
 0x26d   : > { %5269 = vmatpush3.bf16.msra.mxu1 %v5266_v40 }
 0x26e   : > { %5271 = vmatprep.subr.bf16.mxu1 %v5270_v52 }
 0x26f   : > { %4533 = vmatmul.mubr.f32.gmra.mrb[44].mxu0 %v6525_v25  ;;  %4850 = vmatmul.mubr.f32.gmra.mrb[10].mxu1 %v7425_v29  ;;  %v7428_v25 = vld [vmem:[#allocation33_spill] sm:$0xff] }
 0x270   : > { %4535 = vmatprep.mubr.msk.f32.mxu0 %vm3680_vm2, %v6533_v41  ;;  %4852 = vmatprep.mubr.f32.mxu1 %v7426_v8  ;;  %v7429_v41 = vld [vmem:[#allocation34_spill] sm:$0xff]  ;;  %v7116_v29 = vld [vmem:[%s7264_s5] ss:$0 sm:$0xff] }
 0x271   : > { %5273 = vmatpush3.bf16.msra.mxu1 %v5270_v52 }
 0x272   : > { %5275 = vmatprep.subr.bf16.mxu1 %v5274_v15 }
 0x273   : > { %4536 = vmatmul.mubr.f32.gmra.mrb[46].mxu0 %v6555_v2  ;;  %4853 = vmatmul.mubr.f32.gmra.mrb[12].mxu1 %v7427_v55  ;;  %v7431_v2 = vld [vmem:[#allocation36_spill] sm:$0xff] }
 0x274   : > { %4538 = vmatprep.mubr.msk.f32.mxu0 %vm3680_vm2, %v6573_v31  ;;  %4855 = vmatprep.mubr.f32.mxu1 %v7428_v25  ;;  %v7432_v31 = vld [vmem:[#allocation37_spill] sm:$0xff] }
 0x275   : > { %5277 = vmatpush3.bf16.msra.mxu1 %v5274_v15 }
 0x276   : > { %5279 = vmatprep.subr.bf16.mxu1 %v5278_v47 }
 0x277   : > { %4539 = vmatmul.mubr.f32.gmra.mrb[48].mxu0 %v6586_v35  ;;  %4856 = vmatmul.mubr.f32.gmra.mrb[14].mxu1 %v7429_v41  ;;  %v7433_v35 = vld [vmem:[#allocation38_spill] sm:$0xff] }
 0x278   : > { %4541 = vmatprep.mubr.msk.f32.mxu0 %vm3680_vm2, %v6594_v37  ;;  %4858 = vmatprep.mubr.f32.mxu1 %v7430_v14  ;;  %v7434_v37 = vld [vmem:[#allocation39_spill] sm:$0xff] }
 0x279   : > { %5281 = vmatpush3.bf16.msra.mxu1 %v5278_v47 }
 0x27b   : > { %4542 = vmatmul.mubr.f32.gmra.mrb[50].mxu0 %v6615_v26  ;;  %4859 = vmatmul.mubr.f32.gmra.mrb[16].mxu1 %v7431_v2  ;;  %v7435_v26 = vld [vmem:[#allocation40_spill] sm:$0xff] }
 0x27c   : > { %4544 = vmatprep.mubr.msk.f32.mxu0 %vm3680_vm2, %v6631_v53  ;;  %4861 = vmatprep.mubr.f32.mxu1 %v7432_v31  ;;  %v7436_v53 = vld [vmem:[#allocation41_spill] sm:$0xff] }
 0x27f   : > { %4545 = vmatmul.mubr.f32.gmra.mrb[52].mxu0 %v6643_v62  ;;  %4862 = vmatmul.mubr.f32.gmra.mrb[18].mxu1 %v7433_v35  ;;  %v7437_v62 = vld [vmem:[#allocation42_spill] sm:$0xff] }
 0x280   : > { %4547 = vmatprep.mubr.msk.f32.mxu0 %vm3680_vm2, %v6651_v20  ;;  %4864 = vmatprep.mubr.f32.mxu1 %v7434_v37  ;;  %v7438_v20 = vld [vmem:[#allocation43_spill] sm:$0xff] }
 0x283   : > { %4548 = vmatmul.mubr.f32.gmra.mrb[54].mxu0 %v6671_v63  ;;  %4865 = vmatmul.mubr.f32.gmra.mrb[20].mxu1 %v7435_v26  ;;  %v7439_v63 = vld [vmem:[#allocation44_spill] sm:$0xff] }
 0x284   : > { %4550 = vmatprep.mubr.msk.f32.mxu0 %vm3680_vm2, %v6687_v48  ;;  %4867 = vmatprep.mubr.f32.mxu1 %v7436_v53  ;;  %v7440_v48 = vld [vmem:[#allocation45_spill] sm:$0xff] }
 0x287   : > { %4551 = vmatmul.mubr.f32.gmra.mrb[56].mxu0 %v6699_v12  ;;  %4868 = vmatmul.mubr.f32.gmra.mrb[22].mxu1 %v7437_v62  ;;  %v7441_v12 = vld [vmem:[#allocation46_spill] sm:$0xff] }
 0x288   : > { %4553 = vmatprep.mubr.msk.f32.mxu0 %vm3680_vm2, %v6707_v45  ;;  %4870 = vmatprep.mubr.f32.mxu1 %v7438_v20  ;;  %v7448_v45 = vld [vmem:[#allocation57_spill] sm:$0xff] }
 0x28b   : > { %4554 = vmatmul.mubr.f32.gmra.mrb[58].mxu0 %v6727_v9  ;;  %4871 = vmatmul.mubr.f32.gmra.mrb[24].mxu1 %v7439_v63 }
 0x28c   : > { %4556 = vmatprep.mubr.msk.f32.mxu0 %vm3680_vm2, %v7408_v50  ;;  %4873 = vmatprep.mubr.f32.mxu1 %v7440_v48 }
 0x28f   : > { %4557 = vmatmul.mubr.f32.gmra.mrb[60].mxu0 %v7410_v3  ;;  %4874 = vmatmul.mubr.f32.gmra.mrb[26].mxu1 %v7441_v12 }
 0x290   : > { %4559 = vmatprep.mubr.msk.f32.mxu0 %vm3680_vm2, %v6895_v27  ;;  %4876 = vmatprep.mubr.f32.mxu1 %v6340_v7  ;;  %v7449_v7 = vld [vmem:[#allocation59_spill] sm:$0xff] }
 0x293   : > { %4560 = vmatmul.mubr.f32.gmra.mrb[62].mxu0 %v6903_v39  ;;  %4877 = vmatmul.mubr.f32.gmra.mrb[28].mxu1 %v6346_v13  ;;  %v7447_v39 = vld [vmem:[#allocation56_spill] sm:$0xff]  ;;  %v7450_v13 = vld [vmem:[#allocation61_spill] sm:$0xff] }
 0x294   : > { %4879 = vmatprep.mubr.f32.mxu1 %v7400_v24 }
 0x297   : > { %4880 = vmatmul.mubr.f32.gmra.mrb[30].mxu1 %v7400_v24 }
 0x298   : > { %4914 = vmatprep.mubr.f32.mxu1 %v6380_v51  ;;  %v7451_v51 = vld [vmem:[#allocation62_spill] sm:$0xff] }
 0x29b   : > { %4915 = vmatmul.mubr.msk.f32.vlgmr.msra.gmra.mrb[0].mxu1 %vm3681_vm3, %v6389_v59  ;;  %v7452_v59 = vld [vmem:[#allocation63_spill] sm:$0xff] }
 0x29c   : > { %4917 = vmatprep.mubr.f32.mxu1 %v6405_v22 }
 0x29f   : > { %4918 = vmatmul.mubr.msk.f32.gmra.mrb[2].mxu1 %vm3681_vm3, %v6417_v38 }
 0x2a0   : > { %4920 = vmatprep.mubr.f32.mxu1 %v6425_v58  ;;  %v7444_v58 = vld [vmem:[#allocation53_spill] sm:$0xff] }
 0x2a3   : > { %4921 = vmatmul.mubr.msk.f32.gmra.mrb[4].mxu1 %vm3681_vm3, %v6445_v19 }
 0x2a4   : > { %4923 = vmatprep.mubr.f32.mxu1 %v6461_v4 }
 0x2a7   : > { %4924 = vmatmul.mubr.msk.f32.gmra.mrb[6].mxu1 %vm3681_vm3, %v6473_v17  ;;  %v7445_v17 = vld [vmem:[#allocation54_spill] sm:$0xff] }
 0x2a8   : > { %4926 = vmatprep.mubr.f32.mxu1 %v7442_v11 }
 0x2ab   : > { %4927 = vmatmul.mubr.msk.f32.gmra.mrb[8].mxu1 %vm3681_vm3, %v6501_v1 }
 0x2ac   : > { %4929 = vmatprep.mubr.f32.mxu1 %v7402_v36  ;;  %v7443_v36 = vld [vmem:[#allocation52_spill] sm:$0xff] }
 0x2af   : > { %4930 = vmatmul.mubr.msk.f32.gmra.mrb[10].mxu1 %vm3681_vm3, %v6529_v44  ;;  %v7446_v44 = vld [vmem:[#allocation55_spill] sm:$0xff] }
 0x2b0   : > { %4932 = vmatprep.mubr.f32.mxu1 %v7403_v57 }
 0x2b3   : > { %4933 = vmatmul.mubr.msk.f32.gmra.mrb[12].mxu1 %vm3681_vm3, %v6559_v49 }
 0x2b4   : > { %4935 = vmatprep.mubr.f32.mxu1 %v6577_v33 }
 0x2b7   : > { %4936 = vmatmul.mubr.msk.f32.gmra.mrb[14].mxu1 %vm3681_vm3, %v6590_v5 }
 0x2b8   : > { %4938 = vmatprep.mubr.f32.mxu1 %v6598_v43 }
 0x2bb   : > { %4939 = vmatmul.mubr.msk.f32.gmra.mrb[16].mxu1 %vm3681_vm3, %v6619_v28 }
 0x2bc   : > { %4941 = vmatprep.mubr.f32.mxu1 %v7404_v60 }
 0x2bf   : > { %4942 = vmatmul.mubr.msk.f32.gmra.mrb[18].mxu1 %vm3681_vm3, %v7405_v30 }
 0x2c0   : > { %4944 = vmatprep.mubr.f32.mxu1 %v7443_v36 }
 0x2c3   : > { %4945 = vmatmul.mubr.msk.f32.gmra.mrb[20].mxu1 %vm3681_vm3, %v7444_v58 }
 0x2c4   : > { %4947 = vmatprep.mubr.f32.mxu1 %v7445_v17 }
 0x2c7   : > { %4948 = vmatmul.mubr.msk.f32.gmra.mrb[22].mxu1 %vm3681_vm3, %v7446_v44 }
 0x2c8   : > { %4950 = vmatprep.mubr.f32.mxu1 %v7447_v39 }
 0x2cb   : > { %4951 = vmatmul.mubr.msk.f32.gmra.mrb[24].mxu1 %vm3681_vm3, %v7448_v45 }
 0x2cc   : > { %4953 = vmatprep.mubr.f32.mxu1 %v7449_v7 }
 0x2cf   : > { %4954 = vmatmul.mubr.msk.f32.gmra.mrb[26].mxu1 %vm3681_vm3, %v7450_v13 }
 0x2d0   : > { %4956 = vmatprep.mubr.f32.mxu1 %v7451_v51 }
 0x2d3   : > { %4957 = vmatmul.mubr.msk.f32.gmra.mrb[28].mxu1 %vm3681_vm3, %v7452_v59 }
 0x2d4   : > { %4959 = vmatprep.mubr.f32.mxu1 %v7400_v24 }
 0x2d7   : > { %4960 = vmatmul.mubr.f32.gmra.mrb[30].mxu1 %v7400_v24 }
 0x32a   : > { %v4516_v22 = vpop.f32.mrb[32].mxu0 }
 0x32b   : > { %v1713_v38 = vpop.f32.mrb[33].mxu0 }
 0x32e   : > { %v4519_v19 = vpop.f32.mrb[34].mxu0 }
 0x32f   : > { %v1723_v4 = vpop.f32.mrb[35].mxu0 }
 0x332   : > { %v4522_v1 = vpop.f32.mrb[36].mxu0 }
 0x333   : > { %v1733_v49 = vpop.f32.mrb[37].mxu0 }
 0x336   : > { %v4525_v33 = vpop.f32.mrb[38].mxu0 }
 0x337   : > { %v1743_v5 = vpop.f32.mrb[39].mxu0 }
 0x33a   : > { %v4528_v43 = vpop.f32.mrb[40].mxu0 }
 0x33b   : > { %v1753_v28 = vpop.f32.mrb[41].mxu0 }
 0x33e   : > { %v7069_v9 = vpop.f32.mrb[42].mxu0 }
 0x33f   : > { %v7071_v57 = vpop.f32.mrb[43].mxu0 }
 0x342   : > { %v7073_v10 = vpop.f32.mrb[44].mxu0 }
 0x343   : > { %v7075_v60 = vpop.f32.mrb[45].mxu0 }
 0x346   : > { %v7077_v30 = vpop.f32.mrb[46].mxu0 }
 0x347   : > { %v7079_v24 = vpop.f32.mrb[47].mxu0 }
 0x34a   : > { %v7081_v50 = vpop.f32.mrb[48].mxu0 }
 0x34b   : > { %v7083_v3 = vpop.f32.mrb[49].mxu0 }
 0x34e   : > { %v7085_v27 = vpop.f32.mrb[50].mxu0 }
 0x34f   : > { %v7087_v61 = vpop.f32.mrb[51].mxu0 }
 0x352   : > { %v7089_v56 = vpop.f32.mrb[52].mxu0 }
 0x353   : > { %v7091_v21 = vpop.f32.mrb[53].mxu0 }
 0x356   : > { %v7093_v40 = vpop.f32.mrb[54].mxu0 }
 0x357   : > { %v7095_v46 = vpop.f32.mrb[55].mxu0 }
 0x35a   : > { %v7097_v42 = vpop.f32.mrb[56].mxu0 }
 0x35b   : > { %v7099_v34 = vpop.f32.mrb[57].mxu0 }
 0x35e   : > { %v7101_v0 = vpop.f32.mrb[58].mxu0 }
 0x35f   : > { %v7103_v52 = vpop.f32.mrb[59].mxu0 }
 0x362   : > { %v7105_v18 = vpop.f32.mrb[60].mxu0 }
 0x363   : > { %v7107_v6 = vpop.f32.mrb[61].mxu0 }
 0x366   : > { %v7109_v32 = vpop.f32.mrb[62].mxu0 }
 0x367   : > { %v7111_v16 = vpop.f32.mrb[63].mxu0 }
 0x36e   : > { %v4916_v15 = vpop.f32.mrb[0].mxu1 }
 0x36f   : > { %v5282_v23 = vadd.f32 %v4916_v15, %v4516_v22  ;;  %v3078_v54 = vpop.f32.mrb[1].mxu1 }
 0x370   : > { %v5283_v8 = vadd.f32 %v3078_v54, %v1713_v38 }
 0x371   : > { %v3277_v47 = vadd.f32 %v5282_v23, %v7116_v29 }
 0x372   : > { %v3276_v55 = vadd.f32 %v5283_v8, %v7116_v29  ;;  %v4919_v25 = vpop.f32.mrb[2].mxu1 }
 0x373   : > { %3309 = vst [vmem:[%s7122_s12 + $0x8] sm:$0xff] %v3277_v47  ;;  %v5284_v41 = vadd.f32 %v4919_v25, %v4519_v19  ;;  %v3088_v14 = vpop.f32.mrb[3].mxu1 }
 0x374   : > { %3308 = vst [vmem:[%s7122_s12] sm:$0xff] %v3276_v55  ;;  %v5285_v2 = vadd.f32 %v3088_v14, %v1723_v4 }
 0x375   : > { %v3279_v31 = vadd.f32 %v5284_v41, %v7116_v29 }
 0x376   : > { %v3278_v35 = vadd.f32 %v5285_v2, %v7116_v29  ;;  %v4922_v37 = vpop.f32.mrb[4].mxu1 }
 0x377   : > { %3311 = vst [vmem:[%s7122_s12 + $0x18] sm:$0xff] %v3279_v31  ;;  %v5286_v26 = vadd.f32 %v4922_v37, %v4522_v1  ;;  %v3098_v53 = vpop.f32.mrb[5].mxu1 }
 0x378   : > { %3310 = vst [vmem:[%s7122_s12 + $0x10] sm:$0xff] %v3278_v35  ;;  %v5287_v62 = vadd.f32 %v3098_v53, %v1733_v49 }
 0x379   : > { %v3281_v20 = vadd.f32 %v5286_v26, %v7116_v29 }
 0x37a   : > { %v3280_v63 = vadd.f32 %v5287_v62, %v7116_v29  ;;  %v4925_v48 = vpop.f32.mrb[6].mxu1 }
 0x37b   : > { %3313 = vst [vmem:[%s7122_s12 + $0x28] sm:$0xff] %v3281_v20  ;;  %v5288_v12 = vadd.f32 %v4925_v48, %v4525_v33  ;;  %v3108_v11 = vpop.f32.mrb[7].mxu1 }
 0x37c   : > { %3312 = vst [vmem:[%s7122_s12 + $0x20] sm:$0xff] %v3280_v63  ;;  %v5289_v36 = vadd.f32 %v3108_v11, %v1743_v5 }
 0x37d   : > { %v3283_v58 = vadd.f32 %v5288_v12, %v7116_v29 }
 0x37e   : > { %v3282_v17 = vadd.f32 %v5289_v36, %v7116_v29  ;;  %v4928_v44 = vpop.f32.mrb[8].mxu1 }
 0x37f   : > { %3315 = vst [vmem:[%s7122_s12 + $0x38] sm:$0xff] %v3283_v58  ;;  %v5290_v39 = vadd.f32 %v4928_v44, %v4528_v43  ;;  %v3118_v45 = vpop.f32.mrb[9].mxu1 }
 0x380   : > { %3314 = vst [vmem:[%s7122_s12 + $0x30] sm:$0xff] %v3282_v17  ;;  %v5291_v7 = vadd.f32 %v3118_v45, %v1753_v28 }
 0x381   : > { %v3285_v13 = vadd.f32 %v5290_v39, %v7116_v29 }
 0x382   : > { %v3284_v51 = vadd.f32 %v5291_v7, %v7116_v29  ;;  %v4931_v59 = vpop.f32.mrb[10].mxu1 }
 0x383   : > { %3317 = vst [vmem:[%s7122_s12 + $0x48] sm:$0xff] %v3285_v13  ;;  %v5292_v22 = vadd.f32 %v4931_v59, %v7069_v9  ;;  %v3128_v38 = vpop.f32.mrb[11].mxu1 }
 0x384   : > { %3316 = vst [vmem:[%s7122_s12 + $0x40] sm:$0xff] %v3284_v51  ;;  %v5293_v19 = vadd.f32 %v3128_v38, %v7071_v57 }
 0x385   : > { %v3287_v4 = vadd.f32 %v5292_v22, %v7116_v29 }
 0x386   : > { %v3286_v1 = vadd.f32 %v5293_v19, %v7116_v29  ;;  %v4934_v49 = vpop.f32.mrb[12].mxu1 }
 0x387   : > { %3319 = vst [vmem:[%s7122_s12 + $0x58] sm:$0xff] %v3287_v4  ;;  %v5294_v33 = vadd.f32 %v4934_v49, %v7073_v10  ;;  %v3138_v5 = vpop.f32.mrb[13].mxu1 }
 0x388   : > { %3318 = vst [vmem:[%s7122_s12 + $0x50] sm:$0xff] %v3286_v1  ;;  %v5295_v43 = vadd.f32 %v3138_v5, %v7075_v60 }
 0x389   : > { %v3289_v28 = vadd.f32 %v5294_v33, %v7116_v29 }
 0x38a   : > { %v3288_v9 = vadd.f32 %v5295_v43, %v7116_v29  ;;  %v4937_v15 = vpop.f32.mrb[14].mxu1 }
 0x38b   : > { %3321 = vst [vmem:[%s7122_s12 + $0x68] sm:$0xff] %v3289_v28  ;;  %v5296_v57 = vadd.f32 %v4937_v15, %v7077_v30  ;;  %v3148_v23 = vpop.f32.mrb[15].mxu1 }
 0x38c   : > { %3320 = vst [vmem:[%s7122_s12 + $0x60] sm:$0xff] %v3288_v9  ;;  %v5297_v54 = vadd.f32 %v3148_v23, %v7079_v24 }
 0x38d   : > { %v3291_v10 = vadd.f32 %v5296_v57, %v7116_v29 }
 0x38e   : > { %v3290_v8 = vadd.f32 %v5297_v54, %v7116_v29  ;;  %v4940_v47 = vpop.f32.mrb[16].mxu1 }
 0x38f   : > { %3323 = vst [vmem:[%s7122_s12 + $0x78] sm:$0xff] %v3291_v10  ;;  %v5298_v60 = vadd.f32 %v4940_v47, %v7081_v50  ;;  %v3158_v55 = vpop.f32.mrb[17].mxu1 }
 0x390   : > { %3322 = vst [vmem:[%s7122_s12 + $0x70] sm:$0xff] %v3290_v8  ;;  %v5299_v25 = vadd.f32 %v3158_v55, %v7083_v3 }
 0x391   : > { %v3293_v30 = vadd.f32 %v5298_v60, %v7116_v29 }
 0x392   : > { %v3292_v41 = vadd.f32 %v5299_v25, %v7116_v29  ;;  %v4943_v14 = vpop.f32.mrb[18].mxu1 }
 0x393   : > { %3325 = vst [vmem:[%s7122_s12 + $0x88] sm:$0xff] %v3293_v30  ;;  %v5300_v24 = vadd.f32 %v4943_v14, %v7085_v27  ;;  %v3168_v2 = vpop.f32.mrb[19].mxu1 }
 0x394   : > { %3324 = vst [vmem:[%s7122_s12 + $0x80] sm:$0xff] %v3292_v41  ;;  %v5301_v31 = vadd.f32 %v3168_v2, %v7087_v61 }
 0x395   : > { %v3295_v50 = vadd.f32 %v5300_v24, %v7116_v29 }
 0x396   : > { %v3294_v35 = vadd.f32 %v5301_v31, %v7116_v29  ;;  %v4946_v37 = vpop.f32.mrb[20].mxu1 }
 0x397   : > { %3327 = vst [vmem:[%s7122_s12 + $0x98] sm:$0xff] %v3295_v50  ;;  %v5302_v3 = vadd.f32 %v4946_v37, %v7089_v56  ;;  %v3178_v26 = vpop.f32.mrb[21].mxu1 }
 0x398   : > { %3326 = vst [vmem:[%s7122_s12 + $0x90] sm:$0xff] %v3294_v35  ;;  %v5303_v53 = vadd.f32 %v3178_v26, %v7091_v21 }
 0x399   : > { %v3297_v27 = vadd.f32 %v5302_v3, %v7116_v29 }
 0x39a   : > { %v3296_v62 = vadd.f32 %v5303_v53, %v7116_v29  ;;  %v4949_v20 = vpop.f32.mrb[22].mxu1 }
 0x39b   : > { %3329 = vst [vmem:[%s7122_s12 + $0xa8] sm:$0xff] %v3297_v27  ;;  %v5304_v61 = vadd.f32 %v4949_v20, %v7093_v40  ;;  %v3188_v63 = vpop.f32.mrb[23].mxu1 }
 0x39c   : > { %3328 = vst [vmem:[%s7122_s12 + $0xa0] sm:$0xff] %v3296_v62  ;;  %v5305_v48 = vadd.f32 %v3188_v63, %v7095_v46 }
 0x39d   : > { %v3299_v56 = vadd.f32 %v5304_v61, %v7116_v29 }
 0x39e   : > { %v3298_v12 = vadd.f32 %v5305_v48, %v7116_v29  ;;  %v4952_v11 = vpop.f32.mrb[24].mxu1 }
 0x39f   : > { %3331 = vst [vmem:[%s7122_s12 + $0xb8] sm:$0xff] %v3299_v56  ;;  %v5306_v21 = vadd.f32 %v4952_v11, %v7097_v42  ;;  %v3198_v36 = vpop.f32.mrb[25].mxu1 }
 0x3a0   : > { %3330 = vst [vmem:[%s7122_s12 + $0xb0] sm:$0xff] %v3298_v12  ;;  %v5307_v58 = vadd.f32 %v3198_v36, %v7099_v34 }
 0x3a1   : > { %v3301_v40 = vadd.f32 %v5306_v21, %v7116_v29 }
 0x3a2   : > { %v3300_v17 = vadd.f32 %v5307_v58, %v7116_v29  ;;  %v4955_v44 = vpop.f32.mrb[26].mxu1 }
 0x3a3   : > { %3333 = vst [vmem:[%s7122_s12 + $0xc8] sm:$0xff] %v3301_v40  ;;  %v5308_v46 = vadd.f32 %v4955_v44, %v7101_v0  ;;  %v3208_v39 = vpop.f32.mrb[27].mxu1 }
 0x3a4   : > { %3332 = vst [vmem:[%s7122_s12 + $0xc0] sm:$0xff] %v3300_v17  ;;  %v5309_v42 = vadd.f32 %v3208_v39, %v7103_v52 }
 0x3a5   : > { %v3303_v45 = vadd.f32 %v5308_v46, %v7116_v29 }
 0x3a6   : > { %v3302_v34 = vadd.f32 %v5309_v42, %v7116_v29  ;;  %v4958_v7 = vpop.f32.mrb[28].mxu1 }
 0x3a7   : > { %3335 = vst [vmem:[%s7122_s12 + $0xd8] sm:$0xff] %v3303_v45  ;;  %v5310_v13 = vadd.f32 %v4958_v7, %v7105_v18  ;;  %v3218_v51 = vpop.f32.mrb[29].mxu1 }
 0x3a8   : > { %3334 = vst [vmem:[%s7122_s12 + $0xd0] sm:$0xff] %v3302_v34  ;;  %v5311_v0 = vadd.f32 %v3218_v51, %v7107_v6 }
 0x3a9   : > { %v3305_v59 = vadd.f32 %v5310_v13, %v7116_v29 }
 0x3aa   : > { %v3304_v52 = vadd.f32 %v5311_v0, %v7116_v29  ;;  %v4961_v22 = vpop.f32.mrb[30].mxu1 }
 0x3ab   : > { %3337 = vst [vmem:[%s7122_s12 + $0xe8] sm:$0xff] %v3305_v59  ;;  %v5312_v38 = vadd.f32 %v4961_v22, %v7109_v32  ;;  %v3228_v19 = vpop.f32.mrb[31].mxu1 }
 0x3ac   : > { %3336 = vst [vmem:[%s7122_s12 + $0xe0] sm:$0xff] %v3304_v52  ;;  %v5313_v18 = vadd.f32 %v3228_v19, %v7111_v16 }
 0x3ad   : > { %v3307_v4 = vadd.f32 %v5312_v38, %v7116_v29 }
 0x3ae   : > { %v3306_v6 = vadd.f32 %v5313_v18, %v7116_v29 }
 0x3af   : > { %3339 = vst [vmem:[%s7122_s12 + $0xf8] sm:$0xff] %v3307_v4 }
 0x3b0   : > { %3338 = vst [vmem:[%s7122_s12 + $0xf0] sm:$0xff] %v3306_v6 }
 0x3b1   : > { %5744 = shalt.err (!%p5741_p7)
}
 0x3b2   : > { %s5745_s0 = scalar_lea.hbm %s7210_s10, 4096  ;;  %s5749_s14 = scalar_lea.hbm %s7265_s6, 8192 }
 0x3b3   : > { %p5746_p9 = scmp.ne.s32.totalorder %s7210_s10, %s5745_s0  ;;  %p5750_p11 = scmp.lt.u32.totalorder %s7210_s10, %s7265_s6 }
 0x3b4   : > { %p5751_p2 = scmp.lt.u32.totalorder %s5749_s14, %s5745_s0  ;;  %p5753_p1 = scmp.lt.u32.totalorder %s5745_s0, %s7210_s10 }
 0x3b5   : > { %p5747_p0 = pnand %p5746_p9, %p7453_p13 }
 0x3b6   : > { %p5752_p12 = por %p5751_p2, %p5750_p11 }
 0x3b7   : > { %p5748_p8 = pneg %p5747_p0 }
 0x3b8   : > { %p5754_p6 = por %p5753_p1, %p5752_p12 }
 0x3ba   : > { %p5755_p10 = pnand %p5754_p6, %p5748_p8 }
 0x3bc   : > { %5758 = shalt.err (!%p5755_p10)
}
 0x3bd   : > { %s5819_s13 = smov 128   ;;  %s5820_s16 = smov 8  }
 0x3be   : > { %5550 = dma.vmem_to_hbm [thread:$0]  (%p7453_p13), %s7212_s7, 4096, %s7210_s10, %s3341_s25, %s5819_s13, %s5819_s13, %s5820_s16  }
 0x3bf PF: > { %s3369_s12 = sand.u32 1, %s5797_s21   ;;  %p7454_p4 = scmp.ne.s32.totalorder %s7336_s28, 0 }
 0x3c0   : > { %p7455_p5 = scmp.ge.s32.totalorder %s5809_s24, 2  ;;  %s3370_s17 = scalar_lea.sflag [#allocation4], %s3369_s12 }
 0x3c2   : > { %p5567_p3 = pnand %p7455_p5, %p7454_p4 }
 0x3c4   : > { %5792 = dma.done.wait (!%p5567_p3), %s3370_s17, 4096  }
 0x3c5   : > { %5794 = vsyncadd (!%p5567_p3), %s3370_s17, 4294963200  ;;  %s7456_s2 = sld [smem:[#allocation16_spill]]  ;;  %p23_p7 = scmp.ge.s32.totalorder %s5972_s8, 4  }
 0x3c6   : > { %s7457_s21 = smov %s5801_s22  ;;  %s7458_s22 = smov %s5805_s23 }
 0x3c7   : > { %s7460_s24 = smov %s5972_s8  ;;  %25 = sbr.rel (!%p23_p7) target bundleno = 12 (0xc), region = 110 }
 0x3cb   : > { %s7459_s23 = smov %s7456_s2 }
 0x3ce   :  { %3375 = vsyncpa [#allocation3], 1 }
 0x3cf   :  { %3377 = vsyncpa [#allocation3 + $0x1], 1 }
 0x3d0   :  { %3378 = vsyncpa [#allocation6], 1 }
 0x3d1   :  { %3380 = vsyncpa [#allocation6 + $0x1], 1 }
 0x3d2   :  { %3381 = vsyncpa [#allocation9], 1 }
 0x3d3   :  { %3382 = vsyncpa [#allocation4], 1 }
 0x3d4   :  { %3384 = vsyncpa [#allocation4 + $0x1], 1 }

// kernel: tpu_custom_call.1
= control target key start
LH: loop header
LB: loop body
LE: loop exit
PB: predicated region body
PF: predicated region fallthrough
CT: control target
= control target key end

     0   :  { %s7259_s0 = inlined_call_operand.hbm [shape: f32[2,16,16,128], index: 0, kind: input, shape index: {}]   ;;  %s7260_s1 = inlined_call_operand.hbm [shape: f32[2,8,16,128], index: 1, kind: input, shape index: {}]   ;;  %s7261_s2 = inlined_call_operand.hbm [shape: f32[128,128], index: 2, kind: input, shape index: {}]   ;;  %s7262_s3 = inlined_call_operand.vmem [shape: f32[1,128], index: 3, kind: input, shape index: {}]   ;;  %s7263_s4 = inlined_call_operand.hbm [shape: f32[1152,128], index: 4, kind: input, shape index: {}]   ;;  %s7264_s5 = inlined_call_operand.vmem [shape: f32[1,128], index: 5, kind: input, shape index: {}]   ;;  %s7265_s6 = inlined_call_operand.hbm [shape: f32[2,16,16,128], index: 6, kind: output, shape index: {}]  }
   0x1   :  { %7332 = sst [smem:[#allocation64_spill]] %s7259_s0 }
   0x2   :  { %7333 = sst [smem:[#allocation65_spill]] %s7261_s2 }
   0x3   :  { %7334 = sst [smem:[#allocation66_spill]] %s7263_s4 }
   0x4   :  { %11 = vsyncpa [#allocation3], 0 }
   0x5   :  { %13 = vsyncpa [#allocation3 + $0x1], 0 }
   0x6   :  { %14 = vsyncpa [#allocation6], 0 }
   0x7   :  { %16 = vsyncpa [#allocation6 + $0x1], 0 }
   0x8   :  { %17 = vsyncpa [#allocation9], 0 }
   0x9   :  { %18 = vsyncpa [#allocation4], 0 }
   0xa   :  { %20 = vsyncpa [#allocation4 + $0x1], 0  ;;  %s5856_s21 = smov 0   ;;  %s5858_s22 = smov 0  }
   0xb   :  { %s5860_s23 = smov 0   ;;  %s5862_s24 = smov 0  }
   0xc LB: > { %s5877_s25 = sadd.s32 4294967295, %s5809_s24   ;;  %s3469_s26 = sadd.s32 4294967294, %s5809_s24   ;;  %s5809_s24 = sphi %s5862_s24, %s7460_s24   ;;  %s5805_s23 = sphi %s5860_s23, %s7459_s23   ;;  %s5801_s22 = sphi %s5858_s22, %s7458_s22   ;;  %s5797_s21 = sphi %s5856_s21, %s7457_s21  }
   0xd   : > { %p46_p0 = scmp.ne.s32.totalorder %s5801_s22, %s5797_s21  ;;  %p7266_p1 = scmp.eq.s32.totalorder %s5877_s25, 0 }
   0xe   : > { %p186_p3 = scmp.eq.s32.totalorder %s3469_s26, 1  ;;  %p3470_p5 = scmp.ge.s32.totalorder %s5809_s24, 1 }
   0xf   : > { %p5886_p4 = por %p7266_p1, %p46_p0  ;;  %p193_p7 = scmp.lt.s32.totalorder %s5809_s24, 3 }
  0x10   : > { %p5891_p6 = por %p186_p3, %p46_p0  ;;  %s5811_s30 = smov [#allocation7]  }
  0x11   : > { %s7335_s27 = scalar_select %p5886_p4, 1, 0 }
  0x12   : > { %s7336_s28 = scalar_select %p5891_p6, 1, 0 }
  0x13   : > { %p5896_p8 = pnand %p3470_p5, %p193_p7  ;;  %s205_s7 = sshll.u32 %s5811_s30, 4  ;;  %s5900_s7 = int_to_ptr.vmem [resolvable:$true] %s205_s7 }
  0x14   : > { %s5812_s9 = smov [#allocation8]   ;;  %s7339_s2 = sld [smem:[#allocation65_spill]] }
  0x15   : > { %p5552_p9 = pneg %p5896_p8  ;;  %s221_s10 = sshll.u32 %s5812_s9, 4  ;;  %s5911_s10 = int_to_ptr.vmem [resolvable:$true] %s221_s10 }
  0x17   : > { %p5907_p11 = pnand %p5552_p9, %p7266_p1 }
  0x19   : > { %p5617_p13 = pneg %p5907_p11 }
  0x1a   : > { %s5615_s13 = scalar_lea.hbm %s7339_s2, 2048 }
  0x1b   : > { %p5616_p12 = scmp.ne.s32.totalorder %s7339_s2, %s5615_s13  ;;  %p5622_p5 = scmp.lt.u32.totalorder %s5615_s13, %s7339_s2 }
  0x1d   : > { %p5618_p0 = pnand %p5617_p13, %p5616_p12 }
  0x1f   : > { %p5619_p3 = pneg %p5618_p0 }
  0x21   : > { %p5624_p7 = pnand %p5622_p5, %p5619_p3 }
  0x23   : > { %5627 = shalt.err (!%p5624_p7)
}
  0x24   : > { %s5628_s18 = scalar_lea.vmem %s5900_s7, 2048  ;;  %p5636_p2 = scmp.lt.s32.totalorder %s5900_s7, %s5900_s7 }
  0x25   : > { %p5629_p9 = scmp.ne.s32.totalorder %s5900_s7, %s5628_s18  ;;  %p5637_p12 = scmp.lt.s32.totalorder %s5628_s18, %s5628_s18 }
  0x27   : > { %p5631_p10 = pnand %p5629_p9, %p5617_p13  ;;  %p5638_p0 = por %p5637_p12, %p5636_p2 }
  0x29   : > { %p5632_p1 = pneg %p5631_p10 }
  0x2b   : > { %p5639_p6 = pnand %p5638_p0, %p5632_p1 }
  0x2d   : > { %5642 = shalt.err (!%p5639_p6)
}
  0x2e   : > { %s7267_s19 = smov 128   ;;  %s7269_s20 = smov 8  }
  0x2f   : > { %5555 = dma.hbm_to_vmem [thread:$0]  (!%p5907_p11), %s7339_s2, 2048, %s5900_s7, [#allocation6], %s7267_s19, %s7267_s19, %s7269_s20  }
  0x30   : > { %s7340_s4 = sld [smem:[#allocation66_spill]] }
  0x36   : > { %s5643_s12 = scalar_lea.hbm %s7340_s4, 18432 }
  0x37   : > { %p5644_p1 = scmp.ne.s32.totalorder %s7340_s4, %s5643_s12  ;;  %p5650_p10 = scmp.lt.u32.totalorder %s5643_s12, %s7340_s4 }
  0x39   : > { %p5646_p2 = pnand %p5644_p1, %p5617_p13 }
  0x3b   : > { %p5647_p6 = pneg %p5646_p2 }
  0x3d   : > { %p5652_p3 = pnand %p5650_p10, %p5647_p6 }
  0x3f   : > { %5655 = shalt.err (!%p5652_p3)
}
  0x40   : > { %s5656_s7 = scalar_lea.vmem %s5911_s10, 18432  ;;  %p5664_p12 = scmp.lt.s32.totalorder %s5911_s10, %s5911_s10 }
  0x41   : > { %p5657_p5 = scmp.ne.s32.totalorder %s5911_s10, %s5656_s7  ;;  %p5665_p0 = scmp.lt.s32.totalorder %s5656_s7, %s5656_s7 }
  0x43   : > { %p5659_p7 = pnand %p5657_p5, %p5617_p13  ;;  %p5666_p1 = por %p5665_p0, %p5664_p12 }
  0x45   : > { %p5660_p9 = pneg %p5659_p7 }
  0x47   : > { %p5667_p2 = pnand %p5666_p1, %p5660_p9 }
  0x49   : > { %5670 = shalt.err (!%p5667_p2)
}
  0x4a   : > { %5558 = dma.hbm_to_vmem [thread:$0]  (!%p5907_p11), %s7340_s4, 18432, %s5911_s10, [#allocation9], %s7267_s19, %s7267_s19, %s7269_s20  }
  0x4b   : > { %s5972_s8 = sadd.s32 1, %s5809_s24   ;;  %s33_s26 = sadd.s32 1, %s5805_s23 }
  0x4c   : > { %s30_s30 = ssub.s32 %s5809_s24, %s5972_s8  ;;  %p40_p13 = scmp.ne.s32.totalorder %s5805_s23, %s5801_s22 }
  0x4d   : > { %p31_p6 = scmp.eq.s32.totalorder %s30_s30, 0  ;;  %p41_p10 = scmp.eq.s32.totalorder %s5809_s24, 0 }
  0x4e   : > { %p7341_p3 = scmp.eq.s32.totalorder %s5877_s25, 1  ;;  %p5572_p7 = scmp.lt.s32.totalorder %s5809_s24, 2 }
  0x4f   : > { %s5988_s11 = scalar_select %p31_p6, %s5805_s23, %s33_s26  }
  0x50   : > { %p5982_p5 = por %p7341_p3, %p40_p13  ;;  %p42_p9 = por %p41_p10, %p40_p13 }
  0x51   : > { %7343 = sst [smem:[#allocation16_spill]] %s5988_s11  ;;  %s5991_s12 = sand.u32 1, %s5805_s23  }
  0x52   : > { %s7342_s9 = scalar_select %p5982_p5, 1, 0 }
  0x53   : > { %s3474_s10 = sshll.u32 %s5991_s12, 8  ;;  %s3677_s13 = sshll.u32 %s5809_s24, 12 }
  0x54   : > { %s7344_s0 = sld [smem:[#allocation64_spill]]  ;;  %s242_s7 = scalar_lea.vmem [#allocation2], %s3474_s10 }
  0x55   : > { %s249_s17 = sshll.u32 %s242_s7, 4  ;;  %p6002_p11 = pnand %p5572_p7, %p42_p9  ;;  %s6000_s17 = int_to_ptr.vmem [resolvable:$true] %s249_s17 }
  0x56   : > { %s3477_s30 = sshll.u32 %s5991_s12, 7  ;;  %s239_s19 = scalar_lea.sflag [#allocation3], %s5991_s12 }
  0x57   : > { %p5673_p0 = pneg %p6002_p11 }
  0x5a   : > { %s5998_s16 = scalar_lea.hbm %s7344_s0, %s3677_s13  ;;  %s5676_s15 = scalar_lea.hbm %s7344_s0, 8192 }
  0x5b   : > { %s5671_s14 = scalar_lea.hbm %s5998_s16, 4096  ;;  %p5677_p13 = scmp.lt.u32.totalorder %s5998_s16, %s7344_s0 }
  0x5c   : > { %p5672_p12 = scmp.ne.s32.totalorder %s5998_s16, %s5671_s14  ;;  %p5678_p6 = scmp.lt.u32.totalorder %s5676_s15, %s5671_s14 }
  0x5d   : > { %p5680_p3 = scmp.lt.u32.totalorder %s5671_s14, %s5998_s16 }
  0x5e   : > { %p5674_p1 = pnand %p5673_p0, %p5672_p12  ;;  %p5679_p10 = por %p5678_p6, %p5677_p13 }
  0x60   : > { %p5675_p2 = pneg %p5674_p1  ;;  %p5681_p7 = por %p5680_p3, %p5679_p10 }
  0x62   : > { %p5682_p9 = pnand %p5681_p7, %p5675_p2 }
  0x64   : > { %5685 = shalt.err (!%p5682_p9)
}
  0x65   : > { %s5686_s26 = scalar_lea.vmem %s6000_s17, 4096  ;;  %s5815_s10 = smov [#allocation2]  }
  0x66   : > { %p5687_p12 = scmp.ne.s32.totalorder %s6000_s17, %s5686_s26  ;;  %s5691_s13 = sshll.u32 %s5815_s10, 4  ;;  %s5692_s13 = int_to_ptr.vmem [resolvable:$false] %s5691_s13 }
  0x67   : > { %s5693_s20 = scalar_lea.vmem %s5692_s13, 8192  ;;  %p5694_p4 = scmp.lt.s32.totalorder %s6000_s17, %s5692_s13 }
  0x68   : > { %p5689_p1 = pnand %p5687_p12, %p5673_p0  ;;  %p5695_p13 = scmp.lt.s32.totalorder %s5693_s20, %s5686_s26 }
  0x6a   : > { %p5690_p5 = pneg %p5689_p1  ;;  %p5696_p6 = por %p5695_p13, %p5694_p4 }
  0x6c   : > { %p5697_p10 = pnand %p5696_p6, %p5690_p5 }
  0x6e   : > { %5700 = shalt.err (!%p5697_p10)
}
  0x6f   : > { %s7346_s14 = smov 8   ;;  %s7347_s15 = smov 128  }
  0x70   : > { %5562 = dma.hbm_to_vmem [thread:$0]  (!%p6002_p11), %s5998_s16, 4096, %s6000_s17, %s239_s19, %s7347_s15, %s7347_s15, %s7346_s14  }
  0x71   : > { %s3678_s7 = sshll.u32 %s5809_s24, 11  ;;  %s263_s20 = scalar_lea.vmem [#allocation5], %s3477_s30 }
  0x72   : > { %s6043_s13 = scalar_lea.hbm %s7260_s1, %s3678_s7  ;;  %s270_s0 = sshll.u32 %s263_s20, 4  ;;  %s6047_s0 = int_to_ptr.vmem [resolvable:$true] %s270_s0 }
  0x73   : > { %s7348_s2 = sand.u32 1, %s5809_s24   ;;  %s5701_s11 = scalar_lea.hbm %s6043_s13, 2048 }
  0x74   : > { %s6051_s4 = scalar_lea.sflag [#allocation6], %s7348_s2  ;;  %p5702_p4 = scmp.ne.s32.totalorder %s6043_s13, %s5701_s11 }
  0x75   : > { %s5706_s12 = scalar_lea.hbm %s7260_s1, 4096  ;;  %p5707_p3 = scmp.lt.u32.totalorder %s6043_s13, %s7260_s1 }
  0x76   : > { %p5704_p5 = pnand %p5702_p4, %p5673_p0  ;;  %p5708_p7 = scmp.lt.u32.totalorder %s5706_s12, %s5701_s11 }
  0x77   : > { %p5710_p12 = scmp.lt.u32.totalorder %s5701_s11, %s6043_s13 }
  0x78   : > { %p5705_p2 = pneg %p5704_p5  ;;  %p5709_p9 = por %p5708_p7, %p5707_p3 }
  0x7a   : > { %p5711_p1 = por %p5710_p12, %p5709_p9 }
  0x7c   : > { %p5712_p13 = pnand %p5711_p1, %p5705_p2 }
  0x7e   : > { %5715 = shalt.err (!%p5712_p13)
}
  0x7f   : > { %s5716_s2 = scalar_lea.vmem %s6047_s0, 2048  ;;  %s5816_s30 = smov [#allocation5]  }
  0x80   : > { %p5717_p6 = scmp.ne.s32.totalorder %s6047_s0, %s5716_s2  ;;  %s5721_s10 = sshll.u32 %s5816_s30, 4  ;;  %s5722_s10 = int_to_ptr.vmem [resolvable:$false] %s5721_s10 }
  0x81   : > { %s5723_s26 = scalar_lea.vmem %s5722_s10, 4096  ;;  %p5724_p5 = scmp.lt.s32.totalorder %s6047_s0, %s5722_s10 }
  0x82   : > { %p5719_p10 = pnand %p5717_p6, %p5673_p0  ;;  %p5725_p3 = scmp.lt.s32.totalorder %s5723_s26, %s5716_s2 }
  0x84   : > { %p5720_p4 = pneg %p5719_p10  ;;  %p5726_p7 = por %p5725_p3, %p5724_p5 }
  0x86   : > { %p5727_p9 = pnand %p5726_p7, %p5720_p4 }
  0x88   : > { %5730 = shalt.err (!%p5727_p9)
}
  0x89   : > { %5565 = dma.hbm_to_vmem [thread:$0]  (!%p6002_p11), %s6043_s13, 2048, %s6047_s0, %s6051_s4, %s7347_s15, %s7347_s15, %s7346_s14  }
  0x8a   : > { %282 = sbr.rel (%p5896_p8) target bundleno = 959 (0x3bf), region = 44 }
  0x91   : > { %s6083_s11 = sand.u32 1, %s5801_s22   ;;  %p7349_p0 = scmp.ne.s32.totalorder %s7335_s27, 0 }
  0x92   : > { %s3481_s20 = sshll.u32 %s6083_s11, 8  ;;  %s285_s19 = scalar_lea.sflag [#allocation3], %s6083_s11 }
  0x93   : > { %s6089_s18 = scalar_lea.vmem [#allocation2], %s3481_s20 }
  0x94   : > { %5776 = dma.done.wait (%p7349_p0), %s285_s19, 4096  }
  0x95   : > { %5778 = vsyncadd (%p7349_p0), %s285_s19, 4294963200  ;;  %s293_s0 = sand.u32 1, %s5877_s25   ;;  %s3482_s4 = sshll.u32 %s6083_s11, 7 }
  0x96   : > { %s294_s29 = scalar_lea.sflag [#allocation6], %s293_s0  ;;  %s6097_s14 = scalar_lea.vmem [#allocation5], %s3482_s4 }
  0x97   : > { %5780 = dma.done.wait (%p7349_p0), %s294_s29, 2048  }
  0x98   : > { %5782 = vsyncadd (%p7349_p0), %s294_s29, 4294965248  ;;  %p7350_p8 = scmp.eq.s32.totalorder %s5877_s25, 0 }
  0x9a   : > { %5784 = dma.done.wait (%p7350_p8), [#allocation6], 2048   ;;  %p7351_p11 = pmov %p7350_p8 }
  0x9b   : > { %p7352_p2 = pmov %p7350_p8 }
  0x9c   : > { %5786 = vsyncadd (%p7351_p11), [#allocation6], 4294965248 }
  0x9d   : > { %5788 = dma.done.wait (%p7352_p2), [#allocation9], 18432   ;;  %p7353_p12 = pmov %p7352_p2 }
  0x9e   : > { %v371_v0 = vld [vmem:[#allocation7] sm:$0xff]  ;;  %v372_v1 = vld [vmem:[#allocation7 + $0x8] sm:$0xff]  ;;  %v373_v2 = vld [vmem:[#allocation7 + $0x10] sm:$0xff]  ;;  %s7122_s12 = scalar_lea.vmem [#allocation10], %s3481_s20  ;;  %s3679_s17 = sshll.u32 %s5877_s25, 12 }
  0x9f   : > { %5790 = vsyncadd (%p7353_p12), [#allocation9], 4294948864  ;;  %v4962_v3 = vpack.c.bf16 %v372_v1, %v371_v0  ;;  %v374_v4 = vld [vmem:[#allocation7 + $0x18] sm:$0xff]  ;;  %v375_v6 = vld [vmem:[#allocation7 + $0x20] sm:$0xff]  ;;  %s3354_s7 = sshll.u32 %s7122_s12, 4  ;;  %s7210_s10 = scalar_lea.hbm %s7265_s6, %s3679_s17  ;;  %s7212_s7 = int_to_ptr.vmem [resolvable:$true] %s3354_s7 }
  0xa0   : > { %v4966_v5 = vpack.c.bf16 %v374_v4, %v373_v2  ;;  %v376_v7 = vld [vmem:[#allocation7 + $0x28] sm:$0xff]  ;;  %v339_v9 = vld [vmem:[%s6089_s18] sm:$0xff]  ;;  %v377_v10 = vld [vmem:[#allocation7 + $0x30] sm:$0xff]  ;;  %s3341_s25 = scalar_lea.sflag [#allocation4], %s6083_s11  ;;  %s5731_s26 = scalar_lea.vmem %s7212_s7, 4096 }
  0xa1   : > { %4963 = vmatprep.subr.bf16.mxu0 %v4962_v3  ;;  %v4970_v8 = vpack.c.bf16 %v376_v7, %v375_v6  ;;  %v378_v11 = vld [vmem:[#allocation7 + $0x38] sm:$0xff]  ;;  %4194 = vmatprep.mubr.f32.mxu0 %v339_v9  ;;  %v379_v13 = vld [vmem:[#allocation7 + $0x40] sm:$0xff]  ;;  %v380_v14 = vld [vmem:[#allocation7 + $0x48] sm:$0xff]  ;;  %p5732_p1 = scmp.ne.s32.totalorder %s7212_s7, %s5731_s26  ;;  %p7453_p13 = scmp.ne.s32.totalorder %s7342_s9, 0 }
  0xa2   : > { %4965 = vmatpush3.bf16.msra.mxu0 %v4962_v3  ;;  %v4974_v12 = vpack.c.bf16 %v378_v11, %v377_v10  ;;  %v4978_v15 = vpack.c.bf16 %v380_v14, %v379_v13  ;;  %v381_v16 = vld [vmem:[#allocation7 + $0x50] sm:$0xff]  ;;  %v382_v17 = vld [vmem:[#allocation7 + $0x58] sm:$0xff]  ;;  %v1904_v18 = vld [vmem:[#allocation8 + $0x200] sm:$0xff]  ;;  %s5818_s20 = smov [#allocation10]  }
  0xa3   : > { %4967 = vmatprep.subr.bf16.mxu0 %v4966_v5  ;;  %v4982_v19 = vpack.c.bf16 %v382_v17, %v381_v16  ;;  %v383_v20 = vld [vmem:[#allocation7 + $0x60] sm:$0xff]  ;;  %v1905_v21 = vld [vmem:[#allocation8 + $0x208] sm:$0xff]  ;;  %v1906_v24 = vld [vmem:[#allocation8 + $0x210] sm:$0xff]  ;;  %p5733_p6 = pnand %p5732_p1, %p7453_p13  ;;  %s5735_s19 = sshll.u32 %s5818_s20, 4  ;;  %s5736_s19 = int_to_ptr.vmem [resolvable:$false] %s5735_s19 }
  0xa4   : > { %v384_v22 = vld [vmem:[#allocation7 + $0x68] sm:$0xff]  ;;  %v5122_v23 = vpack.c.bf16 %v1905_v21, %v1904_v18  ;;  %v1907_v25 = vld [vmem:[#allocation8 + $0x218] sm:$0xff]  ;;  %v1908_v27 = vld [vmem:[#allocation8 + $0x220] sm:$0xff]  ;;  %p5738_p4 = scmp.lt.s32.totalorder %s7212_s7, %s5736_s19 }
  0xa5   : > { %v5126_v26 = vpack.c.bf16 %v1907_v25, %v1906_v24  ;;  %v1909_v28 = vld [vmem:[#allocation8 + $0x228] sm:$0xff]  ;;  %v4986_v29 = vpack.c.bf16 %v384_v22, %v383_v20  ;;  %v385_v30 = vld [vmem:[#allocation7 + $0x70] sm:$0xff]  ;;  %v386_v31 = vld [vmem:[#allocation7 + $0x78] sm:$0xff]  ;;  %p5734_p10 = pneg %p5733_p6 }
  0xa6   : > { %4969 = vmatpush3.bf16.msra.mxu0 %v4966_v5  ;;  %5123 = vmatprep.subr.bf16.mxu1 %v5122_v23  ;;  %v5130_v32 = vpack.c.bf16 %v1909_v28, %v1908_v27  ;;  %v1910_v33 = vld [vmem:[#allocation8 + $0x230] sm:$0xff]  ;;  %v1911_v34 = vld [vmem:[#allocation8 + $0x238] sm:$0xff]  ;;  %v4990_v35 = vpack.c.bf16 %v386_v31, %v385_v30  ;;  %v892_v36 = vld [vmem:[#allocation8 + $0x80] sm:$0xff] }
  0xa7   : > { %4971 = vmatprep.subr.bf16.mxu0 %v4970_v8  ;;  %5125 = vmatpush3.bf16.msra.mxu1 %v5122_v23  ;;  %v893_v37 = vld [vmem:[#allocation8 + $0x88] sm:$0xff]  ;;  %v5134_v38 = vpack.c.bf16 %v1911_v34, %v1910_v33  ;;  %v1912_v39 = vld [vmem:[#allocation8 + $0x240] sm:$0xff]  ;;  %v894_v42 = vld [vmem:[#allocation8 + $0x90] sm:$0xff] }
  0xa8   : > { %5127 = vmatprep.subr.bf16.mxu1 %v5126_v26  ;;  %v1913_v40 = vld [vmem:[#allocation8 + $0x248] sm:$0xff]  ;;  %v4994_v41 = vpack.c.bf16 %v893_v37, %v892_v36  ;;  %v895_v43 = vld [vmem:[#allocation8 + $0x98] sm:$0xff]  ;;  %v1914_v45 = vld [vmem:[#allocation8 + $0x250] sm:$0xff] }
  0xa9   : > { %v5138_v44 = vpack.c.bf16 %v1913_v40, %v1912_v39  ;;  %v1915_v46 = vld [vmem:[#allocation8 + $0x258] sm:$0xff]  ;;  %v340_v47 = vld [vmem:[%s6089_s18 + $0x8] sm:$0xff]  ;;  %v341_v48 = vld [vmem:[%s6089_s18 + $0x10] sm:$0xff]  ;;  %v4998_v49 = vpack.c.bf16 %v895_v43, %v894_v42  ;;  %v7273_v40 = vmov 0.0  }
  0xaa   : > { %4973 = vmatpush3.bf16.msra.mxu0 %v4970_v8  ;;  %v896_v50 = vld [vmem:[#allocation8 + $0xa0] sm:$0xff]  ;;  %v897_v51 = vld [vmem:[#allocation8 + $0xa8] sm:$0xff]  ;;  %v5142_v52 = vpack.c.bf16 %v1915_v46, %v1914_v45  ;;  %v342_v55 = vld [vmem:[%s6089_s18 + $0x18] sm:$0xff] }
  0xab   : > { %4975 = vmatprep.subr.bf16.mxu0 %v4974_v12  ;;  %5129 = vmatpush3.bf16.msra.mxu1 %v5126_v26  ;;  %v1916_v53 = vld [vmem:[#allocation8 + $0x260] sm:$0xff]  ;;  %v1917_v54 = vld [vmem:[#allocation8 + $0x268] sm:$0xff]  ;;  %v5002_v57 = vpack.c.bf16 %v897_v51, %v896_v50  ;;  %v898_v58 = vld [vmem:[#allocation8 + $0xb0] sm:$0xff] }
  0xac   : > { %5131 = vmatprep.subr.bf16.mxu1 %v5130_v32  ;;  %v343_v56 = vld [vmem:[%s6089_s18 + $0x20] sm:$0xff]  ;;  %v899_v59 = vld [vmem:[#allocation8 + $0xb8] sm:$0xff]  ;;  %v5146_v60 = vpack.c.bf16 %v1917_v54, %v1916_v53  ;;  %v344_v61 = vld [vmem:[%s6089_s18 + $0x28] sm:$0xff] }
  0xad   : > { %v345_v62 = vld [vmem:[%s6089_s18 + $0x30] sm:$0xff]  ;;  %v5006_v63 = vpack.c.bf16 %v899_v59, %v898_v58  ;;  %v900_v0 = vld [vmem:[#allocation8 + $0xc0] sm:$0xff]  ;;  %v901_v1 = vld [vmem:[#allocation8 + $0xc8] sm:$0xff] }
  0xae   : > { %4977 = vmatpush3.bf16.msra.mxu0 %v4974_v12  ;;  %v346_v2 = vld [vmem:[%s6089_s18 + $0x38] sm:$0xff]  ;;  %v347_v3 = vld [vmem:[%s6089_s18 + $0x40] sm:$0xff]  ;;  %v5010_v4 = vpack.c.bf16 %v901_v1, %v900_v0  ;;  %v902_v5 = vld [vmem:[#allocation8 + $0xd0] sm:$0xff] }
  0xaf   : > { %4979 = vmatprep.subr.bf16.mxu0 %v4978_v15  ;;  %5133 = vmatpush3.bf16.msra.mxu1 %v5130_v32  ;;  %v903_v6 = vld [vmem:[#allocation8 + $0xd8] sm:$0xff]  ;;  %v348_v7 = vld [vmem:[%s6089_s18 + $0x48] sm:$0xff]  ;;  %v349_v8 = vld [vmem:[%s6089_s18 + $0x50] sm:$0xff] }
  0xb0   : > { %5135 = vmatprep.subr.bf16.mxu1 %v5134_v38  ;;  %v5014_v9 = vpack.c.bf16 %v903_v6, %v902_v5  ;;  %v904_v10 = vld [vmem:[#allocation8 + $0xe0] sm:$0xff]  ;;  %v905_v11 = vld [vmem:[#allocation8 + $0xe8] sm:$0xff]  ;;  %v350_v12 = vld [vmem:[%s6089_s18 + $0x58] sm:$0xff] }
  0xb1   : > { %v351_v13 = vld [vmem:[%s6089_s18 + $0x60] sm:$0xff]  ;;  %v5018_v14 = vpack.c.bf16 %v905_v11, %v904_v10  ;;  %v907_v16 = vld [vmem:[#allocation8 + $0xf8] sm:$0xff]  ;;  %v352_v17 = vld [vmem:[%s6089_s18 + $0x68] sm:$0xff] }
  0xb2   : > { %4981 = vmatpush3.bf16.msra.mxu0 %v4978_v15  ;;  %v906_v15 = vld [vmem:[#allocation8 + $0xf0] sm:$0xff]  ;;  %v354_v20 = vld [vmem:[%s6089_s18 + $0x78] sm:$0xff]  ;;  %v355_v21 = vld [vmem:[%s6089_s18 + $0x80] sm:$0xff] }
  0xb3   : > { %4983 = vmatprep.subr.bf16.mxu0 %v4982_v19  ;;  %5137 = vmatpush3.bf16.msra.mxu1 %v5134_v38  ;;  %v353_v18 = vld [vmem:[%s6089_s18 + $0x70] sm:$0xff]  ;;  %v356_v22 = vld [vmem:[%s6089_s18 + $0x88] sm:$0xff]  ;;  %v358_v24 = vld [vmem:[%s6089_s18 + $0x98] sm:$0xff] }
  0xb4   : > { %5139 = vmatprep.subr.bf16.mxu1 %v5138_v44  ;;  %v357_v23 = vld [vmem:[%s6089_s18 + $0x90] sm:$0xff]  ;;  %v359_v25 = vld [vmem:[%s6089_s18 + $0xa0] sm:$0xff]  ;;  %v360_v26 = vld [vmem:[%s6089_s18 + $0xa8] sm:$0xff] }
  0xb5   : > { %v361_v27 = vld [vmem:[%s6089_s18 + $0xb0] sm:$0xff]  ;;  %v362_v28 = vld [vmem:[%s6089_s18 + $0xb8] sm:$0xff]  ;;  %v364_v30 = vld [vmem:[%s6089_s18 + $0xc8] sm:$0xff] }
  0xb6   : > { %4985 = vmatpush3.bf16.msra.mxu0 %v4982_v19  ;;  %v5022_v19 = vpack.c.bf16 %v907_v16, %v906_v15  ;;  %v365_v31 = vld [vmem:[%s6089_s18 + $0xd0] sm:$0xff]  ;;  %v366_v32 = vld [vmem:[%s6089_s18 + $0xd8] sm:$0xff]  ;;  %v367_v33 = vld [vmem:[%s6089_s18 + $0xe0] sm:$0xff] }
  0xb7   : > { %4987 = vmatprep.subr.bf16.mxu0 %v4986_v29  ;;  %5141 = vmatpush3.bf16.msra.mxu1 %v5138_v44  ;;  %v368_v34 = vld [vmem:[%s6089_s18 + $0xe8] sm:$0xff]  ;;  %v370_v36 = vld [vmem:[%s6089_s18 + $0xf8] sm:$0xff]  ;;  %v1918_v37 = vld [vmem:[#allocation8 + $0x270] sm:$0xff] }
  0xb8   : > { %5143 = vmatprep.subr.bf16.mxu1 %v5142_v52  ;;  %v1919_v38 = vld [vmem:[#allocation8 + $0x278] sm:$0xff]  ;;  %v2178_v42 = vld [vmem:[#allocation8 + $0x288] sm:$0xff]  ;;  %v876_v44 = vld [vmem:[#allocation8] sm:$0xff] }
  0xb9   : > { %v5150_v39 = vpack.c.bf16 %v1919_v38, %v1918_v37  ;;  %v877_v45 = vld [vmem:[#allocation8 + $0x8] sm:$0xff]  ;;  %v880_v50 = vld [vmem:[#allocation8 + $0x20] sm:$0xff]  ;;  %v882_v53 = vld [vmem:[#allocation8 + $0x30] sm:$0xff] }
  0xba   : > { %4989 = vmatpush3.bf16.msra.mxu0 %v4986_v29  ;;  %v363_v29 = vld [vmem:[%s6089_s18 + $0xc0] sm:$0xff]  ;;  %v5026_v46 = vpack.c.bf16 %v877_v45, %v876_v44  ;;  %v881_v51 = vld [vmem:[#allocation8 + $0x28] sm:$0xff]  ;;  %v883_v54 = vld [vmem:[#allocation8 + $0x38] sm:$0xff] }
  0xbb   : > { %4991 = vmatprep.subr.bf16.mxu0 %v4990_v35  ;;  %5145 = vmatpush3.bf16.msra.mxu1 %v5142_v52  ;;  %v5034_v52 = vpack.c.bf16 %v881_v51, %v880_v50  ;;  %v886_v59 = vld [vmem:[#allocation8 + $0x50] sm:$0xff]  ;;  %v1359_v5 = vld [vmem:[#allocation8 + $0x108] sm:$0xff] }
  0xbc   : > { %5147 = vmatprep.subr.bf16.mxu1 %v5146_v60  ;;  %v890_v1 = vld [vmem:[#allocation8 + $0x70] sm:$0xff]  ;;  %v620_v10 = vld [vmem:[%s6097_s14 + $0x8] sm:$0xff] }
  0xbd   : > { %v2179_v16 = vld [vmem:[#allocation8 + $0x290] sm:$0xff] }
  0xbe   : > { %4993 = vmatpush3.bf16.msra.mxu0 %v4990_v35  ;;  %v369_v35 = vld [vmem:[%s6089_s18 + $0xf0] sm:$0xff]  ;;  %s5737_s18 = scalar_lea.vmem %s5736_s19, 8192 }
  0xbf   : > { %4995 = vmatprep.subr.bf16.mxu0 %v4994_v41  ;;  %5149 = vmatpush3.bf16.msra.mxu1 %v5146_v60  ;;  %v887_v60 = vld [vmem:[#allocation8 + $0x58] sm:$0xff]  ;;  %v2183_v45 = vld [vmem:[#allocation8 + $0x2b0] sm:$0xff]  ;;  %p5739_p5 = scmp.lt.s32.totalorder %s5737_s18, %s5731_s26 }
  0xc0   : > { %5151 = vmatprep.subr.bf16.mxu1 %v5150_v39 }
  0xc1   : > { %4195 = vmatmul.mubr.f32.vlgmr.msra.gmra.mrb[0].mxu0 %v340_v47  ;;  %v878_v47 = vld [vmem:[#allocation8 + $0x10] sm:$0xff]  ;;  %p5740_p3 = por %p5739_p5, %p5738_p4 }
  0xc2   : > { %4197 = vmatprep.mubr.f32.mxu0 %v341_v48  ;;  %4997 = vmatpush3.bf16.msra.mxu0 %v4994_v41  ;;  %v2177_v41 = vld [vmem:[#allocation8 + $0x280] sm:$0xff]  ;;  %v879_v48 = vld [vmem:[#allocation8 + $0x18] sm:$0xff] }
  0xc3   : > { %4999 = vmatprep.subr.bf16.mxu0 %v4998_v49  ;;  %5153 = vmatpush3.bf16.msra.mxu1 %v5150_v39  ;;  %v6145_v43 = vpack.c.bf16 %v2178_v42, %v2177_v41  ;;  %v621_v39 = vld [vmem:[%s6097_s14 + $0x10] sm:$0xff]  ;;  %p5741_p7 = pnand %p5740_p3, %p5734_p10 }
  0xc5   : > { %4198 = vmatmul.mubr.f32.gmra.mrb[2].mxu0 %v342_v55  ;;  %5155 = vmatprep.subr.bf16.mxu1 %v6145_v43  ;;  %v5038_v55 = vpack.c.bf16 %v883_v54, %v882_v53  ;;  %v2185_v54 = vld [vmem:[#allocation8 + $0x2c0] sm:$0xff] }
  0xc6   : > { %4200 = vmatprep.mubr.f32.mxu0 %v343_v56  ;;  %5001 = vmatpush3.bf16.msra.mxu0 %v4998_v49  ;;  %v5030_v49 = vpack.c.bf16 %v879_v48, %v878_v47  ;;  %v884_v56 = vld [vmem:[#allocation8 + $0x40] sm:$0xff] }
  0xc7   : > { %5003 = vmatprep.subr.bf16.mxu0 %v5002_v57 }
  0xc9   : > { %4201 = vmatmul.mubr.f32.gmra.mrb[4].mxu0 %v344_v61  ;;  %v5046_v61 = vpack.c.bf16 %v887_v60, %v886_v59 }
  0xca   : > { %4203 = vmatprep.mubr.f32.mxu0 %v345_v62  ;;  %5005 = vmatpush3.bf16.msra.mxu0 %v5002_v57  ;;  %v885_v57 = vld [vmem:[#allocation8 + $0x48] sm:$0xff]  ;;  %v888_v62 = vld [vmem:[#allocation8 + $0x60] sm:$0xff] }
  0xcb   : > { %5007 = vmatprep.subr.bf16.mxu0 %v5006_v63  ;;  %v5042_v58 = vpack.c.bf16 %v885_v57, %v884_v56 }
  0xcd   : > { %4204 = vmatmul.mubr.f32.gmra.mrb[6].mxu0 %v346_v2  ;;  %v891_v2 = vld [vmem:[#allocation8 + $0x78] sm:$0xff] }
  0xce   : > { %4206 = vmatprep.mubr.f32.mxu0 %v347_v3  ;;  %5009 = vmatpush3.bf16.msra.mxu0 %v5006_v63  ;;  %v889_v63 = vld [vmem:[#allocation8 + $0x68] sm:$0xff]  ;;  %v5054_v3 = vpack.c.bf16 %v891_v2, %v890_v1  ;;  %v2187_v1 = vld [vmem:[#allocation8 + $0x2d0] sm:$0xff]  ;;  %v2188_v2 = vld [vmem:[#allocation8 + $0x2d8] sm:$0xff] }
  0xcf   : > { %5011 = vmatprep.subr.bf16.mxu0 %v5010_v4  ;;  %v5050_v0 = vpack.c.bf16 %v889_v63, %v888_v62  ;;  %v624_v63 = vld [vmem:[%s6097_s14 + $0x28] sm:$0xff] }
  0xd1   : > { %4207 = vmatmul.mubr.f32.gmra.mrb[8].mxu0 %v348_v7  ;;  %v667_v7 = vlaneseq }
  0xd2   : > { %4209 = vmatprep.mubr.f32.mxu0 %v349_v8  ;;  %5013 = vmatpush3.bf16.msra.mxu0 %v5010_v4  ;;  %v1358_v4 = vld [vmem:[#allocation8 + $0x100] sm:$0xff] }
  0xd3   : > { %5015 = vmatprep.subr.bf16.mxu0 %v5014_v9  ;;  %v6148_v6 = vpack.c.bf16 %v1359_v5, %v1358_v4  ;;  %v6154_v8 = vld [vmem:[%s7262_s3] ss:$0 sm:$0xff]  ;;  %v6157_v11 = vshrl.u32 %v667_v7, 7 }
  0xd5   : > { %4210 = vmatmul.mubr.f32.gmra.mrb[10].mxu0 %v350_v12  ;;  %vm704_vm0 = vcmp.lt.s32.totalorder %v6157_v11, 1  ;;  %vm807_vm1 = vcmp.lt.s32.totalorder %v6157_v11, 7  ;;  %vm3680_vm2 = vcmp.ne.s32.totalorder %v6157_v11, 0 }
  0xd6   : > { %4212 = vmatprep.mubr.f32.mxu0 %v351_v13  ;;  %5017 = vmatpush3.bf16.msra.mxu0 %v5014_v9 }
  0xd7   : > { %5019 = vmatprep.subr.bf16.mxu0 %v5018_v14 }
  0xd9   : > { %4213 = vmatmul.mubr.f32.gmra.mrb[12].mxu0 %v352_v17  ;;  %v2180_v17 = vld [vmem:[#allocation8 + $0x298] sm:$0xff] }
  0xda   : > { %4215 = vmatprep.mubr.f32.mxu0 %v353_v18  ;;  %5021 = vmatpush3.bf16.msra.mxu0 %v5018_v14  ;;  %v619_v14 = vld [vmem:[%s6097_s14] sm:$0xff] }
  0xdb   : > { %5023 = vmatprep.subr.bf16.mxu0 %v5022_v19 }
  0xdd   : > { %4216 = vmatmul.mubr.f32.gmra.mrb[14].mxu0 %v354_v20 }
  0xde   : > { %4218 = vmatprep.mubr.f32.mxu0 %v355_v21  ;;  %5025 = vmatpush3.bf16.msra.mxu0 %v5022_v19 }
  0xdf   : > { %5027 = vmatprep.subr.bf16.mxu0 %v5026_v46 }
  0xe1   : > { %4219 = vmatmul.mubr.f32.gmra.mrb[16].mxu0 %v356_v22 }
  0xe2   : > { %4221 = vmatprep.mubr.f32.mxu0 %v357_v23  ;;  %v5158_v23 = vpack.c.bf16 %v2180_v17, %v2179_v16 }
  0xe5   : > { %4222 = vmatmul.mubr.f32.gmra.mrb[18].mxu0 %v358_v24 }
  0xe6   : > { %4224 = vmatprep.mubr.f32.mxu0 %v359_v25 }
  0xe9   : > { %4225 = vmatmul.mubr.f32.gmra.mrb[20].mxu0 %v360_v26 }
  0xea   : > { %4227 = vmatprep.mubr.f32.mxu0 %v361_v27  ;;  %v2181_v27 = vld [vmem:[#allocation8 + $0x2a0] sm:$0xff] }
  0xed   : > { %4228 = vmatmul.mubr.f32.gmra.mrb[22].mxu0 %v362_v28  ;;  %v2182_v28 = vld [vmem:[#allocation8 + $0x2a8] sm:$0xff] }
  0xee   : > { %4230 = vmatprep.mubr.f32.mxu0 %v363_v29  ;;  %v5162_v41 = vpack.c.bf16 %v2182_v28, %v2181_v27 }
  0xf1   : > { %4231 = vmatmul.mubr.f32.gmra.mrb[24].mxu0 %v364_v30 }
  0xf2   : > { %4233 = vmatprep.mubr.f32.mxu0 %v365_v31 }
  0xf5   : > { %4234 = vmatmul.mubr.f32.gmra.mrb[26].mxu0 %v366_v32 }
  0xf6   : > { %4236 = vmatprep.mubr.f32.mxu0 %v367_v33 }
  0xf9   : > { %4237 = vmatmul.mubr.f32.gmra.mrb[28].mxu0 %v368_v34 }
  0xfa   : > { %4239 = vmatprep.mubr.f32.mxu0 %v369_v35 }
  0xfd   : > { %4240 = vmatmul.mubr.f32.gmra.mrb[30].mxu0 %v370_v36 }
  0xfe   : > { %4274 = vmatprep.mubr.f32.mxu0 %v7273_v40 }
 0x101   : > { %4275 = vmatmul.mubr.f32.vlgmr.msra.gmra.mrb[32].mxu0 %v7273_v40 }
 0x102   : > { %5029 = vmatpush3.bf16.msra.mxu0 %v5026_v46  ;;  %v2184_v46 = vld [vmem:[#allocation8 + $0x2b8] sm:$0xff] }
 0x103   : > { %5031 = vmatprep.subr.bf16.mxu0 %v5030_v49 }
 0x106   : > { %5033 = vmatpush3.bf16.msra.mxu0 %v5030_v49 }
 0x107   : > { %5035 = vmatprep.subr.bf16.mxu0 %v5034_v52 }
 0x10a   : > { %5037 = vmatpush3.bf16.msra.mxu0 %v5034_v52  ;;  %v5166_v52 = vpack.c.bf16 %v2184_v46, %v2183_v45 }
 0x10b   : > { %5039 = vmatprep.subr.bf16.mxu0 %v5038_v55 }
 0x10e   : > { %5041 = vmatpush3.bf16.msra.mxu0 %v5038_v55  ;;  %v2186_v55 = vld [vmem:[#allocation8 + $0x2c8] sm:$0xff] }
 0x10f   : > { %5043 = vmatprep.subr.bf16.mxu0 %v5042_v58  ;;  %v5170_v62 = vpack.c.bf16 %v2186_v55, %v2185_v54 }
 0x112   : > { %5045 = vmatpush3.bf16.msra.mxu0 %v5042_v58 }
 0x113   : > { %5047 = vmatprep.subr.bf16.mxu0 %v5046_v61 }
 0x116   : > { %5049 = vmatpush3.bf16.msra.mxu0 %v5046_v61  ;;  %v623_v61 = vld [vmem:[%s6097_s14 + $0x20] sm:$0xff] }
 0x117   : > { %5051 = vmatprep.subr.bf16.mxu0 %v5050_v0 }
 0x11a   : > { %5053 = vmatpush3.bf16.msra.mxu0 %v5050_v0 }
 0x11b   : > { %5055 = vmatprep.subr.bf16.mxu0 %v5054_v3 }
 0x11e   : > { %5057 = vmatpush3.bf16.msra.mxu0 %v5054_v3 }
 0x11f   : > { %5059 = vmatprep.subr.bf16.mxu0 %v6148_v6 }
 0x194   : > { %v4196_v9 = vpop.f32.mrb[0].mxu0 }
 0x195   : > { %v466_v12 = vadd.f32 %v4196_v9, %v6154_v8  ;;  %v460_v13 = vpop.f32.mrb[1].mxu0 }
 0x196   : > { %v461_v15 = vadd.f32 %v6154_v8, %v460_v13  ;;  %v2189_v13 = vld [vmem:[#allocation8 + $0x2e0] sm:$0xff] }
 0x197   : > { %v636_v18 = vadd.f32 %v620_v10, %v466_v12 }
 0x198   : > { %v635_v19 = vadd.f32 %v619_v14, %v461_v15  ;;  %v4199_v20 = vpop.f32.mrb[2].mxu0 }
 0x199   : > { %v476_v21 = vadd.f32 %v4199_v20, %v6154_v8  ;;  %v470_v22 = vpop.f32.mrb[3].mxu0  ;;  %v688_v24 = vrot.slane %v636_v18, 7  ;;  %v791_v25 = vrot.slane %v636_v18, 1  ;;  %v625_v20 = vld [vmem:[%s6097_s14 + $0x30] sm:$0xff] }
 0x19a   : > { %v471_v26 = vadd.f32 %v6154_v8, %v470_v22  ;;  %4277 = vmatprep.mubr.f32.mxu0 %v635_v19  ;;  %4594 = vmatprep.mubr.f32.mxu1 %v635_v19  ;;  %v672_v29 = vrot.slane %v635_v19, 7  ;;  %v775_v30 = vrot.slane %v635_v19, 1  ;;  %v626_v22 = vld [vmem:[%s6097_s14 + $0x38] sm:$0xff] }
 0x19b   : > { %4278 = vmatmul.mubr.f32.gmra.mrb[34].mxu0 %v636_v18  ;;  %4595 = vmatmul.mubr.f32.vlgmr.msra.gmra.mrb[0].mxu1 %v636_v18  ;;  %v6181_v36 = vadd.f32 %v620_v10, %v476_v21  ;;  %v5174_v10 = vpack.c.bf16 %v2188_v2, %v2187_v1  ;;  %v629_v2 = vld [vmem:[%s6097_s14 + $0x50] sm:$0xff] }
 0x19c   : > { %v6166_v31 = vadd.f32 %v619_v14, %v471_v26  ;;  %5157 = vmatpush3.bf16.msra.mxu1 %v6145_v43  ;;  %v4202_v32 = vpop.f32.mrb[4].mxu0  ;;  %v6171_v33 = vsel %vm704_vm0, %v688_v24, %v672_v29  ;;  %v6175_v34 = vsel %vm807_vm1, %v775_v30, %v791_v25  ;;  %v6179_v35 = vsel %vm704_vm0, %v672_v29, %v688_v24  ;;  %v622_v43 = vld [vmem:[%s6097_s14 + $0x18] sm:$0xff]  ;;  %v2190_v14 = vld [vmem:[#allocation8 + $0x2e8] sm:$0xff]  ;;  %v2191_v24 = vld [vmem:[#allocation8 + $0x2f0] sm:$0xff] }
 0x19d   : > { %7355 = vst [vmem:[#allocation18_spill] sm:$0xff] %v6171_v33  ;;  %7356 = vst [vmem:[#allocation19_spill] sm:$0xff] %v6179_v35  ;;  %v486_v37 = vadd.f32 %v4202_v32, %v6154_v8  ;;  %v480_v38 = vpop.f32.mrb[5].mxu0  ;;  %5159 = vmatprep.subr.bf16.mxu1 %v5158_v23  ;;  %v6187_v42 = vsel %vm807_vm1, %v791_v25, %v775_v30  ;;  %v5178_v21 = vpack.c.bf16 %v2190_v14, %v2189_v13  ;;  %v2192_v25 = vld [vmem:[#allocation8 + $0x2f8] sm:$0xff] }
 0x19e   : > { %7354 = vst [vmem:[#allocation17_spill] sm:$0xff] %v6166_v31  ;;  %7357 = vst [vmem:[#allocation20_spill] sm:$0xff] %v6181_v36  ;;  %v481_v44 = vadd.f32 %v6154_v8, %v480_v38  ;;  %4280 = vmatprep.mubr.f32.mxu0 %v6166_v31  ;;  %4597 = vmatprep.mubr.f32.mxu1 %v6166_v31  ;;  %v5182_v32 = vpack.c.bf16 %v2192_v25, %v2191_v24  ;;  %v2450_v38 = vld [vmem:[#allocation8 + $0x300] sm:$0xff]  ;;  %v632_v24 = vld [vmem:[%s6097_s14 + $0x68] sm:$0xff] }
 0x19f   : > { %4281 = vmatmul.mubr.f32.gmra.mrb[36].mxu0 %v6181_v36  ;;  %4598 = vmatmul.mubr.f32.gmra.mrb[2].mxu1 %v6181_v36  ;;  %v6197_v49 = vadd.f32 %v622_v43, %v486_v37 }
 0x1a0   : > { %v6195_v47 = vadd.f32 %v621_v39, %v481_v44  ;;  %v4205_v48 = vpop.f32.mrb[6].mxu0  ;;  %5161 = vmatpush3.bf16.msra.mxu1 %v5158_v23 }
 0x1a1   : > { %7359 = vst [vmem:[#allocation22_spill] sm:$0xff] %v6197_v49  ;;  %v496_v50 = vadd.f32 %v4205_v48, %v6154_v8  ;;  %v490_v51 = vpop.f32.mrb[7].mxu0  ;;  %5163 = vmatprep.subr.bf16.mxu1 %v5162_v41  ;;  %v627_v48 = vld [vmem:[%s6097_s14 + $0x40] sm:$0xff] }
 0x1a2   : > { %7358 = vst [vmem:[#allocation21_spill] sm:$0xff] %v6195_v47  ;;  %v491_v53 = vadd.f32 %v6154_v8, %v490_v51  ;;  %4283 = vmatprep.mubr.f32.mxu0 %v6195_v47  ;;  %4600 = vmatprep.mubr.f32.mxu1 %v6195_v47  ;;  %v628_v51 = vld [vmem:[%s6097_s14 + $0x48] sm:$0xff] }
 0x1a3   : > { %4284 = vmatmul.mubr.f32.gmra.mrb[38].mxu0 %v6197_v49  ;;  %4601 = vmatmul.mubr.f32.gmra.mrb[4].mxu1 %v6197_v49  ;;  %v6207_v58 = vadd.f32 %v622_v43, %v496_v50 }
 0x1a4   : > { %v6205_v56 = vadd.f32 %v621_v39, %v491_v53  ;;  %v4208_v57 = vpop.f32.mrb[8].mxu0  ;;  %5165 = vmatpush3.bf16.msra.mxu1 %v5162_v41  ;;  %v2451_v39 = vld [vmem:[#allocation8 + $0x308] sm:$0xff] }
 0x1a5   : > { %7361 = vst [vmem:[#allocation24_spill] sm:$0xff] %v6207_v58  ;;  %v506_v59 = vadd.f32 %v4208_v57, %v6154_v8  ;;  %v500_v60 = vpop.f32.mrb[9].mxu0  ;;  %5167 = vmatprep.subr.bf16.mxu1 %v5166_v52  ;;  %v6255_v50 = vpack.c.bf16 %v2451_v39, %v2450_v38 }
 0x1a6   : > { %7360 = vst [vmem:[#allocation23_spill] sm:$0xff] %v6205_v56  ;;  %v501_v0 = vadd.f32 %v6154_v8, %v500_v60  ;;  %4286 = vmatprep.mubr.f32.mxu0 %v6205_v56  ;;  %4603 = vmatprep.mubr.f32.mxu1 %v6205_v56 }
 0x1a7   : > { %4287 = vmatmul.mubr.f32.gmra.mrb[40].mxu0 %v6207_v58  ;;  %4604 = vmatmul.mubr.f32.gmra.mrb[6].mxu1 %v6207_v58  ;;  %v6219_v5 = vadd.f32 %v624_v63, %v506_v59 }
 0x1a8   : > { %v6217_v3 = vadd.f32 %v623_v61, %v501_v0  ;;  %v4211_v4 = vpop.f32.mrb[10].mxu0  ;;  %5169 = vmatpush3.bf16.msra.mxu1 %v5166_v52 }
 0x1a9   : > { %7363 = vst [vmem:[#allocation26_spill] sm:$0xff] %v6219_v5  ;;  %v516_v7 = vadd.f32 %v4211_v4, %v6154_v8  ;;  %v510_v9 = vpop.f32.mrb[11].mxu0  ;;  %5171 = vmatprep.subr.bf16.mxu1 %v5170_v62  ;;  %v630_v4 = vld [vmem:[%s6097_s14 + $0x58] sm:$0xff] }
 0x1aa   : > { %7362 = vst [vmem:[#allocation25_spill] sm:$0xff] %v6217_v3  ;;  %v511_v12 = vadd.f32 %v6154_v8, %v510_v9  ;;  %4289 = vmatprep.mubr.f32.mxu0 %v6217_v3  ;;  %4606 = vmatprep.mubr.f32.mxu1 %v6217_v3 }
 0x1ab   : > { %4290 = vmatmul.mubr.f32.gmra.mrb[42].mxu0 %v6219_v5  ;;  %4607 = vmatmul.mubr.f32.gmra.mrb[8].mxu1 %v6219_v5  ;;  %v6229_v17 = vadd.f32 %v624_v63, %v516_v7 }
 0x1ac   : > { %v6227_v15 = vadd.f32 %v623_v61, %v511_v12  ;;  %v4214_v16 = vpop.f32.mrb[12].mxu0  ;;  %5173 = vmatpush3.bf16.msra.mxu1 %v5170_v62 }
 0x1ad   : > { %7365 = vst [vmem:[#allocation28_spill] sm:$0xff] %v6229_v17  ;;  %v526_v18 = vadd.f32 %v4214_v16, %v6154_v8  ;;  %v520_v19 = vpop.f32.mrb[13].mxu0  ;;  %5175 = vmatprep.subr.bf16.mxu1 %v5174_v10 }
 0x1ae   : > { %7364 = vst [vmem:[#allocation27_spill] sm:$0xff] %v6227_v15  ;;  %v521_v23 = vadd.f32 %v6154_v8, %v520_v19  ;;  %4292 = vmatprep.mubr.f32.mxu0 %v6227_v15  ;;  %4609 = vmatprep.mubr.f32.mxu1 %v6227_v15 }
 0x1af   : > { %4293 = vmatmul.mubr.f32.gmra.mrb[44].mxu0 %v6229_v17  ;;  %4610 = vmatmul.mubr.f32.gmra.mrb[10].mxu1 %v6229_v17  ;;  %v6241_v28 = vadd.f32 %v626_v22, %v526_v18 }
 0x1b0   : > { %v6239_v26 = vadd.f32 %v625_v20, %v521_v23  ;;  %v4217_v27 = vpop.f32.mrb[14].mxu0  ;;  %5177 = vmatpush3.bf16.msra.mxu1 %v5174_v10  ;;  %v631_v23 = vld [vmem:[%s6097_s14 + $0x60] sm:$0xff] }
 0x1b1   : > { %7367 = vst [vmem:[#allocation30_spill] sm:$0xff] %v6241_v28  ;;  %v536_v29 = vadd.f32 %v4217_v27, %v6154_v8  ;;  %v530_v30 = vpop.f32.mrb[15].mxu0  ;;  %5179 = vmatprep.subr.bf16.mxu1 %v5178_v21 }
 0x1b2   : > { %7366 = vst [vmem:[#allocation29_spill] sm:$0xff] %v6239_v26  ;;  %v531_v37 = vadd.f32 %v6154_v8, %v530_v30  ;;  %4295 = vmatprep.mubr.f32.mxu0 %v6239_v26  ;;  %4612 = vmatprep.mubr.f32.mxu1 %v6239_v26 }
 0x1b3   : > { %4296 = vmatmul.mubr.f32.gmra.mrb[46].mxu0 %v6241_v28  ;;  %4613 = vmatmul.mubr.f32.gmra.mrb[12].mxu1 %v6241_v28  ;;  %v6251_v44 = vadd.f32 %v626_v22, %v536_v29 }
 0x1b4   : > { %v6249_v41 = vadd.f32 %v625_v20, %v531_v37  ;;  %v4220_v43 = vpop.f32.mrb[16].mxu0  ;;  %5181 = vmatpush3.bf16.msra.mxu1 %v5178_v21 }
 0x1b5   : > { %7369 = vst [vmem:[#allocation32_spill] sm:$0xff] %v6251_v44  ;;  %v546_v45 = vadd.f32 %v4220_v43, %v6154_v8  ;;  %v540_v46 = vpop.f32.mrb[17].mxu0  ;;  %5183 = vmatprep.subr.bf16.mxu1 %v5182_v32 }
 0x1b6   : > { %7368 = vst [vmem:[#allocation31_spill] sm:$0xff] %v6249_v41  ;;  %v541_v52 = vadd.f32 %v6154_v8, %v540_v46  ;;  %4298 = vmatprep.mubr.f32.mxu0 %v6249_v41  ;;  %4615 = vmatprep.mubr.f32.mxu1 %v6249_v41 }
 0x1b7   : > { %4299 = vmatmul.mubr.f32.gmra.mrb[48].mxu0 %v6251_v44  ;;  %4616 = vmatmul.mubr.f32.gmra.mrb[14].mxu1 %v6251_v44  ;;  %v6265_v55 = vadd.f32 %v628_v51, %v546_v45 }
 0x1b8   : > { %v6263_v53 = vadd.f32 %v627_v48, %v541_v52  ;;  %v4223_v54 = vpop.f32.mrb[18].mxu0  ;;  %5185 = vmatpush3.bf16.msra.mxu1 %v5182_v32  ;;  %v634_v52 = vld [vmem:[%s6097_s14 + $0x78] sm:$0xff] }
 0x1b9   : > { %7371 = vst [vmem:[#allocation34_spill] sm:$0xff] %v6265_v55  ;;  %v556_v57 = vadd.f32 %v4223_v54, %v6154_v8  ;;  %v550_v59 = vpop.f32.mrb[19].mxu0  ;;  %5187 = vmatprep.subr.bf16.mxu1 %v6255_v50 }
 0x1ba   : > { %7370 = vst [vmem:[#allocation33_spill] sm:$0xff] %v6263_v53  ;;  %v551_v60 = vadd.f32 %v6154_v8, %v550_v59  ;;  %4301 = vmatprep.mubr.f32.mxu0 %v6263_v53  ;;  %4618 = vmatprep.mubr.f32.mxu1 %v6263_v53 }
 0x1bb   : > { %4302 = vmatmul.mubr.f32.gmra.mrb[50].mxu0 %v6265_v55  ;;  %4619 = vmatmul.mubr.f32.gmra.mrb[16].mxu1 %v6265_v55  ;;  %v6276_v63 = vadd.f32 %v628_v51, %v556_v57  ;;  %v633_v51 = vld [vmem:[%s6097_s14 + $0x70] sm:$0xff] }
 0x1bc   : > { %v6274_v61 = vadd.f32 %v627_v48, %v551_v60  ;;  %v4226_v62 = vpop.f32.mrb[20].mxu0 }
 0x1bd   : > { %7373 = vst [vmem:[#allocation36_spill] sm:$0xff] %v6276_v63  ;;  %v566_v0 = vadd.f32 %v4226_v62, %v6154_v8  ;;  %v560_v1 = vpop.f32.mrb[21].mxu0 }
 0x1be   : > { %7372 = vst [vmem:[#allocation35_spill] sm:$0xff] %v6274_v61  ;;  %v561_v7 = vadd.f32 %v6154_v8, %v560_v1  ;;  %4304 = vmatprep.mubr.f32.mxu0 %v6274_v61  ;;  %4621 = vmatprep.mubr.f32.mxu1 %v6274_v61 }
 0x1bf   : > { %4305 = vmatmul.mubr.f32.gmra.mrb[52].mxu0 %v6276_v63  ;;  %4622 = vmatmul.mubr.f32.gmra.mrb[18].mxu1 %v6276_v63  ;;  %v6288_v12 = vadd.f32 %v630_v4, %v566_v0 }
 0x1c0   : > { %v6286_v9 = vadd.f32 %v629_v2, %v561_v7  ;;  %v4229_v10 = vpop.f32.mrb[22].mxu0 }
 0x1c1   : > { %7375 = vst [vmem:[#allocation38_spill] sm:$0xff] %v6288_v12  ;;  %v576_v13 = vadd.f32 %v4229_v10, %v6154_v8  ;;  %v570_v14 = vpop.f32.mrb[23].mxu0  ;;  %v6344_v10 = vadd.s32 8, %v6157_v11 }
 0x1c2   : > { %7374 = vst [vmem:[#allocation37_spill] sm:$0xff] %v6286_v9  ;;  %v571_v16 = vadd.f32 %v6154_v8, %v570_v14  ;;  %4307 = vmatprep.mubr.f32.mxu0 %v6286_v9  ;;  %4624 = vmatprep.mubr.f32.mxu1 %v6286_v9  ;;  %v689_v14 = vrot.slane %v6181_v36, 7 }
 0x1c3   : > { %4308 = vmatmul.mubr.f32.gmra.mrb[54].mxu0 %v6288_v12  ;;  %4625 = vmatmul.mubr.f32.gmra.mrb[20].mxu1 %v6288_v12  ;;  %v6298_v20 = vadd.f32 %v630_v4, %v576_v13  ;;  %v1361_v4 = vld [vmem:[#allocation8 + $0x118] sm:$0xff]  ;;  %vm3681_vm3 = vcmp.ne.s32.totalorder %v6344_v10, 15 }
 0x1c4   : > { %v6296_v18 = vadd.f32 %v629_v2, %v571_v16  ;;  %v4232_v19 = vpop.f32.mrb[24].mxu0  ;;  %v1360_v2 = vld [vmem:[#allocation8 + $0x110] sm:$0xff] }
 0x1c5   : > { %7377 = vst [vmem:[#allocation40_spill] sm:$0xff] %v6298_v20  ;;  %v586_v21 = vadd.f32 %v4232_v19, %v6154_v8  ;;  %v580_v22 = vpop.f32.mrb[25].mxu0  ;;  %v2452_v16 = vld [vmem:[#allocation8 + $0x310] sm:$0xff]  ;;  %v2453_v19 = vld [vmem:[#allocation8 + $0x318] sm:$0xff] }
 0x1c6   : > { %7376 = vst [vmem:[#allocation39_spill] sm:$0xff] %v6296_v18  ;;  %v581_v25 = vadd.f32 %v6154_v8, %v580_v22  ;;  %4310 = vmatprep.mubr.f32.mxu0 %v6296_v18  ;;  %4627 = vmatprep.mubr.f32.mxu1 %v6296_v18  ;;  %v776_v22 = vrot.slane %v6166_v31, 1 }
 0x1c7   : > { %4311 = vmatmul.mubr.f32.gmra.mrb[56].mxu0 %v6298_v20  ;;  %4628 = vmatmul.mubr.f32.gmra.mrb[22].mxu1 %v6298_v20  ;;  %v6310_v30 = vadd.f32 %v632_v24, %v586_v21  ;;  %v5062_v21 = vpack.c.bf16 %v1361_v4, %v1360_v2  ;;  %v691_v2 = vrot.slane %v6207_v58, 7  ;;  %v778_v4 = vrot.slane %v6205_v56, 1 }
 0x1c8   : > { %v6308_v27 = vadd.f32 %v631_v23, %v581_v25  ;;  %v4235_v29 = vpop.f32.mrb[26].mxu0  ;;  %v2454_v25 = vld [vmem:[#allocation8 + $0x320] sm:$0xff] }
 0x1c9   : > { %7379 = vst [vmem:[#allocation42_spill] sm:$0xff] %v6310_v30  ;;  %v596_v32 = vadd.f32 %v4235_v29, %v6154_v8  ;;  %v590_v37 = vpop.f32.mrb[27].mxu0  ;;  %v2455_v29 = vld [vmem:[#allocation8 + $0x328] sm:$0xff] }
 0x1ca   : > { %7378 = vst [vmem:[#allocation41_spill] sm:$0xff] %v6308_v27  ;;  %v591_v38 = vadd.f32 %v6154_v8, %v590_v37  ;;  %4313 = vmatprep.mubr.f32.mxu0 %v6308_v27  ;;  %4630 = vmatprep.mubr.f32.mxu1 %v6308_v27  ;;  %v1362_v37 = vld [vmem:[#allocation8 + $0x120] sm:$0xff] }
 0x1cb   : > { %4314 = vmatmul.mubr.f32.gmra.mrb[58].mxu0 %v6310_v30  ;;  %4631 = vmatmul.mubr.f32.gmra.mrb[24].mxu1 %v6310_v30  ;;  %v6320_v45 = vadd.f32 %v632_v24, %v596_v32  ;;  %v5190_v24 = vpack.c.bf16 %v2453_v19, %v2452_v16  ;;  %v794_v16 = vrot.slane %v6207_v58, 1  ;;  %v1364_v19 = vld [vmem:[#allocation8 + $0x130] sm:$0xff] }
 0x1cc   : > { %v6318_v39 = vadd.f32 %v631_v23, %v591_v38  ;;  %v4238_v43 = vpop.f32.mrb[28].mxu0  ;;  %v792_v23 = vrot.slane %v6181_v36, 1  ;;  %v1363_v38 = vld [vmem:[#allocation8 + $0x128] sm:$0xff] }
 0x1cd   : > { %7381 = vst [vmem:[#allocation44_spill] sm:$0xff] %v6320_v45  ;;  %v606_v46 = vadd.f32 %v4238_v43, %v6154_v8  ;;  %v600_v48 = vpop.f32.mrb[29].mxu0  ;;  %v674_v43 = vrot.slane %v6195_v47, 7  ;;  %v6425_v58 = vsel %vm807_vm1, %v778_v4, %v794_v16 }
 0x1ce   : > { %7380 = vst [vmem:[#allocation43_spill] sm:$0xff] %v6318_v39  ;;  %v601_v54 = vadd.f32 %v6154_v8, %v600_v48  ;;  %4316 = vmatprep.mubr.f32.mxu0 %v6318_v39  ;;  %4633 = vmatprep.mubr.f32.mxu1 %v6318_v39  ;;  %v777_v48 = vrot.slane %v6195_v47, 1  ;;  %v780_v47 = vrot.slane %v6227_v15, 1 }
 0x1cf   : > { %4317 = vmatmul.mubr.f32.gmra.mrb[60].mxu0 %v6320_v45  ;;  %4634 = vmatmul.mubr.f32.gmra.mrb[26].mxu1 %v6320_v45  ;;  %v6332_v60 = vadd.f32 %v634_v52, %v606_v46  ;;  %v690_v46 = vrot.slane %v6197_v49, 7 }
 0x1d0   : > { %v6330_v57 = vadd.f32 %v633_v51, %v601_v54  ;;  %v4241_v59 = vpop.f32.mrb[30].mxu0 }
 0x1d1   : > { %7383 = vst [vmem:[#allocation46_spill] sm:$0xff] %v6332_v60  ;;  %v616_v62 = vadd.f32 %v4241_v59, %v6154_v8  ;;  %v610_v0 = vpop.f32.mrb[31].mxu0  ;;  %v6389_v59 = vsel %vm807_vm1, %v792_v23, %v776_v22 }
 0x1d2   : > { %7382 = vst [vmem:[#allocation45_spill] sm:$0xff] %v6330_v57  ;;  %v611_v1 = vadd.f32 %v6154_v8, %v610_v0  ;;  %4319 = vmatprep.mubr.f32.mxu0 %v6330_v57  ;;  %4636 = vmatprep.mubr.f32.mxu1 %v6330_v57  ;;  %v673_v8 = vrot.slane %v6166_v31, 7  ;;  %v5066_v0 = vpack.c.bf16 %v1363_v38, %v1362_v37  ;;  %v679_v31 = vrot.slane %v6249_v41, 7 }
 0x1d3   : > { %4320 = vmatmul.mubr.f32.gmra.mrb[62].mxu0 %v6332_v60  ;;  %4637 = vmatmul.mubr.f32.gmra.mrb[28].mxu1 %v6332_v60  ;;  %v6346_v13 = vadd.f32 %v634_v52, %v616_v62  ;;  %v5194_v52 = vpack.c.bf16 %v2455_v29, %v2454_v25  ;;  %v2457_v62 = vld [vmem:[#allocation8 + $0x338] sm:$0xff]  ;;  %v2458_v25 = vld [vmem:[#allocation8 + $0x340] sm:$0xff]  ;;  %v2459_v29 = vld [vmem:[#allocation8 + $0x348] sm:$0xff] }
 0x1d4   : > { %v6340_v7 = vadd.f32 %v633_v51, %v611_v1  ;;  %4354 = vmatprep.mubr.f32.mxu0 %v7273_v40  ;;  %v6364_v32 = vsel %vm704_vm0, %v689_v14, %v673_v8  ;;  %v6380_v51 = vsel %vm807_vm1, %v776_v22, %v792_v23  ;;  %v6385_v54 = vsel %vm704_vm0, %v673_v8, %v689_v14  ;;  %v1365_v8 = vld [vmem:[#allocation8 + $0x138] sm:$0xff] }
 0x1d5   : > { %v675_v1 = vrot.slane %v6205_v56, 7  ;;  %v6401_v14 = vsel %vm704_vm0, %v690_v46, %v674_v43  ;;  %v5070_v37 = vpack.c.bf16 %v1365_v8, %v1364_v19  ;;  %v6445_v19 = vsel %vm807_vm1, %v794_v16, %v778_v4  ;;  %v2460_v8 = vld [vmem:[#allocation8 + $0x350] sm:$0xff] }
 0x1d6   : > { %4639 = vmatprep.mubr.f32.mxu1 %v6340_v7  ;;  %v677_v56 = vrot.slane %v6227_v15, 7 }
 0x1d7   : > { %4355 = vmatmul.mubr.f32.vlgmr.msra.gmra.mrb[32].mxu0 %v7273_v40  ;;  %4640 = vmatmul.mubr.f32.gmra.mrb[30].mxu1 %v6346_v13  ;;  %v6421_v40 = vsel %vm704_vm0, %v691_v2, %v675_v1 }
 0x1d8   : > { %4357 = vmatprep.mubr.msk.f32.mxu0 %vm3680_vm2, %v6171_v33  ;;  %4674 = vmatprep.mubr.f32.mxu1 %v6175_v34  ;;  %v782_v33 = vrot.slane %v6249_v41, 1 }
 0x1d9   : > { %5061 = vmatpush3.bf16.msra.mxu0 %v6148_v6  ;;  %v793_v6 = vrot.slane %v6197_v49, 1  ;;  %v693_v49 = vrot.slane %v6229_v17, 7 }
 0x1da   : > { %5063 = vmatprep.subr.bf16.mxu0 %v5062_v21 }
 0x1db   : > { %4358 = vmatmul.mubr.f32.gmra.mrb[34].mxu0 %v6179_v35  ;;  %4675 = vmatmul.mubr.msk.f32.vlgmr.msra.gmra.mrb[0].mxu1 %vm3681_vm3, %v6187_v42  ;;  %v6405_v22 = vsel %vm807_vm1, %v777_v48, %v793_v6  ;;  %v6417_v38 = vsel %vm807_vm1, %v793_v6, %v777_v48  ;;  %v692_v48 = vrot.slane %v6219_v5, 7  ;;  %v779_v6 = vrot.slane %v6217_v3, 1 }
 0x1dc   : > { %5189 = vmatpush3.bf16.msra.mxu1 %v6255_v50  ;;  %4360 = vmatprep.mubr.msk.f32.mxu0 %vm3680_vm2, %v6364_v32  ;;  %v2456_v50 = vld [vmem:[#allocation8 + $0x330] sm:$0xff]  ;;  %v6477_v15 = vsel %vm704_vm0, %v693_v49, %v677_v56  ;;  %v695_v35 = vrot.slane %v6251_v44, 7 }
 0x1dd   : > { %4677 = vmatprep.mubr.f32.mxu1 %v6380_v51  ;;  %5191 = vmatprep.subr.bf16.mxu1 %v5190_v24  ;;  %v5198_v23 = vpack.c.bf16 %v2457_v62, %v2456_v50  ;;  %v795_v50 = vrot.slane %v6219_v5, 1  ;;  %v5202_v62 = vpack.c.bf16 %v2459_v29, %v2458_v25  ;;  %v796_v25 = vrot.slane %v6229_v17, 1 }
 0x1de   : > { %5065 = vmatpush3.bf16.msra.mxu0 %v5062_v21  ;;  %v6413_v21 = vsel %vm704_vm0, %v674_v43, %v690_v46  ;;  %v1367_v43 = vld [vmem:[#allocation8 + $0x148] sm:$0xff]  ;;  %v676_v46 = vrot.slane %v6217_v3, 7  ;;  %v2461_v3 = vld [vmem:[#allocation8 + $0x358] sm:$0xff]  ;;  %v6533_v41 = vsel %vm704_vm0, %v695_v35, %v679_v31 }
 0x1df   : > { %4361 = vmatmul.mubr.f32.gmra.mrb[36].mxu0 %v6385_v54  ;;  %4678 = vmatmul.mubr.msk.f32.gmra.mrb[2].mxu1 %vm3681_vm3, %v6389_v59  ;;  %v6461_v4 = vsel %vm807_vm1, %v779_v6, %v795_v50  ;;  %v5206_v29 = vpack.c.bf16 %v2461_v3, %v2460_v8  ;;  %v6473_v17 = vsel %vm807_vm1, %v795_v50, %v779_v6  ;;  %v1371_v3 = vld [vmem:[#allocation8 + $0x168] sm:$0xff]  ;;  %v781_v6 = vrot.slane %v6239_v26, 1 }
 0x1e0   : > { %4363 = vmatprep.mubr.msk.f32.mxu0 %vm3680_vm2, %v6401_v14  ;;  %4680 = vmatprep.mubr.f32.mxu1 %v6405_v22  ;;  %v6469_v16 = vsel %vm704_vm0, %v676_v46, %v692_v48  ;;  %v6481_v36 = vsel %vm807_vm1, %v780_v47, %v796_v25  ;;  %v797_v50 = vrot.slane %v6241_v28, 1  ;;  %v6497_v8 = vsel %vm704_vm0, %v677_v56, %v693_v49  ;;  %v1372_v49 = vld [vmem:[#allocation8 + $0x170] sm:$0xff]  ;;  %v1373_v56 = vld [vmem:[#allocation8 + $0x178] sm:$0xff] }
 0x1e1   : > { %5193 = vmatpush3.bf16.msra.mxu1 %v5190_v24  ;;  %5067 = vmatprep.subr.bf16.mxu0 %v5066_v0  ;;  %v1366_v24 = vld [vmem:[#allocation8 + $0x140] sm:$0xff]  ;;  %7384 = vst [vmem:[#allocation47_spill] sm:$0xff] %v6481_v36 }
 0x1e2   : > { %5195 = vmatprep.subr.bf16.mxu1 %v5194_v52  ;;  %5069 = vmatpush3.bf16.msra.mxu0 %v5066_v0  ;;  %v6441_v0 = vsel %vm704_vm0, %v675_v1, %v691_v2  ;;  %v5074_v5 = vpack.c.bf16 %v1367_v43, %v1366_v24  ;;  %v1368_v1 = vld [vmem:[#allocation8 + $0x150] sm:$0xff]  ;;  %v1369_v2 = vld [vmem:[#allocation8 + $0x158] sm:$0xff]  ;;  %v2463_v24 = vld [vmem:[#allocation8 + $0x368] sm:$0xff] }
 0x1e3   : > { %4364 = vmatmul.mubr.f32.gmra.mrb[38].mxu0 %v6413_v21  ;;  %4681 = vmatmul.mubr.msk.f32.gmra.mrb[4].mxu1 %vm3681_vm3, %v6417_v38  ;;  %v5078_v43 = vpack.c.bf16 %v1369_v2, %v1368_v1  ;;  %v6501_v1 = vsel %vm807_vm1, %v796_v25, %v780_v47 }
 0x1e4   : > { %4366 = vmatprep.mubr.msk.f32.mxu0 %vm3680_vm2, %v6421_v40  ;;  %4683 = vmatprep.mubr.f32.mxu1 %v6425_v58 }
 0x1e5   : > { %5197 = vmatpush3.bf16.msra.mxu1 %v5194_v52  ;;  %5071 = vmatprep.subr.bf16.mxu0 %v5070_v37  ;;  %v6457_v52 = vsel %vm704_vm0, %v692_v48, %v676_v46  ;;  %v678_v46 = vrot.slane %v6239_v26, 7  ;;  %v694_v48 = vrot.slane %v6241_v28, 7  ;;  %v2464_v26 = vld [vmem:[#allocation8 + $0x370] sm:$0xff]  ;;  %v2465_v28 = vld [vmem:[#allocation8 + $0x378] sm:$0xff] }
 0x1e6   : > { %5199 = vmatprep.subr.bf16.mxu1 %v5198_v23  ;;  %5073 = vmatpush3.bf16.msra.mxu0 %v5070_v37  ;;  %v2462_v37 = vld [vmem:[#allocation8 + $0x360] sm:$0xff] }
 0x1e7   : > { %4367 = vmatmul.mubr.f32.gmra.mrb[40].mxu0 %v6441_v0  ;;  %4684 = vmatmul.mubr.msk.f32.gmra.mrb[6].mxu1 %vm3681_vm3, %v6445_v19  ;;  %v6513_v47 = vsel %vm704_vm0, %v694_v48, %v678_v46  ;;  %v6525_v25 = vsel %vm704_vm0, %v678_v46, %v694_v48  ;;  %v1632_v46 = vld [vmem:[#allocation8 + $0x188] sm:$0xff]  ;;  %v783_v48 = vrot.slane %v6263_v53, 1 }
 0x1e8   : > { %4369 = vmatprep.mubr.msk.f32.mxu0 %vm3680_vm2, %v6457_v52  ;;  %4686 = vmatprep.mubr.f32.mxu1 %v6461_v4  ;;  %v7442_v11 = vld [vmem:[#allocation47_spill] sm:$0xff] }
 0x1e9   : > { %5201 = vmatpush3.bf16.msra.mxu1 %v5198_v23  ;;  %5075 = vmatprep.subr.bf16.mxu0 %v5074_v5  ;;  %v1370_v23 = vld [vmem:[#allocation8 + $0x160] sm:$0xff] }
 0x1ea   : > { %5203 = vmatprep.subr.bf16.mxu1 %v5202_v62  ;;  %5077 = vmatpush3.bf16.msra.mxu0 %v5074_v5  ;;  %v5210_v5 = vpack.c.bf16 %v2463_v24, %v2462_v37  ;;  %v5082_v2 = vpack.c.bf16 %v1371_v3, %v1370_v23  ;;  %v798_v37 = vrot.slane %v6251_v44, 1  ;;  %v5214_v24 = vpack.c.bf16 %v2465_v28, %v2464_v26  ;;  %v2723_v23 = vld [vmem:[#allocation8 + $0x380] sm:$0xff]  ;;  %v2724_v3 = vld [vmem:[#allocation8 + $0x388] sm:$0xff] }
 0x1eb   : > { %4370 = vmatmul.mubr.f32.gmra.mrb[42].mxu0 %v6469_v16  ;;  %4687 = vmatmul.mubr.msk.f32.gmra.mrb[8].mxu1 %vm3681_vm3, %v6473_v17  ;;  %v6529_v44 = vsel %vm807_vm1, %v797_v50, %v781_v6  ;;  %v680_v26 = vrot.slane %v6263_v53, 7  ;;  %v696_v28 = vrot.slane %v6265_v55, 7  ;;  %v697_v53 = vrot.slane %v6276_v63, 7 }
 0x1ec   : > { %4372 = vmatprep.mubr.msk.f32.mxu0 %vm3680_vm2, %v6477_v15  ;;  %4689 = vmatprep.mubr.f32.mxu1 %v6481_v36 }
 0x1ed   : > { %5205 = vmatpush3.bf16.msra.mxu1 %v5202_v62  ;;  %5079 = vmatprep.subr.bf16.mxu0 %v5078_v43  ;;  %v6517_v62 = vsel %vm807_vm1, %v781_v6, %v797_v50  ;;  %v799_v6 = vrot.slane %v6265_v55, 1  ;;  %v6551_v50 = vpack.c.bf16 %v2724_v3, %v2723_v23  ;;  %v681_v55 = vrot.slane %v6274_v61, 7 }
 0x1ee   : > { %5207 = vmatprep.subr.bf16.mxu1 %v5206_v29  ;;  %5081 = vmatpush3.bf16.msra.mxu0 %v5078_v43  ;;  %7385 = vst [vmem:[#allocation48_spill] sm:$0xff] %v6517_v62  ;;  %v5086_v43 = vpack.c.bf16 %v1373_v56, %v1372_v49  ;;  %v6559_v49 = vsel %vm807_vm1, %v798_v37, %v782_v33  ;;  %v800_v23 = vrot.slane %v6276_v63, 1  ;;  %v698_v3 = vrot.slane %v6288_v12, 7 }
 0x1ef   : > { %4373 = vmatmul.mubr.f32.gmra.mrb[44].mxu0 %v6497_v8  ;;  %4690 = vmatmul.mubr.msk.f32.gmra.mrb[10].mxu1 %vm3681_vm3, %v6501_v1 }
 0x1f0   : > { %4375 = vmatprep.mubr.msk.f32.mxu0 %vm3680_vm2, %v6513_v47  ;;  %4692 = vmatprep.mubr.f32.mxu1 %v6517_v62  ;;  %v6537_v62 = vsel %vm807_vm1, %v782_v33, %v798_v37  ;;  %v6577_v33 = vsel %vm807_vm1, %v783_v48, %v799_v6  ;;  %v6594_v37 = vsel %vm704_vm0, %v697_v53, %v681_v55 }
 0x1f1   : > { %5209 = vmatpush3.bf16.msra.mxu1 %v5206_v29  ;;  %5083 = vmatprep.subr.bf16.mxu0 %v5082_v2  ;;  %7386 = vst [vmem:[#allocation49_spill] sm:$0xff] %v6537_v62  ;;  %v1631_v29 = vld [vmem:[#allocation8 + $0x180] sm:$0xff] }
 0x1f2   : > { %5211 = vmatprep.subr.bf16.mxu1 %v5210_v5  ;;  %5085 = vmatpush3.bf16.msra.mxu0 %v5082_v2  ;;  %v6555_v2 = vsel %vm704_vm0, %v679_v31, %v695_v35  ;;  %v6561_v56 = vpack.c.bf16 %v1632_v46, %v1631_v29  ;;  %v6573_v31 = vsel %vm704_vm0, %v696_v28, %v680_v26  ;;  %v785_v29 = vrot.slane %v6286_v9, 1 }
 0x1f3   : > { %4376 = vmatmul.mubr.f32.gmra.mrb[46].mxu0 %v6525_v25  ;;  %4693 = vmatmul.mubr.msk.f32.gmra.mrb[12].mxu1 %vm3681_vm3, %v6529_v44  ;;  %v6586_v35 = vsel %vm704_vm0, %v680_v26, %v696_v28  ;;  %v801_v46 = vrot.slane %v6288_v12, 1  ;;  %v6615_v26 = vsel %vm704_vm0, %v681_v55, %v697_v53  ;;  %v786_v12 = vrot.slane %v6296_v18, 1 }
 0x1f4   : > { %4378 = vmatprep.mubr.msk.f32.mxu0 %vm3680_vm2, %v6533_v41  ;;  %4695 = vmatprep.mubr.f32.mxu1 %v6537_v62  ;;  %v784_v62 = vrot.slane %v6274_v61, 1 }
 0x1f5   : > { %5213 = vmatpush3.bf16.msra.mxu1 %v5210_v5  ;;  %5087 = vmatprep.subr.bf16.mxu0 %v5086_v43  ;;  %v6590_v5 = vsel %vm807_vm1, %v799_v6, %v783_v48  ;;  %v683_v48 = vrot.slane %v6296_v18, 7  ;;  %v699_v6 = vrot.slane %v6298_v20, 7  ;;  %v6635_v55 = vsel %vm807_vm1, %v785_v29, %v801_v46 }
 0x1f6   : > { %5215 = vmatprep.subr.bf16.mxu1 %v5214_v24  ;;  %5089 = vmatpush3.bf16.msra.mxu0 %v5086_v43  ;;  %v6598_v43 = vsel %vm807_vm1, %v784_v62, %v800_v23  ;;  %v6619_v28 = vsel %vm807_vm1, %v800_v23, %v784_v62  ;;  %7387 = vst [vmem:[#allocation50_spill] sm:$0xff] %v6635_v55 }
 0x1f7   : > { %4379 = vmatmul.mubr.f32.gmra.mrb[48].mxu0 %v6555_v2  ;;  %4696 = vmatmul.mubr.msk.f32.gmra.mrb[14].mxu1 %vm3681_vm3, %v6559_v49  ;;  %v6647_v23 = vsel %vm807_vm1, %v801_v46, %v785_v29  ;;  %v787_v29 = vrot.slane %v6308_v27, 1  ;;  %v803_v46 = vrot.slane %v6310_v30, 1  ;;  %v6671_v63 = vsel %vm704_vm0, %v683_v48, %v699_v6 }
 0x1f8   : > { %4381 = vmatprep.mubr.msk.f32.mxu0 %vm3680_vm2, %v6573_v31  ;;  %4698 = vmatprep.mubr.f32.mxu1 %v6577_v33  ;;  %7388 = vst [vmem:[#allocation51_spill] sm:$0xff] %v6647_v23 }
 0x1f9   : > { %5217 = vmatpush3.bf16.msra.mxu1 %v5214_v24  ;;  %5091 = vmatprep.subr.bf16.mxu0 %v6561_v56  ;;  %v682_v24 = vrot.slane %v6286_v9, 7  ;;  %v802_v9 = vrot.slane %v6298_v20, 1  ;;  %v6651_v20 = vsel %vm704_vm0, %v699_v6, %v683_v48  ;;  %v6703_v6 = vsel %vm807_vm1, %v803_v46, %v787_v29 }
 0x1fa   : > { %5219 = vmatprep.subr.bf16.mxu1 %v6551_v50  ;;  %7392 = vst [vmem:[#allocation55_spill] sm:$0xff] %v6703_v6 }
 0x1fb   : > { %4382 = vmatmul.mubr.f32.gmra.mrb[50].mxu0 %v6586_v35  ;;  %4699 = vmatmul.mubr.msk.f32.gmra.mrb[16].mxu1 %vm3681_vm3, %v6590_v5  ;;  %v6631_v53 = vsel %vm704_vm0, %v698_v3, %v682_v24  ;;  %v6643_v62 = vsel %vm704_vm0, %v682_v24, %v698_v3  ;;  %v6655_v18 = vsel %vm807_vm1, %v786_v12, %v802_v9  ;;  %v684_v24 = vrot.slane %v6308_v27, 7 }
 0x1fc   : > { %4384 = vmatprep.mubr.msk.f32.mxu0 %vm3680_vm2, %v6594_v37  ;;  %4701 = vmatprep.mubr.f32.mxu1 %v6598_v43  ;;  %7389 = vst [vmem:[#allocation52_spill] sm:$0xff] %v6655_v18  ;;  %v700_v3 = vrot.slane %v6310_v30, 7  ;;  %v6675_v61 = vsel %vm807_vm1, %v802_v9, %v786_v12  ;;  %v701_v27 = vrot.slane %v6320_v45, 7  ;;  %v788_v30 = vrot.slane %v6318_v39, 1 }
 0x1fd   : > { %7390 = vst [vmem:[#allocation53_spill] sm:$0xff] %v6675_v61  ;;  %v6691_v9 = vsel %vm807_vm1, %v787_v29, %v803_v46  ;;  %v789_v29 = vrot.slane %v6330_v57, 1  ;;  %v805_v46 = vrot.slane %v6332_v60, 1 }
 0x1fe   : > { %v6687_v48 = vsel %vm704_vm0, %v700_v3, %v684_v24  ;;  %7391 = vst [vmem:[#allocation54_spill] sm:$0xff] %v6691_v9  ;;  %v6699_v12 = vsel %vm704_vm0, %v684_v24, %v700_v3  ;;  %v686_v24 = vrot.slane %v6330_v57, 7  ;;  %v702_v3 = vrot.slane %v6332_v60, 7 }
 0x1ff   : > { %4385 = vmatmul.mubr.f32.gmra.mrb[52].mxu0 %v6615_v26  ;;  %4702 = vmatmul.mubr.msk.f32.gmra.mrb[18].mxu1 %vm3681_vm3, %v6619_v28  ;;  %v6743_v57 = vsel %vm807_vm1, %v789_v29, %v805_v46 }
 0x200   : > { %4387 = vmatprep.mubr.msk.f32.mxu0 %vm3680_vm2, %v6631_v53  ;;  %4704 = vmatprep.mubr.f32.mxu1 %v6635_v55  ;;  %v804_v55 = vrot.slane %v6320_v45, 1  ;;  %v6739_v60 = vsel %vm704_vm0, %v702_v3, %v686_v24  ;;  %7396 = vst [vmem:[#allocation59_spill] sm:$0xff] %v6743_v57 }
 0x201   : > { %7395 = vst [vmem:[#allocation58_spill] sm:$0xff] %v6739_v60 }
 0x203   : > { %4388 = vmatmul.mubr.f32.gmra.mrb[54].mxu0 %v6643_v62  ;;  %4705 = vmatmul.mubr.msk.f32.gmra.mrb[20].mxu1 %vm3681_vm3, %v6647_v23  ;;  %v685_v23 = vrot.slane %v6318_v39, 7  ;;  %v6711_v39 = vsel %vm807_vm1, %v788_v30, %v804_v55 }
 0x204   : > { %4390 = vmatprep.mubr.msk.f32.mxu0 %vm3680_vm2, %v6651_v20  ;;  %4707 = vmatprep.mubr.f32.mxu1 %v6655_v18  ;;  %7393 = vst [vmem:[#allocation56_spill] sm:$0xff] %v6711_v39 }
 0x205   : > { %v6707_v45 = vsel %vm704_vm0, %v701_v27, %v685_v23 }
 0x207   : > { %4391 = vmatmul.mubr.f32.gmra.mrb[56].mxu0 %v6671_v63  ;;  %4708 = vmatmul.mubr.msk.f32.gmra.mrb[22].mxu1 %vm3681_vm3, %v6675_v61 }
 0x208   : > { %4393 = vmatprep.mubr.msk.f32.mxu0 %vm3680_vm2, %v6687_v48  ;;  %4710 = vmatprep.mubr.f32.mxu1 %v6691_v9  ;;  %v6727_v9 = vsel %vm704_vm0, %v685_v23, %v701_v27  ;;  %v790_v27 = vrot.slane %v6340_v7, 1  ;;  %v806_v23 = vrot.slane %v6346_v13, 1 }
 0x20b   : > { %4394 = vmatmul.mubr.f32.gmra.mrb[58].mxu0 %v6699_v12  ;;  %4711 = vmatmul.mubr.msk.f32.gmra.mrb[24].mxu1 %vm3681_vm3, %v6703_v6  ;;  %v6731_v6 = vsel %vm807_vm1, %v804_v55, %v788_v30  ;;  %v6753_v30 = vsel %vm704_vm0, %v686_v24, %v702_v3  ;;  %v6757_v55 = vsel %vm807_vm1, %v805_v46, %v789_v29  ;;  %v7400_v24 = vmov 0.0   ;;  %v2725_v29 = vld [vmem:[#allocation8 + $0x390] sm:$0xff]  ;;  %v2726_v46 = vld [vmem:[#allocation8 + $0x398] sm:$0xff] }
 0x20c   : > { %4396 = vmatprep.mubr.msk.f32.mxu0 %vm3680_vm2, %v6707_v45  ;;  %4713 = vmatprep.mubr.f32.mxu1 %v6711_v39  ;;  %7394 = vst [vmem:[#allocation57_spill] sm:$0xff] %v6731_v6  ;;  %7397 = vst [vmem:[#allocation60_spill] sm:$0xff] %v6753_v30  ;;  %v6771_v3 = vsel %vm807_vm1, %v806_v23, %v790_v27 }
 0x20d   : > { %7398 = vst [vmem:[#allocation61_spill] sm:$0xff] %v6757_v55  ;;  %7401 = vst [vmem:[#allocation63_spill] sm:$0xff] %v6771_v3 }
 0x20f   : > { %4397 = vmatmul.mubr.f32.gmra.mrb[60].mxu0 %v6727_v9  ;;  %4714 = vmatmul.mubr.msk.f32.gmra.mrb[26].mxu1 %vm3681_vm3, %v6731_v6  ;;  %v6765_v6 = vsel %vm807_vm1, %v790_v27, %v806_v23  ;;  %v1635_v27 = vld [vmem:[#allocation8 + $0x1a0] sm:$0xff]  ;;  %v1636_v23 = vld [vmem:[#allocation8 + $0x1a8] sm:$0xff] }
 0x210   : > { %4399 = vmatprep.mubr.msk.f32.mxu0 %vm3680_vm2, %v6739_v60  ;;  %4716 = vmatprep.mubr.f32.mxu1 %v6743_v57  ;;  %7399 = vst [vmem:[#allocation62_spill] sm:$0xff] %v6765_v6  ;;  %v1633_v60 = vld [vmem:[#allocation8 + $0x190] sm:$0xff]  ;;  %v1634_v57 = vld [vmem:[#allocation8 + $0x198] sm:$0xff] }
 0x213   : > { %4400 = vmatmul.mubr.f32.gmra.mrb[62].mxu0 %v6753_v30  ;;  %4717 = vmatmul.mubr.msk.f32.gmra.mrb[28].mxu1 %vm3681_vm3, %v6757_v55  ;;  %v5094_v30 = vpack.c.bf16 %v1634_v57, %v1633_v60  ;;  %v2727_v57 = vld [vmem:[#allocation8 + $0x3a0] sm:$0xff]  ;;  %v2728_v60 = vld [vmem:[#allocation8 + $0x3a8] sm:$0xff] }
 0x214   : > { %4719 = vmatprep.mubr.f32.mxu1 %v6765_v6  ;;  %4434 = vmatprep.mubr.f32.mxu0 %v7400_v24  ;;  %v5222_v6 = vpack.c.bf16 %v2726_v46, %v2725_v29  ;;  %v1637_v29 = vld [vmem:[#allocation8 + $0x1b0] sm:$0xff]  ;;  %v1638_v46 = vld [vmem:[#allocation8 + $0x1b8] sm:$0xff] }
 0x217   : > { %4435 = vmatmul.mubr.f32.vlgmr.msra.gmra.mrb[32].mxu0 %v7400_v24  ;;  %4720 = vmatmul.mubr.msk.f32.gmra.mrb[30].mxu1 %vm3681_vm3, %v6771_v3  ;;  %v2732_v3 = vld [vmem:[#allocation8 + $0x3c8] sm:$0xff] }
 0x218   : > { %4437 = vmatprep.mubr.f32.mxu0 %v6175_v34  ;;  %4754 = vmatprep.mubr.msk.f32.mxu1 %vm3680_vm2, %v6364_v32  ;;  %v5098_v34 = vpack.c.bf16 %v1636_v23, %v1635_v27  ;;  %v5102_v27 = vpack.c.bf16 %v1638_v46, %v1637_v29  ;;  %v1639_v23 = vld [vmem:[#allocation8 + $0x1c0] sm:$0xff]  ;;  %v1641_v29 = vld [vmem:[#allocation8 + $0x1d0] sm:$0xff]  ;;  %v1642_v46 = vld [vmem:[#allocation8 + $0x1d8] sm:$0xff] }
 0x219   : > { %5093 = vmatpush3.bf16.msra.mxu0 %v6561_v56  ;;  %v5226_v56 = vpack.c.bf16 %v2728_v60, %v2727_v57  ;;  %v1640_v57 = vld [vmem:[#allocation8 + $0x1c8] sm:$0xff]  ;;  %v2731_v60 = vld [vmem:[#allocation8 + $0x3c0] sm:$0xff] }
 0x21a   : > { %5095 = vmatprep.subr.bf16.mxu0 %v5094_v30 }
 0x21b   : > { %4438 = vmatmul.mubr.msk.f32.gmra.mrb[34].mxu0 %vm3681_vm3, %v6187_v42  ;;  %4755 = vmatmul.mubr.f32.vlgmr.msra.gmra.mrb[0].mxu1 %v6385_v54  ;;  %v2729_v42 = vld [vmem:[#allocation8 + $0x3b0] sm:$0xff] }
 0x21c   : > { %5221 = vmatpush3.bf16.msra.mxu1 %v6551_v50  ;;  %4440 = vmatprep.mubr.f32.mxu0 %v6380_v51  ;;  %v2730_v50 = vld [vmem:[#allocation8 + $0x3b8] sm:$0xff] }
 0x21d   : > { %4757 = vmatprep.mubr.msk.f32.mxu1 %vm3680_vm2, %v6401_v14  ;;  %5223 = vmatprep.subr.bf16.mxu1 %v5222_v6 }
 0x21e   : > { %5097 = vmatpush3.bf16.msra.mxu0 %v5094_v30  ;;  %v5230_v30 = vpack.c.bf16 %v2730_v50, %v2729_v42  ;;  %v2733_v42 = vld [vmem:[#allocation8 + $0x3d0] sm:$0xff]  ;;  %v2734_v50 = vld [vmem:[#allocation8 + $0x3d8] sm:$0xff] }
 0x21f   : > { %4441 = vmatmul.mubr.msk.f32.gmra.mrb[36].mxu0 %vm3681_vm3, %v6389_v59  ;;  %4758 = vmatmul.mubr.f32.gmra.mrb[2].mxu1 %v6413_v21 }
 0x220   : > { %4443 = vmatprep.mubr.f32.mxu0 %v6405_v22  ;;  %4760 = vmatprep.mubr.msk.f32.mxu1 %vm3680_vm2, %v6421_v40 }
 0x221   : > { %5225 = vmatpush3.bf16.msra.mxu1 %v5222_v6  ;;  %5099 = vmatprep.subr.bf16.mxu0 %v5098_v34  ;;  %v5106_v6 = vpack.c.bf16 %v1640_v57, %v1639_v23  ;;  %v1644_v23 = vld [vmem:[#allocation8 + $0x1e8] sm:$0xff]  ;;  %v2735_v57 = vld [vmem:[#allocation8 + $0x3e0] sm:$0xff] }
 0x222   : > { %5227 = vmatprep.subr.bf16.mxu1 %v5226_v56  ;;  %5101 = vmatpush3.bf16.msra.mxu0 %v5098_v34  ;;  %v5234_v34 = vpack.c.bf16 %v2732_v3, %v2731_v60  ;;  %v5110_v3 = vpack.c.bf16 %v1642_v46, %v1641_v29  ;;  %v2736_v60 = vld [vmem:[#allocation8 + $0x3e8] sm:$0xff]  ;;  %v1645_v29 = vld [vmem:[#allocation8 + $0x1f0] sm:$0xff]  ;;  %v1646_v46 = vld [vmem:[#allocation8 + $0x1f8] sm:$0xff] }
 0x223   : > { %4444 = vmatmul.mubr.msk.f32.gmra.mrb[38].mxu0 %vm3681_vm3, %v6417_v38  ;;  %4761 = vmatmul.mubr.f32.gmra.mrb[4].mxu1 %v6441_v0 }
 0x224   : > { %4446 = vmatprep.mubr.f32.mxu0 %v6425_v58  ;;  %4763 = vmatprep.mubr.msk.f32.mxu1 %vm3680_vm2, %v6457_v52 }
 0x225   : > { %5229 = vmatpush3.bf16.msra.mxu1 %v5226_v56  ;;  %5103 = vmatprep.subr.bf16.mxu0 %v5102_v27  ;;  %v5238_v56 = vpack.c.bf16 %v2734_v50, %v2733_v42  ;;  %v2737_v42 = vld [vmem:[#allocation8 + $0x3f0] sm:$0xff]  ;;  %v2738_v50 = vld [vmem:[#allocation8 + $0x3f8] sm:$0xff] }
 0x226   : > { %5231 = vmatprep.subr.bf16.mxu1 %v5230_v30  ;;  %5105 = vmatpush3.bf16.msra.mxu0 %v5102_v27  ;;  %v1643_v27 = vld [vmem:[#allocation8 + $0x1e0] sm:$0xff] }
 0x227   : > { %4447 = vmatmul.mubr.msk.f32.gmra.mrb[40].mxu0 %vm3681_vm3, %v6445_v19  ;;  %4764 = vmatmul.mubr.f32.gmra.mrb[6].mxu1 %v6469_v16 }
 0x228   : > { %4449 = vmatprep.mubr.f32.mxu0 %v6461_v4  ;;  %4766 = vmatprep.mubr.msk.f32.mxu1 %vm3680_vm2, %v6477_v15 }
 0x229   : > { %5233 = vmatpush3.bf16.msra.mxu1 %v5230_v30  ;;  %5107 = vmatprep.subr.bf16.mxu0 %v5106_v6  ;;  %v5114_v30 = vpack.c.bf16 %v1644_v23, %v1643_v27  ;;  %v2996_v27 = vld [vmem:[#allocation8 + $0x400] sm:$0xff]  ;;  %v2997_v23 = vld [vmem:[#allocation8 + $0x408] sm:$0xff] }
 0x22a   : > { %5235 = vmatprep.subr.bf16.mxu1 %v5234_v34  ;;  %5109 = vmatpush3.bf16.msra.mxu0 %v5106_v6  ;;  %v5242_v6 = vpack.c.bf16 %v2736_v60, %v2735_v57  ;;  %v7403_v57 = vld [vmem:[#allocation49_spill] sm:$0xff]  ;;  %v7404_v60 = vld [vmem:[#allocation50_spill] sm:$0xff] }
 0x22b   : > { %4450 = vmatmul.mubr.msk.f32.gmra.mrb[42].mxu0 %vm3681_vm3, %v6473_v17  ;;  %4767 = vmatmul.mubr.f32.gmra.mrb[8].mxu1 %v6497_v8 }
 0x22c   : > { %4452 = vmatprep.mubr.f32.mxu0 %v6481_v36  ;;  %4769 = vmatprep.mubr.msk.f32.mxu1 %vm3680_vm2, %v6513_v47  ;;  %v7402_v36 = vld [vmem:[#allocation48_spill] sm:$0xff] }
 0x22d   : > { %5237 = vmatpush3.bf16.msra.mxu1 %v5234_v34  ;;  %5111 = vmatprep.subr.bf16.mxu0 %v5110_v3  ;;  %v5118_v34 = vpack.c.bf16 %v1646_v46, %v1645_v29  ;;  %v7407_v29 = vld [vmem:[#allocation55_spill] sm:$0xff]  ;;  %v687_v46 = vrot.slane %v6340_v7, 7 }
 0x22e   : > { %5239 = vmatprep.subr.bf16.mxu1 %v5238_v56  ;;  %5113 = vmatpush3.bf16.msra.mxu0 %v5110_v3  ;;  %v5246_v3 = vpack.c.bf16 %v2738_v50, %v2737_v42  ;;  %v703_v42 = vrot.slane %v6346_v13, 7  ;;  %v7408_v50 = vld [vmem:[#allocation58_spill] sm:$0xff] }
 0x22f   : > { %4453 = vmatmul.mubr.msk.f32.gmra.mrb[44].mxu0 %vm3681_vm3, %v6501_v1  ;;  %4770 = vmatmul.mubr.f32.gmra.mrb[10].mxu1 %v6525_v25 }
 0x230   : > { %4455 = vmatprep.mubr.f32.mxu0 %v7402_v36  ;;  %4772 = vmatprep.mubr.msk.f32.mxu1 %vm3680_vm2, %v6533_v41 }
 0x231   : > { %5241 = vmatpush3.bf16.msra.mxu1 %v5238_v56  ;;  %5115 = vmatprep.subr.bf16.mxu0 %v5114_v30  ;;  %v5250_v56 = vpack.c.bf16 %v2997_v23, %v2996_v27  ;;  %v6895_v27 = vsel %vm704_vm0, %v703_v42, %v687_v46  ;;  %v7411_v23 = vld [vmem:[#allocation59_spill] sm:$0xff] }
 0x232   : > { %5243 = vmatprep.subr.bf16.mxu1 %v5242_v6  ;;  %5117 = vmatpush3.bf16.msra.mxu0 %v5114_v30  ;;  %v7405_v30 = vld [vmem:[#allocation51_spill] sm:$0xff] }
 0x233   : > { %4456 = vmatmul.mubr.msk.f32.gmra.mrb[46].mxu0 %vm3681_vm3, %v6529_v44  ;;  %4773 = vmatmul.mubr.f32.gmra.mrb[12].mxu1 %v6555_v2 }
 0x234   : > { %4458 = vmatprep.mubr.f32.mxu0 %v7403_v57  ;;  %4775 = vmatprep.mubr.msk.f32.mxu1 %vm3680_vm2, %v6573_v31 }
 0x235   : > { %5245 = vmatpush3.bf16.msra.mxu1 %v5242_v6  ;;  %5119 = vmatprep.subr.bf16.mxu0 %v5118_v34  ;;  %v7406_v6 = vld [vmem:[#allocation54_spill] sm:$0xff] }
 0x236   : > { %5247 = vmatprep.subr.bf16.mxu1 %v5246_v3  ;;  %5121 = vmatpush3.bf16.msra.mxu0 %v5118_v34  ;;  %v7409_v34 = vld [vmem:[#allocation57_spill] sm:$0xff] }
 0x237   : > { %4459 = vmatmul.mubr.msk.f32.gmra.mrb[48].mxu0 %vm3681_vm3, %v6559_v49  ;;  %4776 = vmatmul.mubr.f32.gmra.mrb[14].mxu1 %v6586_v35 }
 0x238   : > { %4461 = vmatprep.mubr.f32.mxu0 %v6577_v33  ;;  %4778 = vmatprep.mubr.msk.f32.mxu1 %vm3680_vm2, %v6594_v37 }
 0x239   : > { %5249 = vmatpush3.bf16.msra.mxu1 %v5246_v3  ;;  %v7410_v3 = vld [vmem:[#allocation60_spill] sm:$0xff] }
 0x23a   : > { %5251 = vmatprep.subr.bf16.mxu1 %v5250_v56 }
 0x23b   : > { %4462 = vmatmul.mubr.msk.f32.gmra.mrb[50].mxu0 %vm3681_vm3, %v6590_v5  ;;  %4779 = vmatmul.mubr.f32.gmra.mrb[16].mxu1 %v6615_v26 }
 0x23c   : > { %4464 = vmatprep.mubr.f32.mxu0 %v6598_v43  ;;  %4781 = vmatprep.mubr.msk.f32.mxu1 %vm3680_vm2, %v6631_v53 }
 0x23f   : > { %4465 = vmatmul.mubr.msk.f32.gmra.mrb[52].mxu0 %vm3681_vm3, %v6619_v28  ;;  %4782 = vmatmul.mubr.f32.gmra.mrb[18].mxu1 %v6643_v62 }
 0x240   : > { %4467 = vmatprep.mubr.f32.mxu0 %v7404_v60  ;;  %4784 = vmatprep.mubr.msk.f32.mxu1 %vm3680_vm2, %v6651_v20 }
 0x243   : > { %4468 = vmatmul.mubr.msk.f32.gmra.mrb[54].mxu0 %vm3681_vm3, %v7405_v30  ;;  %4785 = vmatmul.mubr.f32.gmra.mrb[20].mxu1 %v6671_v63 }
 0x244   : > { %4470 = vmatprep.mubr.f32.mxu0 %v6655_v18  ;;  %4787 = vmatprep.mubr.msk.f32.mxu1 %vm3680_vm2, %v6687_v48 }
 0x247   : > { %4471 = vmatmul.mubr.msk.f32.gmra.mrb[56].mxu0 %vm3681_vm3, %v6675_v61  ;;  %4788 = vmatmul.mubr.f32.gmra.mrb[22].mxu1 %v6699_v12  ;;  %v3001_v61 = vld [vmem:[#allocation8 + $0x428] sm:$0xff] }
 0x248   : > { %4473 = vmatprep.mubr.f32.mxu0 %v7406_v6  ;;  %4790 = vmatprep.mubr.msk.f32.mxu1 %vm3680_vm2, %v6707_v45  ;;  %v7413_v6 = vld [vmem:[#allocation19_spill] sm:$0xff] }
 0x24b   : > { %4474 = vmatmul.mubr.msk.f32.gmra.mrb[58].mxu0 %vm3681_vm3, %v7407_v29  ;;  %4791 = vmatmul.mubr.f32.gmra.mrb[24].mxu1 %v6727_v9  ;;  %v2999_v29 = vld [vmem:[#allocation8 + $0x418] sm:$0xff] }
 0x24c   : > { %4476 = vmatprep.mubr.f32.mxu0 %v6711_v39  ;;  %4793 = vmatprep.mubr.msk.f32.mxu1 %vm3680_vm2, %v7408_v50  ;;  %v6903_v39 = vsel %vm704_vm0, %v687_v46, %v703_v42  ;;  %v7414_v46 = vld [vmem:[#allocation17_spill] sm:$0xff] }
 0x24f   : > { %4477 = vmatmul.mubr.msk.f32.gmra.mrb[60].mxu0 %vm3681_vm3, %v7409_v34  ;;  %4794 = vmatmul.mubr.f32.gmra.mrb[26].mxu1 %v7410_v3  ;;  %v7412_v34 = vld [vmem:[#allocation18_spill] sm:$0xff] }
 0x250   : > { %4479 = vmatprep.mubr.f32.mxu0 %v7411_v23  ;;  %4796 = vmatprep.mubr.msk.f32.mxu1 %vm3680_vm2, %v6895_v27  ;;  %v2998_v23 = vld [vmem:[#allocation8 + $0x410] sm:$0xff] }
 0x251   : > { %v5254_v42 = vpack.c.bf16 %v2999_v29, %v2998_v23  ;;  %v3002_v29 = vld [vmem:[#allocation8 + $0x430] sm:$0xff]  ;;  %v3003_v23 = vld [vmem:[#allocation8 + $0x438] sm:$0xff] }
 0x253   : > { %4480 = vmatmul.mubr.msk.f32.gmra.mrb[62].mxu0 %vm3681_vm3, %v6757_v55  ;;  %4797 = vmatmul.mubr.f32.gmra.mrb[28].mxu1 %v6903_v39  ;;  %v7415_v55 = vld [vmem:[#allocation20_spill] sm:$0xff] }
 0x254   : > { %4514 = vmatprep.mubr.msk.f32.mxu0 %vm3680_vm2, %v7412_v34  ;;  %4799 = vmatprep.mubr.f32.mxu1 %v7400_v24  ;;  %v3000_v34 = vld [vmem:[#allocation8 + $0x420] sm:$0xff] }
 0x255   : > { %v5258_v18 = vpack.c.bf16 %v3001_v61, %v3000_v34  ;;  %v3004_v61 = vld [vmem:[#allocation8 + $0x440] sm:$0xff]  ;;  %v3007_v34 = vld [vmem:[#allocation8 + $0x458] sm:$0xff] }
 0x257   : > { %4515 = vmatmul.mubr.f32.vlgmr.msra.gmra.mrb[32].mxu0 %v7413_v6  ;;  %4800 = vmatmul.mubr.f32.gmra.mrb[30].mxu1 %v7400_v24  ;;  %v7416_v6 = vld [vmem:[#allocation21_spill] sm:$0xff] }
 0x258   : > { %4517 = vmatprep.mubr.msk.f32.mxu0 %vm3680_vm2, %v6364_v32  ;;  %4834 = vmatprep.mubr.f32.mxu1 %v7414_v46  ;;  %v7417_v32 = vld [vmem:[#allocation22_spill] sm:$0xff] }
 0x259   : > { %v7421_v46 = vld [vmem:[#allocation26_spill] sm:$0xff] }
 0x25b   : > { %4518 = vmatmul.mubr.f32.gmra.mrb[34].mxu0 %v6385_v54  ;;  %4835 = vmatmul.mubr.f32.vlgmr.msra.gmra.mrb[0].mxu1 %v7415_v55  ;;  %v7418_v54 = vld [vmem:[#allocation23_spill] sm:$0xff]  ;;  %v5262_v55 = vpack.c.bf16 %v3003_v23, %v3002_v29  ;;  %v7425_v29 = vld [vmem:[#allocation30_spill] sm:$0xff] }
 0x25c   : > { %5253 = vmatpush3.bf16.msra.mxu1 %v5250_v56  ;;  %4520 = vmatprep.mubr.msk.f32.mxu0 %vm3680_vm2, %v6401_v14  ;;  %v7419_v14 = vld [vmem:[#allocation24_spill] sm:$0xff]  ;;  %v3005_v56 = vld [vmem:[#allocation8 + $0x448] sm:$0xff]  ;;  %v3010_v23 = vld [vmem:[#allocation8 + $0x470] sm:$0xff] }
 0x25d   : > { %4837 = vmatprep.mubr.f32.mxu1 %v7416_v6  ;;  %5255 = vmatprep.subr.bf16.mxu1 %v5254_v42  ;;  %v3008_v6 = vld [vmem:[#allocation8 + $0x460] sm:$0xff] }
 0x25f   : > { %4521 = vmatmul.mubr.f32.gmra.mrb[36].mxu0 %v6413_v21  ;;  %4838 = vmatmul.mubr.f32.gmra.mrb[2].mxu1 %v7417_v32  ;;  %v7420_v21 = vld [vmem:[#allocation25_spill] sm:$0xff]  ;;  %v3009_v32 = vld [vmem:[#allocation8 + $0x468] sm:$0xff] }
 0x260   : > { %4523 = vmatprep.mubr.msk.f32.mxu0 %vm3680_vm2, %v6421_v40  ;;  %4840 = vmatprep.mubr.f32.mxu1 %v7418_v54  ;;  %v5266_v40 = vpack.c.bf16 %v3005_v56, %v3004_v61  ;;  %v3011_v54 = vld [vmem:[#allocation8 + $0x478] sm:$0xff] }
 0x261   : > { %5257 = vmatpush3.bf16.msra.mxu1 %v5254_v42  ;;  %v3006_v42 = vld [vmem:[#allocation8 + $0x450] sm:$0xff] }
 0x262   : > { %5259 = vmatprep.subr.bf16.mxu1 %v5258_v18 }
 0x263   : > { %4524 = vmatmul.mubr.f32.gmra.mrb[38].mxu0 %v6441_v0  ;;  %4841 = vmatmul.mubr.f32.gmra.mrb[4].mxu1 %v7419_v14  ;;  %v7422_v0 = vld [vmem:[#allocation27_spill] sm:$0xff] }
 0x264   : > { %4526 = vmatprep.mubr.msk.f32.mxu0 %vm3680_vm2, %v6457_v52  ;;  %4843 = vmatprep.mubr.f32.mxu1 %v7420_v21  ;;  %v5270_v52 = vpack.c.bf16 %v3007_v34, %v3006_v42  ;;  %v7430_v14 = vld [vmem:[#allocation35_spill] sm:$0xff] }
 0x265   : > { %5261 = vmatpush3.bf16.msra.mxu1 %v5258_v18  ;;  %v7423_v18 = vld [vmem:[#allocation28_spill] sm:$0xff] }
 0x266   : > { %5263 = vmatprep.subr.bf16.mxu1 %v5262_v55 }
 0x267   : > { %4527 = vmatmul.mubr.f32.gmra.mrb[40].mxu0 %v6469_v16  ;;  %4844 = vmatmul.mubr.f32.gmra.mrb[6].mxu1 %v7421_v46  ;;  %v7424_v16 = vld [vmem:[#allocation29_spill] sm:$0xff] }
 0x268   : > { %4529 = vmatprep.mubr.msk.f32.mxu0 %vm3680_vm2, %v6477_v15  ;;  %4846 = vmatprep.mubr.f32.mxu1 %v7422_v0  ;;  %v5274_v15 = vpack.c.bf16 %v3009_v32, %v3008_v6 }
 0x269   : > { %5265 = vmatpush3.bf16.msra.mxu1 %v5262_v55  ;;  %v7427_v55 = vld [vmem:[#allocation32_spill] sm:$0xff] }
 0x26a   : > { %5267 = vmatprep.subr.bf16.mxu1 %v5266_v40 }
 0x26b   : > { %4530 = vmatmul.mubr.f32.gmra.mrb[42].mxu0 %v6497_v8  ;;  %4847 = vmatmul.mubr.f32.gmra.mrb[8].mxu1 %v7423_v18  ;;  %v7426_v8 = vld [vmem:[#allocation31_spill] sm:$0xff] }
 0x26c   : > { %4532 = vmatprep.mubr.msk.f32.mxu0 %vm3680_vm2, %v6513_v47  ;;  %4849 = vmatprep.mubr.f32.mxu1 %v7424_v16  ;;  %v5278_v47 = vpack.c.bf16 %v3011_v54, %v3010_v23 }
 0x26d   : > { %5269 = vmatpush3.bf16.msra.mxu1 %v5266_v40 }
 0x26e   : > { %5271 = vmatprep.subr.bf16.mxu1 %v5270_v52 }
 0x26f   : > { %4533 = vmatmul.mubr.f32.gmra.mrb[44].mxu0 %v6525_v25  ;;  %4850 = vmatmul.mubr.f32.gmra.mrb[10].mxu1 %v7425_v29  ;;  %v7428_v25 = vld [vmem:[#allocation33_spill] sm:$0xff] }
 0x270   : > { %4535 = vmatprep.mubr.msk.f32.mxu0 %vm3680_vm2, %v6533_v41  ;;  %4852 = vmatprep.mubr.f32.mxu1 %v7426_v8  ;;  %v7429_v41 = vld [vmem:[#allocation34_spill] sm:$0xff]  ;;  %v7116_v29 = vld [vmem:[%s7264_s5] ss:$0 sm:$0xff] }
 0x271   : > { %5273 = vmatpush3.bf16.msra.mxu1 %v5270_v52 }
 0x272   : > { %5275 = vmatprep.subr.bf16.mxu1 %v5274_v15 }
 0x273   : > { %4536 = vmatmul.mubr.f32.gmra.mrb[46].mxu0 %v6555_v2  ;;  %4853 = vmatmul.mubr.f32.gmra.mrb[12].mxu1 %v7427_v55  ;;  %v7431_v2 = vld [vmem:[#allocation36_spill] sm:$0xff] }
 0x274   : > { %4538 = vmatprep.mubr.msk.f32.mxu0 %vm3680_vm2, %v6573_v31  ;;  %4855 = vmatprep.mubr.f32.mxu1 %v7428_v25  ;;  %v7432_v31 = vld [vmem:[#allocation37_spill] sm:$0xff] }
 0x275   : > { %5277 = vmatpush3.bf16.msra.mxu1 %v5274_v15 }
 0x276   : > { %5279 = vmatprep.subr.bf16.mxu1 %v5278_v47 }
 0x277   : > { %4539 = vmatmul.mubr.f32.gmra.mrb[48].mxu0 %v6586_v35  ;;  %4856 = vmatmul.mubr.f32.gmra.mrb[14].mxu1 %v7429_v41  ;;  %v7433_v35 = vld [vmem:[#allocation38_spill] sm:$0xff] }
 0x278   : > { %4541 = vmatprep.mubr.msk.f32.mxu0 %vm3680_vm2, %v6594_v37  ;;  %4858 = vmatprep.mubr.f32.mxu1 %v7430_v14  ;;  %v7434_v37 = vld [vmem:[#allocation39_spill] sm:$0xff] }
 0x279   : > { %5281 = vmatpush3.bf16.msra.mxu1 %v5278_v47 }
 0x27b   : > { %4542 = vmatmul.mubr.f32.gmra.mrb[50].mxu0 %v6615_v26  ;;  %4859 = vmatmul.mubr.f32.gmra.mrb[16].mxu1 %v7431_v2  ;;  %v7435_v26 = vld [vmem:[#allocation40_spill] sm:$0xff] }
 0x27c   : > { %4544 = vmatprep.mubr.msk.f32.mxu0 %vm3680_vm2, %v6631_v53  ;;  %4861 = vmatprep.mubr.f32.mxu1 %v7432_v31  ;;  %v7436_v53 = vld [vmem:[#allocation41_spill] sm:$0xff] }
 0x27f   : > { %4545 = vmatmul.mubr.f32.gmra.mrb[52].mxu0 %v6643_v62  ;;  %4862 = vmatmul.mubr.f32.gmra.mrb[18].mxu1 %v7433_v35  ;;  %v7437_v62 = vld [vmem:[#allocation42_spill] sm:$0xff] }
 0x280   : > { %4547 = vmatprep.mubr.msk.f32.mxu0 %vm3680_vm2, %v6651_v20  ;;  %4864 = vmatprep.mubr.f32.mxu1 %v7434_v37  ;;  %v7438_v20 = vld [vmem:[#allocation43_spill] sm:$0xff] }
 0x283   : > { %4548 = vmatmul.mubr.f32.gmra.mrb[54].mxu0 %v6671_v63  ;;  %4865 = vmatmul.mubr.f32.gmra.mrb[20].mxu1 %v7435_v26  ;;  %v7439_v63 = vld [vmem:[#allocation44_spill] sm:$0xff] }
 0x284   : > { %4550 = vmatprep.mubr.msk.f32.mxu0 %vm3680_vm2, %v6687_v48  ;;  %4867 = vmatprep.mubr.f32.mxu1 %v7436_v53  ;;  %v7440_v48 = vld [vmem:[#allocation45_spill] sm:$0xff] }
 0x287   : > { %4551 = vmatmul.mubr.f32.gmra.mrb[56].mxu0 %v6699_v12  ;;  %4868 = vmatmul.mubr.f32.gmra.mrb[22].mxu1 %v7437_v62  ;;  %v7441_v12 = vld [vmem:[#allocation46_spill] sm:$0xff] }
 0x288   : > { %4553 = vmatprep.mubr.msk.f32.mxu0 %vm3680_vm2, %v6707_v45  ;;  %4870 = vmatprep.mubr.f32.mxu1 %v7438_v20  ;;  %v7448_v45 = vld [vmem:[#allocation57_spill] sm:$0xff] }
 0x28b   : > { %4554 = vmatmul.mubr.f32.gmra.mrb[58].mxu0 %v6727_v9  ;;  %4871 = vmatmul.mubr.f32.gmra.mrb[24].mxu1 %v7439_v63 }
 0x28c   : > { %4556 = vmatprep.mubr.msk.f32.mxu0 %vm3680_vm2, %v7408_v50  ;;  %4873 = vmatprep.mubr.f32.mxu1 %v7440_v48 }
 0x28f   : > { %4557 = vmatmul.mubr.f32.gmra.mrb[60].mxu0 %v7410_v3  ;;  %4874 = vmatmul.mubr.f32.gmra.mrb[26].mxu1 %v7441_v12 }
 0x290   : > { %4559 = vmatprep.mubr.msk.f32.mxu0 %vm3680_vm2, %v6895_v27  ;;  %4876 = vmatprep.mubr.f32.mxu1 %v6340_v7  ;;  %v7449_v7 = vld [vmem:[#allocation59_spill] sm:$0xff] }
 0x293   : > { %4560 = vmatmul.mubr.f32.gmra.mrb[62].mxu0 %v6903_v39  ;;  %4877 = vmatmul.mubr.f32.gmra.mrb[28].mxu1 %v6346_v13  ;;  %v7447_v39 = vld [vmem:[#allocation56_spill] sm:$0xff]  ;;  %v7450_v13 = vld [vmem:[#allocation61_spill] sm:$0xff] }
 0x294   : > { %4879 = vmatprep.mubr.f32.mxu1 %v7400_v24 }
 0x297   : > { %4880 = vmatmul.mubr.f32.gmra.mrb[30].mxu1 %v7400_v24 }
 0x298   : > { %4914 = vmatprep.mubr.f32.mxu1 %v6380_v51  ;;  %v7451_v51 = vld [vmem:[#allocation62_spill] sm:$0xff] }
 0x29b   : > { %4915 = vmatmul.mubr.msk.f32.vlgmr.msra.gmra.mrb[0].mxu1 %vm3681_vm3, %v6389_v59  ;;  %v7452_v59 = vld [vmem:[#allocation63_spill] sm:$0xff] }
 0x29c   : > { %4917 = vmatprep.mubr.f32.mxu1 %v6405_v22 }
 0x29f   : > { %4918 = vmatmul.mubr.msk.f32.gmra.mrb[2].mxu1 %vm3681_vm3, %v6417_v38 }
 0x2a0   : > { %4920 = vmatprep.mubr.f32.mxu1 %v6425_v58  ;;  %v7444_v58 = vld [vmem:[#allocation53_spill] sm:$0xff] }
 0x2a3   : > { %4921 = vmatmul.mubr.msk.f32.gmra.mrb[4].mxu1 %vm3681_vm3, %v6445_v19 }
 0x2a4   : > { %4923 = vmatprep.mubr.f32.mxu1 %v6461_v4 }
 0x2a7   : > { %4924 = vmatmul.mubr.msk.f32.gmra.mrb[6].mxu1 %vm3681_vm3, %v6473_v17  ;;  %v7445_v17 = vld [vmem:[#allocation54_spill] sm:$0xff] }
 0x2a8   : > { %4926 = vmatprep.mubr.f32.mxu1 %v7442_v11 }
 0x2ab   : > { %4927 = vmatmul.mubr.msk.f32.gmra.mrb[8].mxu1 %vm3681_vm3, %v6501_v1 }
 0x2ac   : > { %4929 = vmatprep.mubr.f32.mxu1 %v7402_v36  ;;  %v7443_v36 = vld [vmem:[#allocation52_spill] sm:$0xff] }
 0x2af   : > { %4930 = vmatmul.mubr.msk.f32.gmra.mrb[10].mxu1 %vm3681_vm3, %v6529_v44  ;;  %v7446_v44 = vld [vmem:[#allocation55_spill] sm:$0xff] }
 0x2b0   : > { %4932 = vmatprep.mubr.f32.mxu1 %v7403_v57 }
 0x2b3   : > { %4933 = vmatmul.mubr.msk.f32.gmra.mrb[12].mxu1 %vm3681_vm3, %v6559_v49 }
 0x2b4   : > { %4935 = vmatprep.mubr.f32.mxu1 %v6577_v33 }
 0x2b7   : > { %4936 = vmatmul.mubr.msk.f32.gmra.mrb[14].mxu1 %vm3681_vm3, %v6590_v5 }
 0x2b8   : > { %4938 = vmatprep.mubr.f32.mxu1 %v6598_v43 }
 0x2bb   : > { %4939 = vmatmul.mubr.msk.f32.gmra.mrb[16].mxu1 %vm3681_vm3, %v6619_v28 }
 0x2bc   : > { %4941 = vmatprep.mubr.f32.mxu1 %v7404_v60 }
 0x2bf   : > { %4942 = vmatmul.mubr.msk.f32.gmra.mrb[18].mxu1 %vm3681_vm3, %v7405_v30 }
 0x2c0   : > { %4944 = vmatprep.mubr.f32.mxu1 %v7443_v36 }
 0x2c3   : > { %4945 = vmatmul.mubr.msk.f32.gmra.mrb[20].mxu1 %vm3681_vm3, %v7444_v58 }
 0x2c4   : > { %4947 = vmatprep.mubr.f32.mxu1 %v7445_v17 }
 0x2c7   : > { %4948 = vmatmul.mubr.msk.f32.gmra.mrb[22].mxu1 %vm3681_vm3, %v7446_v44 }
 0x2c8   : > { %4950 = vmatprep.mubr.f32.mxu1 %v7447_v39 }
 0x2cb   : > { %4951 = vmatmul.mubr.msk.f32.gmra.mrb[24].mxu1 %vm3681_vm3, %v7448_v45 }
 0x2cc   : > { %4953 = vmatprep.mubr.f32.mxu1 %v7449_v7 }
 0x2cf   : > { %4954 = vmatmul.mubr.msk.f32.gmra.mrb[26].mxu1 %vm3681_vm3, %v7450_v13 }
 0x2d0   : > { %4956 = vmatprep.mubr.f32.mxu1 %v7451_v51 }
 0x2d3   : > { %4957 = vmatmul.mubr.msk.f32.gmra.mrb[28].mxu1 %vm3681_vm3, %v7452_v59 }
 0x2d4   : > { %4959 = vmatprep.mubr.f32.mxu1 %v7400_v24 }
 0x2d7   : > { %4960 = vmatmul.mubr.f32.gmra.mrb[30].mxu1 %v7400_v24 }
 0x32a   : > { %v4516_v22 = vpop.f32.mrb[32].mxu0 }
 0x32b   : > { %v1713_v38 = vpop.f32.mrb[33].mxu0 }
 0x32e   : > { %v4519_v19 = vpop.f32.mrb[34].mxu0 }
 0x32f   : > { %v1723_v4 = vpop.f32.mrb[35].mxu0 }
 0x332   : > { %v4522_v1 = vpop.f32.mrb[36].mxu0 }
 0x333   : > { %v1733_v49 = vpop.f32.mrb[37].mxu0 }
 0x336   : > { %v4525_v33 = vpop.f32.mrb[38].mxu0 }
 0x337   : > { %v1743_v5 = vpop.f32.mrb[39].mxu0 }
 0x33a   : > { %v4528_v43 = vpop.f32.mrb[40].mxu0 }
 0x33b   : > { %v1753_v28 = vpop.f32.mrb[41].mxu0 }
 0x33e   : > { %v7069_v9 = vpop.f32.mrb[42].mxu0 }
 0x33f   : > { %v7071_v57 = vpop.f32.mrb[43].mxu0 }
 0x342   : > { %v7073_v10 = vpop.f32.mrb[44].mxu0 }
 0x343   : > { %v7075_v60 = vpop.f32.mrb[45].mxu0 }
 0x346   : > { %v7077_v30 = vpop.f32.mrb[46].mxu0 }
 0x347   : > { %v7079_v24 = vpop.f32.mrb[47].mxu0 }
 0x34a   : > { %v7081_v50 = vpop.f32.mrb[48].mxu0 }
 0x34b   : > { %v7083_v3 = vpop.f32.mrb[49].mxu0 }
 0x34e   : > { %v7085_v27 = vpop.f32.mrb[50].mxu0 }
 0x34f   : > { %v7087_v61 = vpop.f32.mrb[51].mxu0 }
 0x352   : > { %v7089_v56 = vpop.f32.mrb[52].mxu0 }
 0x353   : > { %v7091_v21 = vpop.f32.mrb[53].mxu0 }
 0x356   : > { %v7093_v40 = vpop.f32.mrb[54].mxu0 }
 0x357   : > { %v7095_v46 = vpop.f32.mrb[55].mxu0 }
 0x35a   : > { %v7097_v42 = vpop.f32.mrb[56].mxu0 }
 0x35b   : > { %v7099_v34 = vpop.f32.mrb[57].mxu0 }
 0x35e   : > { %v7101_v0 = vpop.f32.mrb[58].mxu0 }
 0x35f   : > { %v7103_v52 = vpop.f32.mrb[59].mxu0 }
 0x362   : > { %v7105_v18 = vpop.f32.mrb[60].mxu0 }
 0x363   : > { %v7107_v6 = vpop.f32.mrb[61].mxu0 }
 0x366   : > { %v7109_v32 = vpop.f32.mrb[62].mxu0 }
 0x367   : > { %v7111_v16 = vpop.f32.mrb[63].mxu0 }
 0x36e   : > { %v4916_v15 = vpop.f32.mrb[0].mxu1 }
 0x36f   : > { %v5282_v23 = vadd.f32 %v4916_v15, %v4516_v22  ;;  %v3078_v54 = vpop.f32.mrb[1].mxu1 }
 0x370   : > { %v5283_v8 = vadd.f32 %v3078_v54, %v1713_v38 }
 0x371   : > { %v3277_v47 = vadd.f32 %v5282_v23, %v7116_v29 }
 0x372   : > { %v3276_v55 = vadd.f32 %v5283_v8, %v7116_v29  ;;  %v4919_v25 = vpop.f32.mrb[2].mxu1 }
 0x373   : > { %3309 = vst [vmem:[%s7122_s12 + $0x8] sm:$0xff] %v3277_v47  ;;  %v5284_v41 = vadd.f32 %v4919_v25, %v4519_v19  ;;  %v3088_v14 = vpop.f32.mrb[3].mxu1 }
 0x374   : > { %3308 = vst [vmem:[%s7122_s12] sm:$0xff] %v3276_v55  ;;  %v5285_v2 = vadd.f32 %v3088_v14, %v1723_v4 }
 0x375   : > { %v3279_v31 = vadd.f32 %v5284_v41, %v7116_v29 }
 0x376   : > { %v3278_v35 = vadd.f32 %v5285_v2, %v7116_v29  ;;  %v4922_v37 = vpop.f32.mrb[4].mxu1 }
 0x377   : > { %3311 = vst [vmem:[%s7122_s12 + $0x18] sm:$0xff] %v3279_v31  ;;  %v5286_v26 = vadd.f32 %v4922_v37, %v4522_v1  ;;  %v3098_v53 = vpop.f32.mrb[5].mxu1 }
 0x378   : > { %3310 = vst [vmem:[%s7122_s12 + $0x10] sm:$0xff] %v3278_v35  ;;  %v5287_v62 = vadd.f32 %v3098_v53, %v1733_v49 }
 0x379   : > { %v3281_v20 = vadd.f32 %v5286_v26, %v7116_v29 }
 0x37a   : > { %v3280_v63 = vadd.f32 %v5287_v62, %v7116_v29  ;;  %v4925_v48 = vpop.f32.mrb[6].mxu1 }
 0x37b   : > { %3313 = vst [vmem:[%s7122_s12 + $0x28] sm:$0xff] %v3281_v20  ;;  %v5288_v12 = vadd.f32 %v4925_v48, %v4525_v33  ;;  %v3108_v11 = vpop.f32.mrb[7].mxu1 }
 0x37c   : > { %3312 = vst [vmem:[%s7122_s12 + $0x20] sm:$0xff] %v3280_v63  ;;  %v5289_v36 = vadd.f32 %v3108_v11, %v1743_v5 }
 0x37d   : > { %v3283_v58 = vadd.f32 %v5288_v12, %v7116_v29 }
 0x37e   : > { %v3282_v17 = vadd.f32 %v5289_v36, %v7116_v29  ;;  %v4928_v44 = vpop.f32.mrb[8].mxu1 }
 0x37f   : > { %3315 = vst [vmem:[%s7122_s12 + $0x38] sm:$0xff] %v3283_v58  ;;  %v5290_v39 = vadd.f32 %v4928_v44, %v4528_v43  ;;  %v3118_v45 = vpop.f32.mrb[9].mxu1 }
 0x380   : > { %3314 = vst [vmem:[%s7122_s12 + $0x30] sm:$0xff] %v3282_v17  ;;  %v5291_v7 = vadd.f32 %v3118_v45, %v1753_v28 }
 0x381   : > { %v3285_v13 = vadd.f32 %v5290_v39, %v7116_v29 }
 0x382   : > { %v3284_v51 = vadd.f32 %v5291_v7, %v7116_v29  ;;  %v4931_v59 = vpop.f32.mrb[10].mxu1 }
 0x383   : > { %3317 = vst [vmem:[%s7122_s12 + $0x48] sm:$0xff] %v3285_v13  ;;  %v5292_v22 = vadd.f32 %v4931_v59, %v7069_v9  ;;  %v3128_v38 = vpop.f32.mrb[11].mxu1 }
 0x384   : > { %3316 = vst [vmem:[%s7122_s12 + $0x40] sm:$0xff] %v3284_v51  ;;  %v5293_v19 = vadd.f32 %v3128_v38, %v7071_v57 }
 0x385   : > { %v3287_v4 = vadd.f32 %v5292_v22, %v7116_v29 }
 0x386   : > { %v3286_v1 = vadd.f32 %v5293_v19, %v7116_v29  ;;  %v4934_v49 = vpop.f32.mrb[12].mxu1 }
 0x387   : > { %3319 = vst [vmem:[%s7122_s12 + $0x58] sm:$0xff] %v3287_v4  ;;  %v5294_v33 = vadd.f32 %v4934_v49, %v7073_v10  ;;  %v3138_v5 = vpop.f32.mrb[13].mxu1 }
 0x388   : > { %3318 = vst [vmem:[%s7122_s12 + $0x50] sm:$0xff] %v3286_v1  ;;  %v5295_v43 = vadd.f32 %v3138_v5, %v7075_v60 }
 0x389   : > { %v3289_v28 = vadd.f32 %v5294_v33, %v7116_v29 }
 0x38a   : > { %v3288_v9 = vadd.f32 %v5295_v43, %v7116_v29  ;;  %v4937_v15 = vpop.f32.mrb[14].mxu1 }
 0x38b   : > { %3321 = vst [vmem:[%s7122_s12 + $0x68] sm:$0xff] %v3289_v28  ;;  %v5296_v57 = vadd.f32 %v4937_v15, %v7077_v30  ;;  %v3148_v23 = vpop.f32.mrb[15].mxu1 }
 0x38c   : > { %3320 = vst [vmem:[%s7122_s12 + $0x60] sm:$0xff] %v3288_v9  ;;  %v5297_v54 = vadd.f32 %v3148_v23, %v7079_v24 }
 0x38d   : > { %v3291_v10 = vadd.f32 %v5296_v57, %v7116_v29 }
 0x38e   : > { %v3290_v8 = vadd.f32 %v5297_v54, %v7116_v29  ;;  %v4940_v47 = vpop.f32.mrb[16].mxu1 }
 0x38f   : > { %3323 = vst [vmem:[%s7122_s12 + $0x78] sm:$0xff] %v3291_v10  ;;  %v5298_v60 = vadd.f32 %v4940_v47, %v7081_v50  ;;  %v3158_v55 = vpop.f32.mrb[17].mxu1 }
 0x390   : > { %3322 = vst [vmem:[%s7122_s12 + $0x70] sm:$0xff] %v3290_v8  ;;  %v5299_v25 = vadd.f32 %v3158_v55, %v7083_v3 }
 0x391   : > { %v3293_v30 = vadd.f32 %v5298_v60, %v7116_v29 }
 0x392   : > { %v3292_v41 = vadd.f32 %v5299_v25, %v7116_v29  ;;  %v4943_v14 = vpop.f32.mrb[18].mxu1 }
 0x393   : > { %3325 = vst [vmem:[%s7122_s12 + $0x88] sm:$0xff] %v3293_v30  ;;  %v5300_v24 = vadd.f32 %v4943_v14, %v7085_v27  ;;  %v3168_v2 = vpop.f32.mrb[19].mxu1 }
 0x394   : > { %3324 = vst [vmem:[%s7122_s12 + $0x80] sm:$0xff] %v3292_v41  ;;  %v5301_v31 = vadd.f32 %v3168_v2, %v7087_v61 }
 0x395   : > { %v3295_v50 = vadd.f32 %v5300_v24, %v7116_v29 }
 0x396   : > { %v3294_v35 = vadd.f32 %v5301_v31, %v7116_v29  ;;  %v4946_v37 = vpop.f32.mrb[20].mxu1 }
 0x397   : > { %3327 = vst [vmem:[%s7122_s12 + $0x98] sm:$0xff] %v3295_v50  ;;  %v5302_v3 = vadd.f32 %v4946_v37, %v7089_v56  ;;  %v3178_v26 = vpop.f32.mrb[21].mxu1 }
 0x398   : > { %3326 = vst [vmem:[%s7122_s12 + $0x90] sm:$0xff] %v3294_v35  ;;  %v5303_v53 = vadd.f32 %v3178_v26, %v7091_v21 }
 0x399   : > { %v3297_v27 = vadd.f32 %v5302_v3, %v7116_v29 }
 0x39a   : > { %v3296_v62 = vadd.f32 %v5303_v53, %v7116_v29  ;;  %v4949_v20 = vpop.f32.mrb[22].mxu1 }
 0x39b   : > { %3329 = vst [vmem:[%s7122_s12 + $0xa8] sm:$0xff] %v3297_v27  ;;  %v5304_v61 = vadd.f32 %v4949_v20, %v7093_v40  ;;  %v3188_v63 = vpop.f32.mrb[23].mxu1 }
 0x39c   : > { %3328 = vst [vmem:[%s7122_s12 + $0xa0] sm:$0xff] %v3296_v62  ;;  %v5305_v48 = vadd.f32 %v3188_v63, %v7095_v46 }
 0x39d   : > { %v3299_v56 = vadd.f32 %v5304_v61, %v7116_v29 }
 0x39e   : > { %v3298_v12 = vadd.f32 %v5305_v48, %v7116_v29  ;;  %v4952_v11 = vpop.f32.mrb[24].mxu1 }
 0x39f   : > { %3331 = vst [vmem:[%s7122_s12 + $0xb8] sm:$0xff] %v3299_v56  ;;  %v5306_v21 = vadd.f32 %v4952_v11, %v7097_v42  ;;  %v3198_v36 = vpop.f32.mrb[25].mxu1 }
 0x3a0   : > { %3330 = vst [vmem:[%s7122_s12 + $0xb0] sm:$0xff] %v3298_v12  ;;  %v5307_v58 = vadd.f32 %v3198_v36, %v7099_v34 }
 0x3a1   : > { %v3301_v40 = vadd.f32 %v5306_v21, %v7116_v29 }
 0x3a2   : > { %v3300_v17 = vadd.f32 %v5307_v58, %v7116_v29  ;;  %v4955_v44 = vpop.f32.mrb[26].mxu1 }
 0x3a3   : > { %3333 = vst [vmem:[%s7122_s12 + $0xc8] sm:$0xff] %v3301_v40  ;;  %v5308_v46 = vadd.f32 %v4955_v44, %v7101_v0  ;;  %v3208_v39 = vpop.f32.mrb[27].mxu1 }
 0x3a4   : > { %3332 = vst [vmem:[%s7122_s12 + $0xc0] sm:$0xff] %v3300_v17  ;;  %v5309_v42 = vadd.f32 %v3208_v39, %v7103_v52 }
 0x3a5   : > { %v3303_v45 = vadd.f32 %v5308_v46, %v7116_v29 }
 0x3a6   : > { %v3302_v34 = vadd.f32 %v5309_v42, %v7116_v29  ;;  %v4958_v7 = vpop.f32.mrb[28].mxu1 }
 0x3a7   : > { %3335 = vst [vmem:[%s7122_s12 + $0xd8] sm:$0xff] %v3303_v45  ;;  %v5310_v13 = vadd.f32 %v4958_v7, %v7105_v18  ;;  %v3218_v51 = vpop.f32.mrb[29].mxu1 }
 0x3a8   : > { %3334 = vst [vmem:[%s7122_s12 + $0xd0] sm:$0xff] %v3302_v34  ;;  %v5311_v0 = vadd.f32 %v3218_v51, %v7107_v6 }
 0x3a9   : > { %v3305_v59 = vadd.f32 %v5310_v13, %v7116_v29 }
 0x3aa   : > { %v3304_v52 = vadd.f32 %v5311_v0, %v7116_v29  ;;  %v4961_v22 = vpop.f32.mrb[30].mxu1 }
 0x3ab   : > { %3337 = vst [vmem:[%s7122_s12 + $0xe8] sm:$0xff] %v3305_v59  ;;  %v5312_v38 = vadd.f32 %v4961_v22, %v7109_v32  ;;  %v3228_v19 = vpop.f32.mrb[31].mxu1 }
 0x3ac   : > { %3336 = vst [vmem:[%s7122_s12 + $0xe0] sm:$0xff] %v3304_v52  ;;  %v5313_v18 = vadd.f32 %v3228_v19, %v7111_v16 }
 0x3ad   : > { %v3307_v4 = vadd.f32 %v5312_v38, %v7116_v29 }
 0x3ae   : > { %v3306_v6 = vadd.f32 %v5313_v18, %v7116_v29 }
 0x3af   : > { %3339 = vst [vmem:[%s7122_s12 + $0xf8] sm:$0xff] %v3307_v4 }
 0x3b0   : > { %3338 = vst [vmem:[%s7122_s12 + $0xf0] sm:$0xff] %v3306_v6 }
 0x3b1   : > { %5744 = shalt.err (!%p5741_p7)
}
 0x3b2   : > { %s5745_s0 = scalar_lea.hbm %s7210_s10, 4096  ;;  %s5749_s14 = scalar_lea.hbm %s7265_s6, 8192 }
 0x3b3   : > { %p5746_p9 = scmp.ne.s32.totalorder %s7210_s10, %s5745_s0  ;;  %p5750_p11 = scmp.lt.u32.totalorder %s7210_s10, %s7265_s6 }
 0x3b4   : > { %p5751_p2 = scmp.lt.u32.totalorder %s5749_s14, %s5745_s0  ;;  %p5753_p1 = scmp.lt.u32.totalorder %s5745_s0, %s7210_s10 }
 0x3b5   : > { %p5747_p0 = pnand %p5746_p9, %p7453_p13 }
 0x3b6   : > { %p5752_p12 = por %p5751_p2, %p5750_p11 }
 0x3b7   : > { %p5748_p8 = pneg %p5747_p0 }
 0x3b8   : > { %p5754_p6 = por %p5753_p1, %p5752_p12 }
 0x3ba   : > { %p5755_p10 = pnand %p5754_p6, %p5748_p8 }
 0x3bc   : > { %5758 = shalt.err (!%p5755_p10)
}
 0x3bd   : > { %s5819_s13 = smov 128   ;;  %s5820_s16 = smov 8  }
 0x3be   : > { %5550 = dma.vmem_to_hbm [thread:$0]  (%p7453_p13), %s7212_s7, 4096, %s7210_s10, %s3341_s25, %s5819_s13, %s5819_s13, %s5820_s16  }
 0x3bf PF: > { %s3369_s12 = sand.u32 1, %s5797_s21   ;;  %p7454_p4 = scmp.ne.s32.totalorder %s7336_s28, 0 }
 0x3c0   : > { %p7455_p5 = scmp.ge.s32.totalorder %s5809_s24, 2  ;;  %s3370_s17 = scalar_lea.sflag [#allocation4], %s3369_s12 }
 0x3c2   : > { %p5567_p3 = pnand %p7455_p5, %p7454_p4 }
 0x3c4   : > { %5792 = dma.done.wait (!%p5567_p3), %s3370_s17, 4096  }
 0x3c5   : > { %5794 = vsyncadd (!%p5567_p3), %s3370_s17, 4294963200  ;;  %s7456_s2 = sld [smem:[#allocation16_spill]]  ;;  %p23_p7 = scmp.ge.s32.totalorder %s5972_s8, 4  }
 0x3c6   : > { %s7457_s21 = smov %s5801_s22  ;;  %s7458_s22 = smov %s5805_s23 }
 0x3c7   : > { %s7460_s24 = smov %s5972_s8  ;;  %25 = sbr.rel (!%p23_p7) target bundleno = 12 (0xc), region = 110 }
 0x3cb   : > { %s7459_s23 = smov %s7456_s2 }
 0x3ce   :  { %3375 = vsyncpa [#allocation3], 1 }
 0x3cf   :  { %3377 = vsyncpa [#allocation3 + $0x1], 1 }
 0x3d0   :  { %3378 = vsyncpa [#allocation6], 1 }
 0x3d1   :  { %3380 = vsyncpa [#allocation6 + $0x1], 1 }
 0x3d2   :  { %3381 = vsyncpa [#allocation9], 1 }
 0x3d3   :  { %3382 = vsyncpa [#allocation4], 1 }
 0x3d4   :  { %3384 = vsyncpa [#allocation4 + $0x1], 1 }

</bundles_post_ra>
